<compile_context>
chip_gen: v6e
topology: v6e:2x2x1
jax: 0.10.0
libtpu: 0.0.40
codegen_flags: <defaults>
</compile_context>

<pallas_src>
import functools

import jax
import jax.numpy as jnp
import numpy as np
from jax.experimental import pallas as pl
from jax.experimental.pallas import tpu as pltpu

_BN_EPS = 1e-5
MXU_DTYPE = jnp.bfloat16     # MXU operand dtype (f32 recovers bit-faithful PyTorch numerics)
ACT_DTYPE = jnp.bfloat16     # inter-kernel activation storage dtype (HBM-bound passes)
_ROW_ALIGN = 16              # sublane alignment satisfying both f32 (8) and bf16 (16) tiling


# ----------------------------------------------------------------------------------------
# Small helpers
# ----------------------------------------------------------------------------------------
def _cp(c, m):
    """Round a channel count up to the lane-padding multiple."""
    return ((c + m - 1) // m) * m


def _pad_last(a, width):
    if a.shape[-1] == width:
        return a
    pad = [(0, 0)] * (a.ndim - 1) + [(0, width - a.shape[-1])]
    return jnp.pad(a, pad)


@functools.lru_cache(maxsize=None)
def _vmem_limit_bytes():
    """Per-generation scoped-VMEM sizing (review): leave headroom below physical capacity."""
    try:
        cap = getattr(pltpu.get_tpu_info(), "vmem_capacity_bytes", None)
    except Exception:
        cap = None
    if not cap:
        return 48 * 1024 * 1024
    return int(min(cap - 16 * 1024 * 1024, 112 * 1024 * 1024))


def _compiler_params(semantics):
    return pltpu.CompilerParams(dimension_semantics=semantics,
                                vmem_limit_bytes=_vmem_limit_bytes())


@functools.lru_cache(maxsize=None)
def _sublane_roll_supported():
    """Probe-compile a sublane pltpu.roll; fall back to slice+concat if rejected."""
    try:
        def k(x_ref, o_ref):
            o_ref[...] = pltpu.roll(x_ref[...], shift=1, axis=0)
        s = jax.ShapeDtypeStruct((16, 8), jnp.float32)
        jax.jit(pl.pallas_call(k, out_shape=s)).lower(s).compile()
        return True
    except Exception:
        return False


def _shift_rows(x, down):
    """x shifted by one row (down=True: row r holds x[r-1]); wrap rows are masked by caller."""
    rows = x.shape[0]
    if _sublane_roll_supported():
        return pltpu.roll(x, shift=1 if down else rows - 1, axis=0)
    zero = jnp.zeros((1, x.shape[1]), x.dtype)
    if down:
        return jnp.concatenate([zero, x[:-1, :]], axis=0)
    return jnp.concatenate([x[1:, :], zero], axis=0)


def _pick_batch_tile(n_batch, length, batch_tile):
    """Aligned divisor of n_batch near `batch_tile`; never silently collapse to one block."""
    cands = [d for d in range(1, n_batch + 1)
             if n_batch % d == 0 and (d * length) % _ROW_ALIGN == 0]
    if not cands:
        return n_batch                       # single full block (exempt from alignment rule)
    under = [d for d in cands if d <= batch_tile]
    if under:
        return under[-1]                     # largest aligned divisor <= requested
    return cands[0]                          # smallest aligned divisor above the request


# ----------------------------------------------------------------------------------------
# Kernels
# ----------------------------------------------------------------------------------------
def _conv3_stats_kernel(*refs, pool, pre_act, length, act_dtype):
    """[bn-affine+relu] -> [maxpool2] -> conv1d(k=3,pad=1) -> per-channel partial sum/sumsq.

    refs (pre_act=True):  x, scale, shift, w | y, stats
    refs (pre_act=False): x,               w | y, stats
    x     : (rows, Cin_eff) activation tile; rows = batch_tile * L (whole columns only).
            If pool, Cin_eff == 2*Cin_p and the pooling partners sit in the lane halves.
    w     : (3*Cin_p, Cout_p) im2col-packed conv weight (tap-major, zero-padded lanes).
    y     : (rows, Cout_p) raw conv output (pre-BN), stored in ACT_DTYPE.
    stats : (1, 2, Cout_p) f32 PARTIAL [sum; sumsq] for this grid step (reduced in wrapper,
            which keeps the grid axis "parallel" for megacore / v7x).
    """
    if pre_act:
        x_ref, scale_ref, shift_ref, w_ref, y_ref, stats_ref = refs
    else:
        x_ref, w_ref, y_ref, stats_ref = refs

    x = x_ref[...].astype(jnp.float32)
    if pre_act:                 # previous BatchNorm folded to per-channel affine + ReLU
        x = jnp.maximum(x * scale_ref[...] + shift_ref[...], 0.0)
    if pool:                    # fused MaxPool1d(2): partners live in the two lane halves
        ch = x.shape[-1] // 2
        x = jnp.maximum(x[:, :ch], x[:, ch:])

    rows = x.shape[0]
    # Column-boundary masks generated in-kernel from iota (no DMA'd mask operand).
    l_idx = jax.lax.broadcasted_iota(jnp.int32, (rows, 1), 0) % length
    m_first = (l_idx != 0).astype(jnp.float32)           # zero the row wrapped in from below
    m_last = (l_idx != length - 1).astype(jnp.float32)   # zero the row wrapped in from above

    # +-1 row shifts on the XLU (roll); wraparound rows are zeroed by the masks.
    x_prev = _shift_rows(x, down=True) * m_first
    x_next = _shift_rows(x, down=False) * m_last

    wt = w_ref[...]
    # im2col: one lane-dense (rows, 3*Cin_p) bf16 operand -> single MXU matmul, K = 3*Cin_p.
    xcat = jnp.concatenate([x_prev.astype(wt.dtype), x.astype(wt.dtype),
                            x_next.astype(wt.dtype)], axis=-1)
    y = jnp.dot(xcat, wt, preferred_element_type=jnp.float32)

    y_q = y.astype(act_dtype)
    y_ref[...] = y_q

    # BN statistics are taken over the values that will actually be normalized (the stored
    # activations), accumulated in f32.
    yf = y_q.astype(jnp.float32)
    ts = jnp.concatenate([jnp.sum(yf, axis=0, keepdims=True),
                          jnp.sum(yf * yf, axis=0, keepdims=True)], axis=0)
    stats_ref[...] = ts.reshape(1, 2, -1)


def _affine_relu_kernel(x_ref, scale_ref, shift_ref, o_ref):
    """y = relu(x * scale + shift)   (BatchNorm finalize as a per-channel affine)."""
    y = jnp.maximum(x_ref[...].astype(jnp.float32) * scale_ref[...] + shift_ref[...], 0.0)
    o_ref[...] = y.astype(o_ref.dtype)


def _dense_kernel(*refs, act, pre_act):
    """y = [relu]( [relu(x*scale+shift)] @ w + b ).
    Shared by ConvTranspose1d(k=2,s=2), OutConv (1x1) and nn.Linear; the optional pre-affine
    folds the producer's bn2 into this kernel (no separate normalize pass)."""
    if pre_act:
        x_ref, scale_ref, shift_ref, w_ref, b_ref, o_ref = refs
    else:
        x_ref, w_ref, b_ref, o_ref = refs
    x = x_ref[...].astype(jnp.float32)
    if pre_act:
        x = jnp.maximum(x * scale_ref[...] + shift_ref[...], 0.0)
    y = jnp.dot(x.astype(w_ref.dtype), w_ref[...],
                preferred_element_type=jnp.float32) + b_ref[...]
    if act:
        y = jnp.maximum(y, 0.0)
    o_ref[...] = y.astype(o_ref.dtype)


# ----------------------------------------------------------------------------------------
# pallas_call wrappers
# ----------------------------------------------------------------------------------------
def _conv3_stats(x, w_cat, n_batch, length, *, pool, scale=None, shift=None, batch_tile):
    pre_act = scale is not None
    rows = n_batch * length
    cin_eff = x.shape[-1]
    c_out = w_cat.shape[-1]
    bt = _pick_batch_tile(n_batch, length, batch_tile)
    grid = n_batch // bt
    rows_tile = bt * length

    ins = [x]
    in_specs = [pl.BlockSpec((rows_tile, cin_eff), lambda i: (i, 0))]
    if pre_act:
        ins += [scale, shift]
        in_specs += [pl.BlockSpec((1, cin_eff), lambda i: (0, 0)),
                     pl.BlockSpec((1, cin_eff), lambda i: (0, 0))]
    ins += [w_cat]
    in_specs += [pl.BlockSpec(w_cat.shape, lambda i: (0, 0))]

    y, stats = pl.pallas_call(
        functools.partial(_conv3_stats_kernel, pool=pool, pre_act=pre_act,
                          length=length, act_dtype=ACT_DTYPE),
        out_shape=(jax.ShapeDtypeStruct((rows, c_out), ACT_DTYPE),
                   jax.ShapeDtypeStruct((grid, 2, c_out), jnp.float32)),
        grid_spec=pltpu.PrefetchScalarGridSpec(
            num_scalar_prefetch=0,
            grid=(grid,),
            in_specs=in_specs,
            out_specs=(pl.BlockSpec((rows_tile, c_out), lambda i: (i, 0)),
                       pl.BlockSpec((1, 2, c_out), lambda i: (i, 0, 0)))),
        # each output block is written exactly once -> axis is "parallel" (megacore / v7x)
        compiler_params=_compiler_params(("parallel",)),
    )(*ins)
    return y, jnp.sum(stats, axis=0)          # tiny partial-stats reduction in the wrapper


def _bn_affine(stats, gamma, beta, count, c_pad):
    """Fold training-mode BatchNorm (batch mean, biased var) into a per-channel affine.
    Padded channels get gamma=beta=0 -> scale=shift=0, so they stay exactly zero."""
    g = jnp.pad(gamma, (0, c_pad - gamma.shape[0]))
    b = jnp.pad(beta, (0, c_pad - beta.shape[0]))
    mean = stats[0] / count
    var = stats[1] / count - mean * mean       # single-pass E[x^2] - mu^2 (see TODO above)
    scale = g * jax.lax.rsqrt(var + _BN_EPS)
    shift = b - mean * scale
    return scale.reshape(1, -1), shift.reshape(1, -1)


def _affine_relu(x, scale, shift, n_batch, length, batch_tile):
    rows, c = x.shape
    bt = _pick_batch_tile(n_batch, length, batch_tile)
    rows_tile = bt * length
    return pl.pallas_call(
        _affine_relu_kernel,
        out_shape=jax.ShapeDtypeStruct((rows, c), ACT_DTYPE),
        grid_spec=pltpu.PrefetchScalarGridSpec(
            num_scalar_prefetch=0,
            grid=(n_batch // bt,),
            in_specs=[pl.BlockSpec((rows_tile, c), lambda i: (i, 0)),
                      pl.BlockSpec((1, c), lambda i: (0, 0)),
                      pl.BlockSpec((1, c), lambda i: (0, 0))],
            out_specs=pl.BlockSpec((rows_tile, c), lambda i: (i, 0))),
        compiler_params=_compiler_params(("parallel",)),
    )(x, scale, shift)


def _dense(x, w, b, *, act, row_tile=None, scale=None, shift=None, out_dtype=jnp.float32):
    rows, d_in = x.shape
    d_out = w.shape[-1]
    rt = rows if row_tile is None else row_tile
    pre_act = scale is not None

    ins = [x]
    in_specs = [pl.BlockSpec((rt, d_in), lambda i: (i, 0))]
    if pre_act:
        ins += [scale, shift]
        in_specs += [pl.BlockSpec((1, d_in), lambda i: (0, 0)),
                     pl.BlockSpec((1, d_in), lambda i: (0, 0))]
    ins += [w, b.reshape(1, d_out).astype(jnp.float32)]
    in_specs += [pl.BlockSpec(w.shape, lambda i: (0, 0)),
                 pl.BlockSpec((1, d_out), lambda i: (0, 0))]

    return pl.pallas_call(
        functools.partial(_dense_kernel, act=act, pre_act=pre_act),
        out_shape=jax.ShapeDtypeStruct((rows, d_out), out_dtype),
        grid_spec=pltpu.PrefetchScalarGridSpec(
            num_scalar_prefetch=0,
            grid=(rows // rt,),
            in_specs=in_specs,
            out_specs=pl.BlockSpec((rt, d_out), lambda i: (i, 0))),
        compiler_params=_compiler_params(("parallel",)),
    )(*ins)


# ----------------------------------------------------------------------------------------
# Weight packing (with zero-padded channel lanes)
# ----------------------------------------------------------------------------------------
def _pack_conv3(w, in_segments, cout_p):
    """PyTorch Conv1d weight (Cout, Cin, 3) -> im2col weight (3*Cin_p, Cout_p), tap-major.
    `in_segments` lists (real, padded) widths of the (possibly concatenated) input layout."""
    cout, cin, _ = w.shape
    assert sum(r for r, _ in in_segments) == cin
    parts, off = [], 0
    for c_real, c_padded in in_segments:
        part = w[:, off:off + c_real, :]
        parts.append(jnp.pad(part, ((0, cout_p - cout), (0, c_padded - c_real), (0, 0))))
        off += c_real
    wp = parts[0] if len(parts) == 1 else jnp.concatenate(parts, axis=1)
    cin_p = wp.shape[1]
    return jnp.transpose(wp, (2, 1, 0)).reshape(3 * cin_p, cout_p).astype(MXU_DTYPE)


def _pack_up(w, b, cin_p, cout_p):
    """ConvTranspose1d weight (Cin, Cout, 2) -> (Cin_p, 2*Cout_p) [tap-0 | tap-1] + bias."""
    cin, cout, _ = w.shape
    wp = jnp.pad(w, ((0, cin_p - cin), (0, cout_p - cout), (0, 0)))
    w_cat = jnp.concatenate([wp[:, :, 0], wp[:, :, 1]], axis=1).astype(MXU_DTYPE)
    b_pad = jnp.pad(b, (0, cout_p - cout))
    return w_cat, jnp.concatenate([b_pad, b_pad], axis=0)


# ----------------------------------------------------------------------------------------
# Network blocks (flat channels-last activations: (N*L, C_padded))
# ----------------------------------------------------------------------------------------
def _double_conv_raw(x, seg_in, n_batch, length, p, *, pool, batch_tile, lane_mult):
    """[maxpool2] -> conv -> bn -> relu -> conv, returning the RAW conv2 output plus the
    bn2 affine (scale, shift) so the caller can either fuse it into the consumer or
    materialize it with _affine_relu."""
    if pool:
        cp_in = x.shape[-1]
        length = length // 2
        x = x.reshape(n_batch * length, 2 * cp_in)   # free reshape; kernel does the max
    rows = n_batch * length
    cmid, cout = p['w1'].shape[0], p['w2'].shape[0]
    cmid_p, cout_p = _cp(cmid, lane_mult), _cp(cout, lane_mult)

    h_raw, s1 = _conv3_stats(x, _pack_conv3(p['w1'], seg_in, cmid_p),
                             n_batch, length, pool=pool, batch_tile=batch_tile)
    sc1, sh1 = _bn_affine(s1, p['g1'], p['b1'], rows, cmid_p)
    y_raw, s2 = _conv3_stats(h_raw, _pack_conv3(p['w2'], [(cmid, cmid_p)], cout_p),
                             n_batch, length, pool=False, scale=sc1, shift=sh1,
                             batch_tile=batch_tile)
    sc2, sh2 = _bn_affine(s2, p['g2'], p['b2'], rows, cout_p)
    return y_raw, sc2, sh2, (cout, cout_p), length


def _up_sample(y_raw, scale, shift, n_batch, length, up_p, *, batch_tile, lane_mult):
    """bn2-affine + relu (fused) -> ConvTranspose1d(k=2, s=2) as one matmul against
    [W0 | W1]; the stride-2 interleave is a free wrapper reshape of a lane-dense output."""
    w, b = up_p['up_w'], up_p['up_b']                   # (Cin, Cout, 2), (Cout,)
    cout = w.shape[1]
    cin_p = y_raw.shape[-1]
    cout_p = _cp(cout, lane_mult)
    w_cat, b_cat = _pack_up(w, b, cin_p, cout_p)
    bt = _pick_batch_tile(n_batch, length, batch_tile)
    y = _dense(y_raw, w_cat, b_cat, act=False, row_tile=bt * length,
               scale=scale, shift=shift, out_dtype=ACT_DTYPE)      # (rows, 2*Cout_p)
    return y.reshape(n_batch * length * 2, cout_p), (cout, cout_p), 2 * length


@functools.partial(jax.jit, static_argnames=("column_height", "batch_tile", "lane_multiple"))
def unet_forward_pallas(x_ncl, params, *, column_height, batch_tile=8, lane_multiple=128):
    """Forward pass of Unet (linear=False path).  x_ncl: (N, n_channels, column_height)."""
    n_batch, n_ch, h = x_ncl.shape
    lt = int(2 ** int(np.ceil(np.log2(column_height))))
    diff = lt - h
    x = jnp.pad(x_ncl.astype(jnp.float32),
                ((0, 0), (0, 0), (diff // 2, diff - diff // 2)))          # init_transform
    # Single layout change: NCL -> flat channels-last rows; channel lanes zero-padded.
    x = jnp.transpose(x, (0, 2, 1)).reshape(n_batch * lt, n_ch)
    c_r, c_p = n_ch, _cp(n_ch, lane_multiple)
    x = _pad_last(x, c_p)
    length = lt

    # inconv -- its activation is needed twice (skip + pooled input), so bn2 is materialized.
    y, sc, sh, (c_r, c_p), length = _double_conv_raw(
        x, [(c_r, c_p)], n_batch, length, params['inconv'],
        pool=False, batch_tile=batch_tile, lane_mult=lane_multiple)
    x_act = _affine_relu(y, sc, sh, n_batch, length, batch_tile)

    skips = []
    n_down = len(params['downs'])
    for di, dp in enumerate(params['downs']):                            # Down blocks
        skips.append((x_act, (c_r, c_p), length))
        y, sc, sh, (c_r, c_p), length = _double_conv_raw(
            x_act, [(c_r, c_p)], n_batch, length, dp,
            pool=True, batch_tile=batch_tile, lane_mult=lane_multiple)
        if di + 1 < n_down:               # deepest bn2 is fused into the first upsample
            x_act = _affine_relu(y, sc, sh, n_batch, length, batch_tile)

    for up_p, (skip, (cs_r, cs_p), skip_len) in list(zip(params['ups'], skips))[::-1]:
        # ConvTranspose1d fused with the producer's bn2-affine + relu.
        x_up, (cu_r, cu_p), length = _up_sample(
            y, sc, sh, n_batch, length, up_p, batch_tile=batch_tile, lane_mult=lane_multiple)
        assert length == skip_len   # power-of-two heights -> torch's diffH pad is always 0
        x_cat = jnp.concatenate([skip, x_up], axis=-1)         # torch.cat([x2, x1], dim=1)
        y, sc, sh, (c_r, c_p), length = _double_conv_raw(
            x_cat, [(cs_r, cs_p), (cu_r, cu_p)], n_batch, length, up_p['dc'],
            pool=False, batch_tile=batch_tile, lane_mult=lane_multiple)

    # OutConv (1x1 conv + bias + relu), fused with the last bn2-affine + relu.
    cf_r, cf_p = c_r, c_p
    w_oc = params['outconv_w'][:, :, 0]                        # (n_classes, n_features)
    n_cls = w_oc.shape[0]
    ncls_p = _cp(n_cls, lane_multiple)
    w_oc = jnp.pad(jnp.transpose(w_oc),
                   ((0, cf_p - cf_r), (0, ncls_p - n_cls))).astype(MXU_DTYPE)
    b_oc = jnp.pad(params['outconv_b'], (0, ncls_p - n_cls))
    bt = _pick_batch_tile(n_batch, length, batch_tile)
    z = _dense(y, w_oc, b_oc, act=True, row_tile=bt * length,
               scale=sc, shift=sh, out_dtype=ACT_DTYPE)        # (N*L, ncls_p), lane-padded

    # flatten(1) + Linear: channels-last flatten, consumed through a permuted + zero-padded
    # fc weight so no inverse transpose of the activations is ever needed.
    z = z.reshape(n_batch, length * ncls_p)
    w_fc = params['fc_w'].reshape(-1, n_cls, length)           # (out_total, n_cls, L)
    w_fc = jnp.transpose(w_fc, (2, 1, 0))                      # (L, n_cls, out_total)
    w_fc = jnp.pad(w_fc, ((0, 0), (0, ncls_p - n_cls), (0, 0)))
    w_fc = w_fc.reshape(length * ncls_p, -1).astype(MXU_DTYPE)
    return _dense(z, w_fc, params['fc_b'], act=False)


# ----------------------------------------------------------------------------------------
# Pure-JAX reference (NCL layout) mirroring the PyTorch forward; operands and stored
# activations are quantized exactly where the kernels quantize (MXU bf16 / ACT bf16).
# ----------------------------------------------------------------------------------------
def _q(a):
    return a.astype(MXU_DTYPE).astype(jnp.float32)


def _qa(a):
    return a.astype(ACT_DTYPE).astype(jnp.float32)


@functools.partial(jax.jit, static_argnames=("column_height",))
def unet_forward_reference(x_ncl, params, *, column_height):
    n_batch, _, h = x_ncl.shape
    lt = int(2 ** int(np.ceil(np.log2(column_height))))
    diff = lt - h
    x = jnp.pad(x_ncl.astype(jnp.float32), ((0, 0), (0, 0), (diff // 2, diff - diff // 2)))

    def conv3(x, w):
        return jax.lax.conv_general_dilated(
            _q(x), _q(w), window_strides=(1,), padding=((1, 1),),
            dimension_numbers=("NCH", "OIH", "NCH"))

    def bn(y, g, b):
        mu = jnp.mean(y, axis=(0, 2), keepdims=True)
        var = jnp.mean((y - mu) ** 2, axis=(0, 2), keepdims=True)      # biased, training mode
        return (y - mu) * jax.lax.rsqrt(var + _BN_EPS) * g.reshape(1, -1, 1) + b.reshape(1, -1, 1)

    def double_conv(x, p):
        h1 = jnp.maximum(bn(_qa(conv3(x, p['w1'])), p['g1'], p['b1']), 0.0)
        return jnp.maximum(bn(_qa(conv3(h1, p['w2'])), p['g2'], p['b2']), 0.0)

    def maxpool2(x):
        nb, c, l = x.shape
        return jnp.max(x.reshape(nb, c, l // 2, 2), axis=-1)

    def conv_transpose2(x, w, b):
        y = jnp.einsum("ncl,cot->nolt", _q(x), _q(w)) + b.reshape(1, -1, 1, 1)
        nb, co, l, _ = y.shape
        return y.reshape(nb, co, 2 * l)

    x = double_conv(x, params['inconv'])
    skips = []
    for dp in params['downs']:
        skips.append(x)
        x = double_conv(maxpool2(x), dp)
    for up_p, skip in list(zip(params['ups'], skips))[::-1]:
        x = conv_transpose2(x, up_p['up_w'], up_p['up_b'])
        x = jnp.concatenate([skip, x], axis=1)
        x = double_conv(x, up_p['dc'])

    x = jnp.einsum("ncl,oc->nol", _q(x), _q(params['outconv_w'][:, :, 0]))
    x = jnp.maximum(x + params['outconv_b'].reshape(1, -1, 1), 0.0)
    x = x.reshape(n_batch, -1)                                # torch.flatten(x, 1) on (N, C, L)
    return jnp.dot(_q(x), _q(params['fc_w']).T) + params['fc_b']


# ----------------------------------------------------------------------------------------
# Parameter construction (PyTorch layer shapes, deterministic synthetic values)
# ----------------------------------------------------------------------------------------
def _dc_params(key, cin, cmid, cout):
    k1, k2, k3, k4, k5, k6 = jax.random.split(key, 6)
    return {
        'w1': jax.random.normal(k1, (cmid, cin, 3), jnp.float32) / np.sqrt(3 * cin),
        'g1': 1.0 + 0.1 * jax.random.normal(k2, (cmid,), jnp.float32),
        'b1': 0.1 * jax.random.normal(k3, (cmid,), jnp.float32),
        'w2': jax.random.normal(k4, (cout, cmid, 3), jnp.float32) / np.sqrt(3 * cmid),
        'g2': 1.0 + 0.1 * jax.random.normal(k5, (cout,), jnp.float32),
        'b2': 0.1 * jax.random.normal(k6, (cout,), jnp.float32),
    }


def init_unet_params(key, n_channels, n_classes, out_total, n_levels, n_features, lt):
    keys = iter(jax.random.split(key, 64))
    params = {'inconv': _dc_params(next(keys), n_channels, n_features, n_features)}
    downs = []
    for i in range(n_levels):
        cin, cout = n_features * 2 ** i, n_features * 2 ** (i + 1)
        downs.append(_dc_params(next(keys), cin, cout, cout))        # DoubleConv(cin, cout)
    params['downs'] = downs
    ups = []
    for i in range(n_levels):
        cin, cout = n_features * 2 ** (i + 1), n_features * 2 ** i   # Up(cin, cout)
        ups.append({
            'up_w': jax.random.normal(next(keys), (cin, cin // 2, 2), jnp.float32)
                    / np.sqrt(2 * cin),
            'up_b': 0.1 * jax.random.normal(next(keys), (cin // 2,), jnp.float32),
            'dc': _dc_params(next(keys), cin, cout, cout),
        })
    params['ups'] = ups
    params['outconv_w'] = (jax.random.normal(next(keys), (n_classes, n_features, 1), jnp.float32)
                           / np.sqrt(n_features))
    params['outconv_b'] = 0.1 * jax.random.normal(next(keys), (n_classes,), jnp.float32)
    params['fc_w'] = (jax.random.normal(next(keys), (out_total, n_classes * lt), jnp.float32)
                      / np.sqrt(n_classes * lt))
    params['fc_b'] = 0.1 * jax.random.normal(next(keys), (out_total,), jnp.float32)
    return params


if __name__ == "__main__":
    # Small config: batch=4, n_channels=4, n_classes=3, output_channels_total=8,
    # n_levels=2, n_features=4, column_height=23 (-> padded length 32).
    N, N_CH, N_CLS, OUT_TOTAL, N_LEVELS, N_FEAT, COL_H = 4, 4, 3, 8, 2, 4, 23
    LT = int(2 ** int(np.ceil(np.log2(COL_H))))

    key = jax.random.PRNGKey(0)
    kx, kp = jax.random.split(key)
    x = jax.random.normal(kx, (N, N_CH, COL_H), jnp.float32)
    params = init_unet_params(kp, N_CH, N_CLS, OUT_TOTAL, N_LEVELS, N_FEAT, LT)

    _sublane_roll_supported()   # prime the roll probe outside any outer trace

    # batch_tile=2 -> every pallas_call runs a multi-step grid (tiled, pipelined path).
    # lane_multiple=8 exercises the zero-padded-channel machinery without inflating the tiny
    # demo channel counts 32x; production sizes (n_features >= 64) should use 128 (v5e) or
    # 256 (v6e / v7x widest levels) per the performance review.
    y = jax.block_until_ready(
        unet_forward_pallas(x, params, column_height=COL_H, batch_tile=2, lane_multiple=8))
    y_ref = jax.block_until_ready(
        unet_forward_reference(x, params, column_height=COL_H))

    assert y.shape == (N, OUT_TOTAL), y.shape
    np.testing.assert_allclose(np.asarray(y), np.asarray(y_ref), rtol=2e-2, atol=2e-2)
    print("KERNEL_OK")
</pallas_src>

<mosaic_0001>
module attributes {stable_mosaic.version = 11 : i64} {
  func.func @_conv3_stats_kernel(%arg0: i32, %arg1: memref<64x8xf32, #tpu.memory_space<vmem>>, %arg2: memref<24x8xbf16, #tpu.memory_space<vmem>>, %arg3: memref<64x8xbf16, #tpu.memory_space<vmem>>, %arg4: memref<1x2x8xf32, #tpu.memory_space<vmem>>) attributes {dimension_semantics = [#tpu.dimension_semantics<parallel>], iteration_bounds = array<i64: 2>, scalar_prefetch = 0 : i64, scratch_operands = 0 : i64, tpu.core_type = #tpu.core_type<tc>, window_params = [{transform_indices = @transform_0, window_bounds = array<i64: 64, 8>}, {pipeline_mode = #tpu.pipeline_mode<synchronous>, transform_indices = @transform_1, window_bounds = array<i64: 24, 8>}, {transform_indices = @transform_2, window_bounds = array<i64: 64, 8>}, {transform_indices = @transform_3, window_bounds = array<i64: 1, 2, 8>}]} {
    %c0 = arith.constant 0 : index
    %c0_0 = arith.constant 0 : index
    %0 = vector.load %arg1[%c0, %c0_0] : memref<64x8xf32, #tpu.memory_space<vmem>>, vector<64x8xf32>
    %1 = tpu.iota {dimensions = array<i32: 0>} : vector<64x1xi32>
    %c32_i32 = arith.constant 32 : i32
    %c0_i32 = arith.constant 0 : i32
    %2 = arith.cmpi eq, %c32_i32, %c0_i32 : i32
    %c1_i32 = arith.constant 1 : i32
    %3 = arith.select %2, %c1_i32, %c32_i32 : i32
    %4 = vector.broadcast %3 : i32 to vector<64x1xi32>
    %5 = arith.remsi %1, %4 : vector<64x1xi32>
    %c0_i32_1 = arith.constant 0 : i32
    %6 = vector.broadcast %c0_i32_1 : i32 to vector<64x1xi32>
    %7 = arith.cmpi ne, %5, %6 : vector<64x1xi32>
    %c0_i32_2 = arith.constant 0 : i32
    %8 = vector.broadcast %c0_i32_2 : i32 to vector<64x1xi32>
    %9 = arith.cmpi slt, %5, %8 : vector<64x1xi32>
    %c0_i32_3 = arith.constant 0 : i32
    %10 = arith.cmpi slt, %3, %c0_i32_3 : i32
    %11 = vector.broadcast %10 : i1 to vector<64x1xi1>
    %12 = vector.broadcast %11 : vector<64x1xi1> to vector<64x1xi1>
    %13 = arith.xori %9, %12 : vector<64x1xi1>
    %14 = arith.andi %13, %7 : vector<64x1xi1>
    %15 = vector.broadcast %3 : i32 to vector<64x1xi32>
    %16 = arith.addi %5, %15 : vector<64x1xi32>
    %17 = arith.select %14, %16, %5 : vector<64x1xi1>, vector<64x1xi32>
    %c0_i32_4 = arith.constant 0 : i32
    %18 = vector.broadcast %c0_i32_4 : i32 to vector<64x1xi32>
    %19 = arith.cmpi ne, %17, %18 : vector<64x1xi32>
    %20 = arith.extui %19 : vector<64x1xi1> to vector<64x1xi32>
    %21 = arith.sitofp %20 : vector<64x1xi32> to vector<64x1xf32>
    %c31_i32 = arith.constant 31 : i32
    %22 = vector.broadcast %c31_i32 : i32 to vector<64x1xi32>
    %23 = arith.cmpi ne, %17, %22 : vector<64x1xi32>
    %24 = arith.extui %23 : vector<64x1xi1> to vector<64x1xi32>
    %25 = arith.sitofp %24 : vector<64x1xi32> to vector<64x1xf32>
    %cst = arith.constant 0.000000e+00 : f32
    %26 = vector.broadcast %cst : f32 to vector<1x8xf32>
    %27 = vector.extract_strided_slice %0 {offsets = [0, 0], sizes = [63, 8], strides = [1, 1]} : vector<64x8xf32> to vector<63x8xf32>
    %28 = tpu.concatenate %26, %27 in 0 : vector<1x8xf32>, vector<63x8xf32> -> vector<64x8xf32>
    %29 = vector.broadcast %21 : vector<64x1xf32> to vector<64x8xf32>
    %30 = arith.mulf %28, %29 : vector<64x8xf32>
    %cst_5 = arith.constant 0.000000e+00 : f32
    %31 = vector.broadcast %cst_5 : f32 to vector<1x8xf32>
    %32 = vector.extract_strided_slice %0 {offsets = [1, 0], sizes = [63, 8], strides = [1, 1]} : vector<64x8xf32> to vector<63x8xf32>
    %33 = tpu.concatenate %32, %31 in 0 : vector<63x8xf32>, vector<1x8xf32> -> vector<64x8xf32>
    %34 = vector.broadcast %25 : vector<64x1xf32> to vector<64x8xf32>
    %35 = arith.mulf %33, %34 : vector<64x8xf32>
    %c0_6 = arith.constant 0 : index
    %c0_7 = arith.constant 0 : index
    %36 = vector.load %arg2[%c0_6, %c0_7] : memref<24x8xbf16, #tpu.memory_space<vmem>>, vector<24x8xbf16>
    %37 = arith.truncf %30 : vector<64x8xf32> to vector<64x8xbf16>
    %38 = arith.truncf %0 : vector<64x8xf32> to vector<64x8xbf16>
    %39 = arith.truncf %35 : vector<64x8xf32> to vector<64x8xbf16>
    %40 = tpu.concatenate %37, %38, %39 in 1 : vector<64x8xbf16>, vector<64x8xbf16>, vector<64x8xbf16> -> vector<64x24xbf16>
    %cst_8 = arith.constant dense<0.000000e+00> : vector<64x8xf32>
    %41 = tpu.matmul %40, %36, %cst_8 {dimension_numbers = #tpu.dot_dimension_numbers<[1], [0], [0], [1], [0, 0, 1, 1], [], []>} : vector<64x24xbf16>, vector<24x8xbf16>, vector<64x8xf32> -> vector<64x8xf32>
    %42 = arith.truncf %41 : vector<64x8xf32> to vector<64x8xbf16>
    %c0_9 = arith.constant 0 : index
    %c0_10 = arith.constant 0 : index
    %43 = vector.load %arg3[%c0_9, %c0_10] : memref<64x8xbf16, #tpu.memory_space<vmem>>, vector<64x8xbf16>
    tpu.vector_store %arg3[%c0_9, %c0_10], %42 {strides = array<i32>} : memref<64x8xbf16, #tpu.memory_space<vmem>>, vector<64x8xbf16>,
    %44 = arith.extf %42 : vector<64x8xbf16> to vector<64x8xf32>
    %cst_11 = arith.constant dense<0.000000e+00> : vector<8xf32>
    %45 = vector.multi_reduction <add>, %44, %cst_11 [0] : vector<64x8xf32> to vector<8xf32>
    %46 = vector.shape_cast %45 : vector<8xf32> to vector<1x8xf32>
    %47 = arith.mulf %44, %44 : vector<64x8xf32>
    %cst_12 = arith.constant dense<0.000000e+00> : vector<8xf32>
    %48 = vector.multi_reduction <add>, %47, %cst_12 [0] : vector<64x8xf32> to vector<8xf32>
    %49 = vector.shape_cast %48 : vector<8xf32> to vector<1x8xf32>
    %50 = tpu.concatenate %46, %49 in 0 : vector<1x8xf32>, vector<1x8xf32> -> vector<2x8xf32>
    %51 = vector.shape_cast %50 : vector<2x8xf32> to vector<1x2x8xf32>
    %c0_13 = arith.constant 0 : index
    %c0_14 = arith.constant 0 : index
    %c0_15 = arith.constant 0 : index
    %52 = vector.load %arg4[%c0_13, %c0_14, %c0_15] : memref<1x2x8xf32, #tpu.memory_space<vmem>>, vector<1x2x8xf32>
    tpu.vector_store %arg4[%c0_13, %c0_14, %c0_15], %51 {strides = array<i32>} : memref<1x2x8xf32, #tpu.memory_space<vmem>>, vector<1x2x8xf32>,
    return
  }
  func.func @transform_0(%arg0: i32) -> (i32, i32) {
    %c0_i32 = arith.constant 0 : i32
    %c0_i32_0 = arith.constant 0 : i32
    return %arg0, %c0_i32 : i32, i32
  }
  func.func @transform_1(%arg0: i32) -> (i32, i32) {
    %c0_i32 = arith.constant 0 : i32
    %c0_i32_0 = arith.constant 0 : i32
    %c0_i32_1 = arith.constant 0 : i32
    return %c0_i32, %c0_i32_0 : i32, i32
  }
  func.func @transform_2(%arg0: i32) -> (i32, i32) {
    %c0_i32 = arith.constant 0 : i32
    %c0_i32_0 = arith.constant 0 : i32
    return %arg0, %c0_i32 : i32, i32
  }
  func.func @transform_3(%arg0: i32) -> (i32, i32, i32) {
    %c0_i32 = arith.constant 0 : i32
    %c0_i32_0 = arith.constant 0 : i32
    %c0_i32_1 = arith.constant 0 : i32
    return %arg0, %c0_i32, %c0_i32_0 : i32, i32, i32
  }
}

module attributes {stable_mosaic.version = 11 : i64} {
  func.func @_affine_relu_kernel(%arg0: i32, %arg1: memref<64x8xbf16, #tpu.memory_space<vmem>>, %arg2: memref<1x8xf32, #tpu.memory_space<vmem>>, %arg3: memref<1x8xf32, #tpu.memory_space<vmem>>, %arg4: memref<64x8xbf16, #tpu.memory_space<vmem>>) attributes {dimension_semantics = [#tpu.dimension_semantics<parallel>], iteration_bounds = array<i64: 2>, scalar_prefetch = 0 : i64, scratch_operands = 0 : i64, tpu.core_type = #tpu.core_type<tc>, window_params = [{transform_indices = @transform_0, window_bounds = array<i64: 64, 8>}, {pipeline_mode = #tpu.pipeline_mode<synchronous>, transform_indices = @transform_1, window_bounds = array<i64: 1, 8>}, {pipeline_mode = #tpu.pipeline_mode<synchronous>, transform_indices = @transform_2, window_bounds = array<i64: 1, 8>}, {transform_indices = @transform_3, window_bounds = array<i64: 64, 8>}]} {
    %c0 = arith.constant 0 : index
    %c0_0 = arith.constant 0 : index
    %0 = vector.load %arg1[%c0, %c0_0] : memref<64x8xbf16, #tpu.memory_space<vmem>>, vector<64x8xbf16>
    %1 = arith.extf %0 : vector<64x8xbf16> to vector<64x8xf32>
    %c0_1 = arith.constant 0 : index
    %c0_2 = arith.constant 0 : index
    %2 = vector.load %arg2[%c0_1, %c0_2] : memref<1x8xf32, #tpu.memory_space<vmem>>, vector<1x8xf32>
    %3 = vector.broadcast %2 : vector<1x8xf32> to vector<64x8xf32>
    %4 = arith.mulf %1, %3 : vector<64x8xf32>
    %c0_3 = arith.constant 0 : index
    %c0_4 = arith.constant 0 : index
    %5 = vector.load %arg3[%c0_3, %c0_4] : memref<1x8xf32, #tpu.memory_space<vmem>>, vector<1x8xf32>
    %6 = vector.broadcast %5 : vector<1x8xf32> to vector<64x8xf32>
    %7 = arith.addf %4, %6 : vector<64x8xf32>
    %cst = arith.constant 0.000000e+00 : f32
    %8 = vector.broadcast %cst : f32 to vector<64x8xf32>
    %9 = arith.maximumf %7, %8 : vector<64x8xf32>
    %10 = arith.truncf %9 : vector<64x8xf32> to vector<64x8xbf16>
    %c0_5 = arith.constant 0 : index
    %c0_6 = arith.constant 0 : index
    %11 = vector.load %arg4[%c0_5, %c0_6] : memref<64x8xbf16, #tpu.memory_space<vmem>>, vector<64x8xbf16>
    tpu.vector_store %arg4[%c0_5, %c0_6], %10 {strides = array<i32>} : memref<64x8xbf16, #tpu.memory_space<vmem>>, vector<64x8xbf16>,
    return
  }
  func.func @transform_0(%arg0: i32) -> (i32, i32) {
    %c0_i32 = arith.constant 0 : i32
    %c0_i32_0 = arith.constant 0 : i32
    return %arg0, %c0_i32 : i32, i32
  }
  func.func @transform_1(%arg0: i32) -> (i32, i32) {
    %c0_i32 = arith.constant 0 : i32
    %c0_i32_0 = arith.constant 0 : i32
    %c0_i32_1 = arith.constant 0 : i32
    return %c0_i32, %c0_i32_0 : i32, i32
  }
  func.func @transform_2(%arg0: i32) -> (i32, i32) {
    %c0_i32 = arith.constant 0 : i32
    %c0_i32_0 = arith.constant 0 : i32
    %c0_i32_1 = arith.constant 0 : i32
    return %c0_i32, %c0_i32_0 : i32, i32
  }
  func.func @transform_3(%arg0: i32) -> (i32, i32) {
    %c0_i32 = arith.constant 0 : i32
    %c0_i32_0 = arith.constant 0 : i32
    return %arg0, %c0_i32 : i32, i32
  }
}

module attributes {stable_mosaic.version = 11 : i64} {
  func.func @_conv3_stats_kernel(%arg0: i32, %arg1: memref<64x8xbf16, #tpu.memory_space<vmem>>, %arg2: memref<1x8xf32, #tpu.memory_space<vmem>>, %arg3: memref<1x8xf32, #tpu.memory_space<vmem>>, %arg4: memref<24x8xbf16, #tpu.memory_space<vmem>>, %arg5: memref<64x8xbf16, #tpu.memory_space<vmem>>, %arg6: memref<1x2x8xf32, #tpu.memory_space<vmem>>) attributes {dimension_semantics = [#tpu.dimension_semantics<parallel>], iteration_bounds = array<i64: 2>, scalar_prefetch = 0 : i64, scratch_operands = 0 : i64, tpu.core_type = #tpu.core_type<tc>, window_params = [{transform_indices = @transform_0, window_bounds = array<i64: 64, 8>}, {pipeline_mode = #tpu.pipeline_mode<synchronous>, transform_indices = @transform_1, window_bounds = array<i64: 1, 8>}, {pipeline_mode = #tpu.pipeline_mode<synchronous>, transform_indices = @transform_2, window_bounds = array<i64: 1, 8>}, {pipeline_mode = #tpu.pipeline_mode<synchronous>, transform_indices = @transform_3, window_bounds = array<i64: 24, 8>}, {transform_indices = @transform_4, window_bounds = array<i64: 64, 8>}, {transform_indices = @transform_5, window_bounds = array<i64: 1, 2, 8>}]} {
    %c0 = arith.constant 0 : index
    %c0_0 = arith.constant 0 : index
    %0 = vector.load %arg1[%c0, %c0_0] : memref<64x8xbf16, #tpu.memory_space<vmem>>, vector<64x8xbf16>
    %1 = arith.extf %0 : vector<64x8xbf16> to vector<64x8xf32>
    %c0_1 = arith.constant 0 : index
    %c0_2 = arith.constant 0 : index
    %2 = vector.load %arg2[%c0_1, %c0_2] : memref<1x8xf32, #tpu.memory_space<vmem>>, vector<1x8xf32>
    %3 = vector.broadcast %2 : vector<1x8xf32> to vector<64x8xf32>
    %4 = arith.mulf %1, %3 : vector<64x8xf32>
    %c0_3 = arith.constant 0 : index
    %c0_4 = arith.constant 0 : index
    %5 = vector.load %arg3[%c0_3, %c0_4] : memref<1x8xf32, #tpu.memory_space<vmem>>, vector<1x8xf32>
    %6 = vector.broadcast %5 : vector<1x8xf32> to vector<64x8xf32>
    %7 = arith.addf %4, %6 : vector<64x8xf32>
    %cst = arith.constant 0.000000e+00 : f32
    %8 = vector.broadcast %cst : f32 to vector<64x8xf32>
    %9 = arith.maximumf %7, %8 : vector<64x8xf32>
    %10 = tpu.iota {dimensions = array<i32: 0>} : vector<64x1xi32>
    %c32_i32 = arith.constant 32 : i32
    %c0_i32 = arith.constant 0 : i32
    %11 = arith.cmpi eq, %c32_i32, %c0_i32 : i32
    %c1_i32 = arith.constant 1 : i32
    %12 = arith.select %11, %c1_i32, %c32_i32 : i32
    %13 = vector.broadcast %12 : i32 to vector<64x1xi32>
    %14 = arith.remsi %10, %13 : vector<64x1xi32>
    %c0_i32_5 = arith.constant 0 : i32
    %15 = vector.broadcast %c0_i32_5 : i32 to vector<64x1xi32>
    %16 = arith.cmpi ne, %14, %15 : vector<64x1xi32>
    %c0_i32_6 = arith.constant 0 : i32
    %17 = vector.broadcast %c0_i32_6 : i32 to vector<64x1xi32>
    %18 = arith.cmpi slt, %14, %17 : vector<64x1xi32>
    %c0_i32_7 = arith.constant 0 : i32
    %19 = arith.cmpi slt, %12, %c0_i32_7 : i32
    %20 = vector.broadcast %19 : i1 to vector<64x1xi1>
    %21 = vector.broadcast %20 : vector<64x1xi1> to vector<64x1xi1>
    %22 = arith.xori %18, %21 : vector<64x1xi1>
    %23 = arith.andi %22, %16 : vector<64x1xi1>
    %24 = vector.broadcast %12 : i32 to vector<64x1xi32>
    %25 = arith.addi %14, %24 : vector<64x1xi32>
    %26 = arith.select %23, %25, %14 : vector<64x1xi1>, vector<64x1xi32>
    %c0_i32_8 = arith.constant 0 : i32
    %27 = vector.broadcast %c0_i32_8 : i32 to vector<64x1xi32>
    %28 = arith.cmpi ne, %26, %27 : vector<64x1xi32>
    %29 = arith.extui %28 : vector<64x1xi1> to vector<64x1xi32>
    %30 = arith.sitofp %29 : vector<64x1xi32> to vector<64x1xf32>
    %c31_i32 = arith.constant 31 : i32
    %31 = vector.broadcast %c31_i32 : i32 to vector<64x1xi32>
    %32 = arith.cmpi ne, %26, %31 : vector<64x1xi32>
    %33 = arith.extui %32 : vector<64x1xi1> to vector<64x1xi32>
    %34 = arith.sitofp %33 : vector<64x1xi32> to vector<64x1xf32>
    %cst_9 = arith.constant 0.000000e+00 : f32
    %35 = vector.broadcast %cst_9 : f32 to vector<1x8xf32>
    %36 = vector.extract_strided_slice %9 {offsets = [0, 0], sizes = [63, 8], strides = [1, 1]} : vector<64x8xf32> to vector<63x8xf32>
    %37 = tpu.concatenate %35, %36 in 0 : vector<1x8xf32>, vector<63x8xf32> -> vector<64x8xf32>
    %38 = vector.broadcast %30 : vector<64x1xf32> to vector<64x8xf32>
    %39 = arith.mulf %37, %38 : vector<64x8xf32>
    %cst_10 = arith.constant 0.000000e+00 : f32
    %40 = vector.broadcast %cst_10 : f32 to vector<1x8xf32>
    %41 = vector.extract_strided_slice %9 {offsets = [1, 0], sizes = [63, 8], strides = [1, 1]} : vector<64x8xf32> to vector<63x8xf32>
    %42 = tpu.concatenate %41, %40 in 0 : vector<63x8xf32>, vector<1x8xf32> -> vector<64x8xf32>
    %43 = vector.broadcast %34 : vector<64x1xf32> to vector<64x8xf32>
    %44 = arith.mulf %42, %43 : vector<64x8xf32>
    %c0_11 = arith.constant 0 : index
    %c0_12 = arith.constant 0 : index
    %45 = vector.load %arg4[%c0_11, %c0_12] : memref<24x8xbf16, #tpu.memory_space<vmem>>, vector<24x8xbf16>
    %46 = arith.truncf %39 : vector<64x8xf32> to vector<64x8xbf16>
    %47 = arith.truncf %9 : vector<64x8xf32> to vector<64x8xbf16>
    %48 = arith.truncf %44 : vector<64x8xf32> to vector<64x8xbf16>
    %49 = tpu.concatenate %46, %47, %48 in 1 : vector<64x8xbf16>, vector<64x8xbf16>, vector<64x8xbf16> -> vector<64x24xbf16>
    %cst_13 = arith.constant dense<0.000000e+00> : vector<64x8xf32>
    %50 = tpu.matmul %49, %45, %cst_13 {dimension_numbers = #tpu.dot_dimension_numbers<[1], [0], [0], [1], [0, 0, 1, 1], [], []>} : vector<64x24xbf16>, vector<24x8xbf16>, vector<64x8xf32> -> vector<64x8xf32>
    %51 = arith.truncf %50 : vector<64x8xf32> to vector<64x8xbf16>
    %c0_14 = arith.constant 0 : index
    %c0_15 = arith.constant 0 : index
    %52 = vector.load %arg5[%c0_14, %c0_15] : memref<64x8xbf16, #tpu.memory_space<vmem>>, vector<64x8xbf16>
    tpu.vector_store %arg5[%c0_14, %c0_15], %51 {strides = array<i32>} : memref<64x8xbf16, #tpu.memory_space<vmem>>, vector<64x8xbf16>,
    %53 = arith.extf %51 : vector<64x8xbf16> to vector<64x8xf32>
    %cst_16 = arith.constant dense<0.000000e+00> : vector<8xf32>
    %54 = vector.multi_reduction <add>, %53, %cst_16 [0] : vector<64x8xf32> to vector<8xf32>
    %55 = vector.shape_cast %54 : vector<8xf32> to vector<1x8xf32>
    %56 = arith.mulf %53, %53 : vector<64x8xf32>
    %cst_17 = arith.constant dense<0.000000e+00> : vector<8xf32>
    %57 = vector.multi_reduction <add>, %56, %cst_17 [0] : vector<64x8xf32> to vector<8xf32>
    %58 = vector.shape_cast %57 : vector<8xf32> to vector<1x8xf32>
    %59 = tpu.concatenate %55, %58 in 0 : vector<1x8xf32>, vector<1x8xf32> -> vector<2x8xf32>
    %60 = vector.shape_cast %59 : vector<2x8xf32> to vector<1x2x8xf32>
    %c0_18 = arith.constant 0 : index
    %c0_19 = arith.constant 0 : index
    %c0_20 = arith.constant 0 : index
    %61 = vector.load %arg6[%c0_18, %c0_19, %c0_20] : memref<1x2x8xf32, #tpu.memory_space<vmem>>, vector<1x2x8xf32>
    tpu.vector_store %arg6[%c0_18, %c0_19, %c0_20], %60 {strides = array<i32>} : memref<1x2x8xf32, #tpu.memory_space<vmem>>, vector<1x2x8xf32>,
    return
  }
  func.func @transform_0(%arg0: i32) -> (i32, i32) {
    %c0_i32 = arith.constant 0 : i32
    %c0_i32_0 = arith.constant 0 : i32
    return %arg0, %c0_i32 : i32, i32
  }
  func.func @transform_1(%arg0: i32) -> (i32, i32) {
    %c0_i32 = arith.constant 0 : i32
    %c0_i32_0 = arith.constant 0 : i32
    %c0_i32_1 = arith.constant 0 : i32
    return %c0_i32, %c0_i32_0 : i32, i32
  }
  func.func @transform_2(%arg0: i32) -> (i32, i32) {
    %c0_i32 = arith.constant 0 : i32
    %c0_i32_0 = arith.constant 0 : i32
    %c0_i32_1 = arith.constant 0 : i32
    return %c0_i32, %c0_i32_0 : i32, i32
  }
  func.func @transform_3(%arg0: i32) -> (i32, i32) {
    %c0_i32 = arith.constant 0 : i32
    %c0_i32_0 = arith.constant 0 : i32
    %c0_i32_1 = arith.constant 0 : i32
    return %c0_i32, %c0_i32_0 : i32, i32
  }
  func.func @transform_4(%arg0: i32) -> (i32, i32) {
    %c0_i32 = arith.constant 0 : i32
    %c0_i32_0 = arith.constant 0 : i32
    return %arg0, %c0_i32 : i32, i32
  }
  func.func @transform_5(%arg0: i32) -> (i32, i32, i32) {
    %c0_i32 = arith.constant 0 : i32
    %c0_i32_0 = arith.constant 0 : i32
    %c0_i32_1 = arith.constant 0 : i32
    return %arg0, %c0_i32, %c0_i32_0 : i32, i32, i32
  }
}

module attributes {stable_mosaic.version = 11 : i64} {
  func.func @_conv3_stats_kernel(%arg0: i32, %arg1: memref<32x16xbf16, #tpu.memory_space<vmem>>, %arg2: memref<24x8xbf16, #tpu.memory_space<vmem>>, %arg3: memref<32x8xbf16, #tpu.memory_space<vmem>>, %arg4: memref<1x2x8xf32, #tpu.memory_space<vmem>>) attributes {dimension_semantics = [#tpu.dimension_semantics<parallel>], iteration_bounds = array<i64: 2>, scalar_prefetch = 0 : i64, scratch_operands = 0 : i64, tpu.core_type = #tpu.core_type<tc>, window_params = [{transform_indices = @transform_0, window_bounds = array<i64: 32, 16>}, {pipeline_mode = #tpu.pipeline_mode<synchronous>, transform_indices = @transform_1, window_bounds = array<i64: 24, 8>}, {transform_indices = @transform_2, window_bounds = array<i64: 32, 8>}, {transform_indices = @transform_3, window_bounds = array<i64: 1, 2, 8>}]} {
    %c0 = arith.constant 0 : index
    %c0_0 = arith.constant 0 : index
    %0 = vector.load %arg1[%c0, %c0_0] : memref<32x16xbf16, #tpu.memory_space<vmem>>, vector<32x16xbf16>
    %1 = arith.extf %0 : vector<32x16xbf16> to vector<32x16xf32>
    %2 = vector.extract_strided_slice %1 {offsets = [0, 0], sizes = [32, 8], strides = [1, 1]} : vector<32x16xf32> to vector<32x8xf32>
    %3 = vector.extract_strided_slice %1 {offsets = [0, 8], sizes = [32, 8], strides = [1, 1]} : vector<32x16xf32> to vector<32x8xf32>
    %4 = arith.maximumf %2, %3 : vector<32x8xf32>
    %5 = tpu.iota {dimensions = array<i32: 0>} : vector<32x1xi32>
    %c16_i32 = arith.constant 16 : i32
    %c0_i32 = arith.constant 0 : i32
    %6 = arith.cmpi eq, %c16_i32, %c0_i32 : i32
    %c1_i32 = arith.constant 1 : i32
    %7 = arith.select %6, %c1_i32, %c16_i32 : i32
    %8 = vector.broadcast %7 : i32 to vector<32x1xi32>
    %9 = arith.remsi %5, %8 : vector<32x1xi32>
    %c0_i32_1 = arith.constant 0 : i32
    %10 = vector.broadcast %c0_i32_1 : i32 to vector<32x1xi32>
    %11 = arith.cmpi ne, %9, %10 : vector<32x1xi32>
    %c0_i32_2 = arith.constant 0 : i32
    %12 = vector.broadcast %c0_i32_2 : i32 to vector<32x1xi32>
    %13 = arith.cmpi slt, %9, %12 : vector<32x1xi32>
    %c0_i32_3 = arith.constant 0 : i32
    %14 = arith.cmpi slt, %7, %c0_i32_3 : i32
    %15 = vector.broadcast %14 : i1 to vector<32x1xi1>
    %16 = vector.broadcast %15 : vector<32x1xi1> to vector<32x1xi1>
    %17 = arith.xori %13, %16 : vector<32x1xi1>
    %18 = arith.andi %17, %11 : vector<32x1xi1>
    %19 = vector.broadcast %7 : i32 to vector<32x1xi32>
    %20 = arith.addi %9, %19 : vector<32x1xi32>
    %21 = arith.select %18, %20, %9 : vector<32x1xi1>, vector<32x1xi32>
    %c0_i32_4 = arith.constant 0 : i32
    %22 = vector.broadcast %c0_i32_4 : i32 to vector<32x1xi32>
    %23 = arith.cmpi ne, %21, %22 : vector<32x1xi32>
    %24 = arith.extui %23 : vector<32x1xi1> to vector<32x1xi32>
    %25 = arith.sitofp %24 : vector<32x1xi32> to vector<32x1xf32>
    %c15_i32 = arith.constant 15 : i32
    %26 = vector.broadcast %c15_i32 : i32 to vector<32x1xi32>
    %27 = arith.cmpi ne, %21, %26 : vector<32x1xi32>
    %28 = arith.extui %27 : vector<32x1xi1> to vector<32x1xi32>
    %29 = arith.sitofp %28 : vector<32x1xi32> to vector<32x1xf32>
    %cst = arith.constant 0.000000e+00 : f32
    %30 = vector.broadcast %cst : f32 to vector<1x8xf32>
    %31 = vector.extract_strided_slice %4 {offsets = [0, 0], sizes = [31, 8], strides = [1, 1]} : vector<32x8xf32> to vector<31x8xf32>
    %32 = tpu.concatenate %30, %31 in 0 : vector<1x8xf32>, vector<31x8xf32> -> vector<32x8xf32>
    %33 = vector.broadcast %25 : vector<32x1xf32> to vector<32x8xf32>
    %34 = arith.mulf %32, %33 : vector<32x8xf32>
    %cst_5 = arith.constant 0.000000e+00 : f32
    %35 = vector.broadcast %cst_5 : f32 to vector<1x8xf32>
    %36 = vector.extract_strided_slice %4 {offsets = [1, 0], sizes = [31, 8], strides = [1, 1]} : vector<32x8xf32> to vector<31x8xf32>
    %37 = tpu.concatenate %36, %35 in 0 : vector<31x8xf32>, vector<1x8xf32> -> vector<32x8xf32>
    %38 = vector.broadcast %29 : vector<32x1xf32> to vector<32x8xf32>
    %39 = arith.mulf %37, %38 : vector<32x8xf32>
    %c0_6 = arith.constant 0 : index
    %c0_7 = arith.constant 0 : index
    %40 = vector.load %arg2[%c0_6, %c0_7] : memref<24x8xbf16, #tpu.memory_space<vmem>>, vector<24x8xbf16>
    %41 = arith.truncf %34 : vector<32x8xf32> to vector<32x8xbf16>
    %42 = arith.truncf %4 : vector<32x8xf32> to vector<32x8xbf16>
    %43 = arith.truncf %39 : vector<32x8xf32> to vector<32x8xbf16>
    %44 = tpu.concatenate %41, %42, %43 in 1 : vector<32x8xbf16>, vector<32x8xbf16>, vector<32x8xbf16> -> vector<32x24xbf16>
    %cst_8 = arith.constant dense<0.000000e+00> : vector<32x8xf32>
    %45 = tpu.matmul %44, %40, %cst_8 {dimension_numbers = #tpu.dot_dimension_numbers<[1], [0], [0], [1], [0, 0, 1, 1], [], []>} : vector<32x24xbf16>, vector<24x8xbf16>, vector<32x8xf32> -> vector<32x8xf32>
    %46 = arith.truncf %45 : vector<32x8xf32> to vector<32x8xbf16>
    %c0_9 = arith.constant 0 : index
    %c0_10 = arith.constant 0 : index
    %47 = vector.load %arg3[%c0_9, %c0_10] : memref<32x8xbf16, #tpu.memory_space<vmem>>, vector<32x8xbf16>
    tpu.vector_store %arg3[%c0_9, %c0_10], %46 {strides = array<i32>} : memref<32x8xbf16, #tpu.memory_space<vmem>>, vector<32x8xbf16>,
    %48 = arith.extf %46 : vector<32x8xbf16> to vector<32x8xf32>
    %cst_11 = arith.constant dense<0.000000e+00> : vector<8xf32>
    %49 = vector.multi_reduction <add>, %48, %cst_11 [0] : vector<32x8xf32> to vector<8xf32>
    %50 = vector.shape_cast %49 : vector<8xf32> to vector<1x8xf32>
    %51 = arith.mulf %48, %48 : vector<32x8xf32>
    %cst_12 = arith.constant dense<0.000000e+00> : vector<8xf32>
    %52 = vector.multi_reduction <add>, %51, %cst_12 [0] : vector<32x8xf32> to vector<8xf32>
    %53 = vector.shape_cast %52 : vector<8xf32> to vector<1x8xf32>
    %54 = tpu.concatenate %50, %53 in 0 : vector<1x8xf32>, vector<1x8xf32> -> vector<2x8xf32>
    %55 = vector.shape_cast %54 : vector<2x8xf32> to vector<1x2x8xf32>
    %c0_13 = arith.constant 0 : index
    %c0_14 = arith.constant 0 : index
    %c0_15 = arith.constant 0 : index
    %56 = vector.load %arg4[%c0_13, %c0_14, %c0_15] : memref<1x2x8xf32, #tpu.memory_space<vmem>>, vector<1x2x8xf32>
    tpu.vector_store %arg4[%c0_13, %c0_14, %c0_15], %55 {strides = array<i32>} : memref<1x2x8xf32, #tpu.memory_space<vmem>>, vector<1x2x8xf32>,
    return
  }
  func.func @transform_0(%arg0: i32) -> (i32, i32) {
    %c0_i32 = arith.constant 0 : i32
    %c0_i32_0 = arith.constant 0 : i32
    return %arg0, %c0_i32 : i32, i32
  }
  func.func @transform_1(%arg0: i32) -> (i32, i32) {
    %c0_i32 = arith.constant 0 : i32
    %c0_i32_0 = arith.constant 0 : i32
    %c0_i32_1 = arith.constant 0 : i32
    return %c0_i32, %c0_i32_0 : i32, i32
  }
  func.func @transform_2(%arg0: i32) -> (i32, i32) {
    %c0_i32 = arith.constant 0 : i32
    %c0_i32_0 = arith.constant 0 : i32
    return %arg0, %c0_i32 : i32, i32
  }
  func.func @transform_3(%arg0: i32) -> (i32, i32, i32) {
    %c0_i32 = arith.constant 0 : i32
    %c0_i32_0 = arith.constant 0 : i32
    %c0_i32_1 = arith.constant 0 : i32
    return %arg0, %c0_i32, %c0_i32_0 : i32, i32, i32
  }
}

module attributes {stable_mosaic.version = 11 : i64} {
  func.func @_affine_relu_kernel(%arg0: i32, %arg1: memref<32x8xbf16, #tpu.memory_space<vmem>>, %arg2: memref<1x8xf32, #tpu.memory_space<vmem>>, %arg3: memref<1x8xf32, #tpu.memory_space<vmem>>, %arg4: memref<32x8xbf16, #tpu.memory_space<vmem>>) attributes {dimension_semantics = [#tpu.dimension_semantics<parallel>], iteration_bounds = array<i64: 2>, scalar_prefetch = 0 : i64, scratch_operands = 0 : i64, tpu.core_type = #tpu.core_type<tc>, window_params = [{transform_indices = @transform_0, window_bounds = array<i64: 32, 8>}, {pipeline_mode = #tpu.pipeline_mode<synchronous>, transform_indices = @transform_1, window_bounds = array<i64: 1, 8>}, {pipeline_mode = #tpu.pipeline_mode<synchronous>, transform_indices = @transform_2, window_bounds = array<i64: 1, 8>}, {transform_indices = @transform_3, window_bounds = array<i64: 32, 8>}]} {
    %c0 = arith.constant 0 : index
    %c0_0 = arith.constant 0 : index
    %0 = vector.load %arg1[%c0, %c0_0] : memref<32x8xbf16, #tpu.memory_space<vmem>>, vector<32x8xbf16>
    %1 = arith.extf %0 : vector<32x8xbf16> to vector<32x8xf32>
    %c0_1 = arith.constant 0 : index
    %c0_2 = arith.constant 0 : index
    %2 = vector.load %arg2[%c0_1, %c0_2] : memref<1x8xf32, #tpu.memory_space<vmem>>, vector<1x8xf32>
    %3 = vector.broadcast %2 : vector<1x8xf32> to vector<32x8xf32>
    %4 = arith.mulf %1, %3 : vector<32x8xf32>
    %c0_3 = arith.constant 0 : index
    %c0_4 = arith.constant 0 : index
    %5 = vector.load %arg3[%c0_3, %c0_4] : memref<1x8xf32, #tpu.memory_space<vmem>>, vector<1x8xf32>
    %6 = vector.broadcast %5 : vector<1x8xf32> to vector<32x8xf32>
    %7 = arith.addf %4, %6 : vector<32x8xf32>
    %cst = arith.constant 0.000000e+00 : f32
    %8 = vector.broadcast %cst : f32 to vector<32x8xf32>
    %9 = arith.maximumf %7, %8 : vector<32x8xf32>
    %10 = arith.truncf %9 : vector<32x8xf32> to vector<32x8xbf16>
    %c0_5 = arith.constant 0 : index
    %c0_6 = arith.constant 0 : index
    %11 = vector.load %arg4[%c0_5, %c0_6] : memref<32x8xbf16, #tpu.memory_space<vmem>>, vector<32x8xbf16>
    tpu.vector_store %arg4[%c0_5, %c0_6], %10 {strides = array<i32>} : memref<32x8xbf16, #tpu.memory_space<vmem>>, vector<32x8xbf16>,
    return
  }
  func.func @transform_0(%arg0: i32) -> (i32, i32) {
    %c0_i32 = arith.constant 0 : i32
    %c0_i32_0 = arith.constant 0 : i32
    return %arg0, %c0_i32 : i32, i32
  }
  func.func @transform_1(%arg0: i32) -> (i32, i32) {
    %c0_i32 = arith.constant 0 : i32
    %c0_i32_0 = arith.constant 0 : i32
    %c0_i32_1 = arith.constant 0 : i32
    return %c0_i32, %c0_i32_0 : i32, i32
  }
  func.func @transform_2(%arg0: i32) -> (i32, i32) {
    %c0_i32 = arith.constant 0 : i32
    %c0_i32_0 = arith.constant 0 : i32
    %c0_i32_1 = arith.constant 0 : i32
    return %c0_i32, %c0_i32_0 : i32, i32
  }
  func.func @transform_3(%arg0: i32) -> (i32, i32) {
    %c0_i32 = arith.constant 0 : i32
    %c0_i32_0 = arith.constant 0 : i32
    return %arg0, %c0_i32 : i32, i32
  }
}

module attributes {stable_mosaic.version = 11 : i64} {
  func.func @_conv3_stats_kernel(%arg0: i32, %arg1: memref<32x8xbf16, #tpu.memory_space<vmem>>, %arg2: memref<1x8xf32, #tpu.memory_space<vmem>>, %arg3: memref<1x8xf32, #tpu.memory_space<vmem>>, %arg4: memref<24x8xbf16, #tpu.memory_space<vmem>>, %arg5: memref<32x8xbf16, #tpu.memory_space<vmem>>, %arg6: memref<1x2x8xf32, #tpu.memory_space<vmem>>) attributes {dimension_semantics = [#tpu.dimension_semantics<parallel>], iteration_bounds = array<i64: 2>, scalar_prefetch = 0 : i64, scratch_operands = 0 : i64, tpu.core_type = #tpu.core_type<tc>, window_params = [{transform_indices = @transform_0, window_bounds = array<i64: 32, 8>}, {pipeline_mode = #tpu.pipeline_mode<synchronous>, transform_indices = @transform_1, window_bounds = array<i64: 1, 8>}, {pipeline_mode = #tpu.pipeline_mode<synchronous>, transform_indices = @transform_2, window_bounds = array<i64: 1, 8>}, {pipeline_mode = #tpu.pipeline_mode<synchronous>, transform_indices = @transform_3, window_bounds = array<i64: 24, 8>}, {transform_indices = @transform_4, window_bounds = array<i64: 32, 8>}, {transform_indices = @transform_5, window_bounds = array<i64: 1, 2, 8>}]} {
    %c0 = arith.constant 0 : index
    %c0_0 = arith.constant 0 : index
    %0 = vector.load %arg1[%c0, %c0_0] : memref<32x8xbf16, #tpu.memory_space<vmem>>, vector<32x8xbf16>
    %1 = arith.extf %0 : vector<32x8xbf16> to vector<32x8xf32>
    %c0_1 = arith.constant 0 : index
    %c0_2 = arith.constant 0 : index
    %2 = vector.load %arg2[%c0_1, %c0_2] : memref<1x8xf32, #tpu.memory_space<vmem>>, vector<1x8xf32>
    %3 = vector.broadcast %2 : vector<1x8xf32> to vector<32x8xf32>
    %4 = arith.mulf %1, %3 : vector<32x8xf32>
    %c0_3 = arith.constant 0 : index
    %c0_4 = arith.constant 0 : index
    %5 = vector.load %arg3[%c0_3, %c0_4] : memref<1x8xf32, #tpu.memory_space<vmem>>, vector<1x8xf32>
    %6 = vector.broadcast %5 : vector<1x8xf32> to vector<32x8xf32>
    %7 = arith.addf %4, %6 : vector<32x8xf32>
    %cst = arith.constant 0.000000e+00 : f32
    %8 = vector.broadcast %cst : f32 to vector<32x8xf32>
    %9 = arith.maximumf %7, %8 : vector<32x8xf32>
    %10 = tpu.iota {dimensions = array<i32: 0>} : vector<32x1xi32>
    %c16_i32 = arith.constant 16 : i32
    %c0_i32 = arith.constant 0 : i32
    %11 = arith.cmpi eq, %c16_i32, %c0_i32 : i32
    %c1_i32 = arith.constant 1 : i32
    %12 = arith.select %11, %c1_i32, %c16_i32 : i32
    %13 = vector.broadcast %12 : i32 to vector<32x1xi32>
    %14 = arith.remsi %10, %13 : vector<32x1xi32>
    %c0_i32_5 = arith.constant 0 : i32
    %15 = vector.broadcast %c0_i32_5 : i32 to vector<32x1xi32>
    %16 = arith.cmpi ne, %14, %15 : vector<32x1xi32>
    %c0_i32_6 = arith.constant 0 : i32
    %17 = vector.broadcast %c0_i32_6 : i32 to vector<32x1xi32>
    %18 = arith.cmpi slt, %14, %17 : vector<32x1xi32>
    %c0_i32_7 = arith.constant 0 : i32
    %19 = arith.cmpi slt, %12, %c0_i32_7 : i32
    %20 = vector.broadcast %19 : i1 to vector<32x1xi1>
    %21 = vector.broadcast %20 : vector<32x1xi1> to vector<32x1xi1>
    %22 = arith.xori %18, %21 : vector<32x1xi1>
    %23 = arith.andi %22, %16 : vector<32x1xi1>
    %24 = vector.broadcast %12 : i32 to vector<32x1xi32>
    %25 = arith.addi %14, %24 : vector<32x1xi32>
    %26 = arith.select %23, %25, %14 : vector<32x1xi1>, vector<32x1xi32>
    %c0_i32_8 = arith.constant 0 : i32
    %27 = vector.broadcast %c0_i32_8 : i32 to vector<32x1xi32>
    %28 = arith.cmpi ne, %26, %27 : vector<32x1xi32>
    %29 = arith.extui %28 : vector<32x1xi1> to vector<32x1xi32>
    %30 = arith.sitofp %29 : vector<32x1xi32> to vector<32x1xf32>
    %c15_i32 = arith.constant 15 : i32
    %31 = vector.broadcast %c15_i32 : i32 to vector<32x1xi32>
    %32 = arith.cmpi ne, %26, %31 : vector<32x1xi32>
    %33 = arith.extui %32 : vector<32x1xi1> to vector<32x1xi32>
    %34 = arith.sitofp %33 : vector<32x1xi32> to vector<32x1xf32>
    %cst_9 = arith.constant 0.000000e+00 : f32
    %35 = vector.broadcast %cst_9 : f32 to vector<1x8xf32>
    %36 = vector.extract_strided_slice %9 {offsets = [0, 0], sizes = [31, 8], strides = [1, 1]} : vector<32x8xf32> to vector<31x8xf32>
    %37 = tpu.concatenate %35, %36 in 0 : vector<1x8xf32>, vector<31x8xf32> -> vector<32x8xf32>
    %38 = vector.broadcast %30 : vector<32x1xf32> to vector<32x8xf32>
    %39 = arith.mulf %37, %38 : vector<32x8xf32>
    %cst_10 = arith.constant 0.000000e+00 : f32
    %40 = vector.broadcast %cst_10 : f32 to vector<1x8xf32>
    %41 = vector.extract_strided_slice %9 {offsets = [1, 0], sizes = [31, 8], strides = [1, 1]} : vector<32x8xf32> to vector<31x8xf32>
    %42 = tpu.concatenate %41, %40 in 0 : vector<31x8xf32>, vector<1x8xf32> -> vector<32x8xf32>
    %43 = vector.broadcast %34 : vector<32x1xf32> to vector<32x8xf32>
    %44 = arith.mulf %42, %43 : vector<32x8xf32>
    %c0_11 = arith.constant 0 : index
    %c0_12 = arith.constant 0 : index
    %45 = vector.load %arg4[%c0_11, %c0_12] : memref<24x8xbf16, #tpu.memory_space<vmem>>, vector<24x8xbf16>
    %46 = arith.truncf %39 : vector<32x8xf32> to vector<32x8xbf16>
    %47 = arith.truncf %9 : vector<32x8xf32> to vector<32x8xbf16>
    %48 = arith.truncf %44 : vector<32x8xf32> to vector<32x8xbf16>
    %49 = tpu.concatenate %46, %47, %48 in 1 : vector<32x8xbf16>, vector<32x8xbf16>, vector<32x8xbf16> -> vector<32x24xbf16>
    %cst_13 = arith.constant dense<0.000000e+00> : vector<32x8xf32>
    %50 = tpu.matmul %49, %45, %cst_13 {dimension_numbers = #tpu.dot_dimension_numbers<[1], [0], [0], [1], [0, 0, 1, 1], [], []>} : vector<32x24xbf16>, vector<24x8xbf16>, vector<32x8xf32> -> vector<32x8xf32>
    %51 = arith.truncf %50 : vector<32x8xf32> to vector<32x8xbf16>
    %c0_14 = arith.constant 0 : index
    %c0_15 = arith.constant 0 : index
    %52 = vector.load %arg5[%c0_14, %c0_15] : memref<32x8xbf16, #tpu.memory_space<vmem>>, vector<32x8xbf16>
    tpu.vector_store %arg5[%c0_14, %c0_15], %51 {strides = array<i32>} : memref<32x8xbf16, #tpu.memory_space<vmem>>, vector<32x8xbf16>,
    %53 = arith.extf %51 : vector<32x8xbf16> to vector<32x8xf32>
    %cst_16 = arith.constant dense<0.000000e+00> : vector<8xf32>
    %54 = vector.multi_reduction <add>, %53, %cst_16 [0] : vector<32x8xf32> to vector<8xf32>
    %55 = vector.shape_cast %54 : vector<8xf32> to vector<1x8xf32>
    %56 = arith.mulf %53, %53 : vector<32x8xf32>
    %cst_17 = arith.constant dense<0.000000e+00> : vector<8xf32>
    %57 = vector.multi_reduction <add>, %56, %cst_17 [0] : vector<32x8xf32> to vector<8xf32>
    %58 = vector.shape_cast %57 : vector<8xf32> to vector<1x8xf32>
    %59 = tpu.concatenate %55, %58 in 0 : vector<1x8xf32>, vector<1x8xf32> -> vector<2x8xf32>
    %60 = vector.shape_cast %59 : vector<2x8xf32> to vector<1x2x8xf32>
    %c0_18 = arith.constant 0 : index
    %c0_19 = arith.constant 0 : index
    %c0_20 = arith.constant 0 : index
    %61 = vector.load %arg6[%c0_18, %c0_19, %c0_20] : memref<1x2x8xf32, #tpu.memory_space<vmem>>, vector<1x2x8xf32>
    tpu.vector_store %arg6[%c0_18, %c0_19, %c0_20], %60 {strides = array<i32>} : memref<1x2x8xf32, #tpu.memory_space<vmem>>, vector<1x2x8xf32>,
    return
  }
  func.func @transform_0(%arg0: i32) -> (i32, i32) {
    %c0_i32 = arith.constant 0 : i32
    %c0_i32_0 = arith.constant 0 : i32
    return %arg0, %c0_i32 : i32, i32
  }
  func.func @transform_1(%arg0: i32) -> (i32, i32) {
    %c0_i32 = arith.constant 0 : i32
    %c0_i32_0 = arith.constant 0 : i32
    %c0_i32_1 = arith.constant 0 : i32
    return %c0_i32, %c0_i32_0 : i32, i32
  }
  func.func @transform_2(%arg0: i32) -> (i32, i32) {
    %c0_i32 = arith.constant 0 : i32
    %c0_i32_0 = arith.constant 0 : i32
    %c0_i32_1 = arith.constant 0 : i32
    return %c0_i32, %c0_i32_0 : i32, i32
  }
  func.func @transform_3(%arg0: i32) -> (i32, i32) {
    %c0_i32 = arith.constant 0 : i32
    %c0_i32_0 = arith.constant 0 : i32
    %c0_i32_1 = arith.constant 0 : i32
    return %c0_i32, %c0_i32_0 : i32, i32
  }
  func.func @transform_4(%arg0: i32) -> (i32, i32) {
    %c0_i32 = arith.constant 0 : i32
    %c0_i32_0 = arith.constant 0 : i32
    return %arg0, %c0_i32 : i32, i32
  }
  func.func @transform_5(%arg0: i32) -> (i32, i32, i32) {
    %c0_i32 = arith.constant 0 : i32
    %c0_i32_0 = arith.constant 0 : i32
    %c0_i32_1 = arith.constant 0 : i32
    return %arg0, %c0_i32, %c0_i32_0 : i32, i32, i32
  }
}

module attributes {stable_mosaic.version = 11 : i64} {
  func.func @_conv3_stats_kernel(%arg0: i32, %arg1: memref<16x16xbf16, #tpu.memory_space<vmem>>, %arg2: memref<24x16xbf16, #tpu.memory_space<vmem>>, %arg3: memref<16x16xbf16, #tpu.memory_space<vmem>>, %arg4: memref<1x2x16xf32, #tpu.memory_space<vmem>>) attributes {dimension_semantics = [#tpu.dimension_semantics<parallel>], iteration_bounds = array<i64: 2>, scalar_prefetch = 0 : i64, scratch_operands = 0 : i64, tpu.core_type = #tpu.core_type<tc>, window_params = [{transform_indices = @transform_0, window_bounds = array<i64: 16, 16>}, {pipeline_mode = #tpu.pipeline_mode<synchronous>, transform_indices = @transform_1, window_bounds = array<i64: 24, 16>}, {transform_indices = @transform_2, window_bounds = array<i64: 16, 16>}, {transform_indices = @transform_3, window_bounds = array<i64: 1, 2, 16>}]} {
    %c0 = arith.constant 0 : index
    %c0_0 = arith.constant 0 : index
    %0 = vector.load %arg1[%c0, %c0_0] : memref<16x16xbf16, #tpu.memory_space<vmem>>, vector<16x16xbf16>
    %1 = arith.extf %0 : vector<16x16xbf16> to vector<16x16xf32>
    %2 = vector.extract_strided_slice %1 {offsets = [0, 0], sizes = [16, 8], strides = [1, 1]} : vector<16x16xf32> to vector<16x8xf32>
    %3 = vector.extract_strided_slice %1 {offsets = [0, 8], sizes = [16, 8], strides = [1, 1]} : vector<16x16xf32> to vector<16x8xf32>
    %4 = arith.maximumf %2, %3 : vector<16x8xf32>
    %5 = tpu.iota {dimensions = array<i32: 0>} : vector<16x1xi32>
    %c8_i32 = arith.constant 8 : i32
    %c0_i32 = arith.constant 0 : i32
    %6 = arith.cmpi eq, %c8_i32, %c0_i32 : i32
    %c1_i32 = arith.constant 1 : i32
    %7 = arith.select %6, %c1_i32, %c8_i32 : i32
    %8 = vector.broadcast %7 : i32 to vector<16x1xi32>
    %9 = arith.remsi %5, %8 : vector<16x1xi32>
    %c0_i32_1 = arith.constant 0 : i32
    %10 = vector.broadcast %c0_i32_1 : i32 to vector<16x1xi32>
    %11 = arith.cmpi ne, %9, %10 : vector<16x1xi32>
    %c0_i32_2 = arith.constant 0 : i32
    %12 = vector.broadcast %c0_i32_2 : i32 to vector<16x1xi32>
    %13 = arith.cmpi slt, %9, %12 : vector<16x1xi32>
    %c0_i32_3 = arith.constant 0 : i32
    %14 = arith.cmpi slt, %7, %c0_i32_3 : i32
    %15 = vector.broadcast %14 : i1 to vector<16x1xi1>
    %16 = vector.broadcast %15 : vector<16x1xi1> to vector<16x1xi1>
    %17 = arith.xori %13, %16 : vector<16x1xi1>
    %18 = arith.andi %17, %11 : vector<16x1xi1>
    %19 = vector.broadcast %7 : i32 to vector<16x1xi32>
    %20 = arith.addi %9, %19 : vector<16x1xi32>
    %21 = arith.select %18, %20, %9 : vector<16x1xi1>, vector<16x1xi32>
    %c0_i32_4 = arith.constant 0 : i32
    %22 = vector.broadcast %c0_i32_4 : i32 to vector<16x1xi32>
    %23 = arith.cmpi ne, %21, %22 : vector<16x1xi32>
    %24 = arith.extui %23 : vector<16x1xi1> to vector<16x1xi32>
    %25 = arith.sitofp %24 : vector<16x1xi32> to vector<16x1xf32>
    %c7_i32 = arith.constant 7 : i32
    %26 = vector.broadcast %c7_i32 : i32 to vector<16x1xi32>
    %27 = arith.cmpi ne, %21, %26 : vector<16x1xi32>
    %28 = arith.extui %27 : vector<16x1xi1> to vector<16x1xi32>
    %29 = arith.sitofp %28 : vector<16x1xi32> to vector<16x1xf32>
    %cst = arith.constant 0.000000e+00 : f32
    %30 = vector.broadcast %cst : f32 to vector<1x8xf32>
    %31 = vector.extract_strided_slice %4 {offsets = [0, 0], sizes = [15, 8], strides = [1, 1]} : vector<16x8xf32> to vector<15x8xf32>
    %32 = tpu.concatenate %30, %31 in 0 : vector<1x8xf32>, vector<15x8xf32> -> vector<16x8xf32>
    %33 = vector.broadcast %25 : vector<16x1xf32> to vector<16x8xf32>
    %34 = arith.mulf %32, %33 : vector<16x8xf32>
    %cst_5 = arith.constant 0.000000e+00 : f32
    %35 = vector.broadcast %cst_5 : f32 to vector<1x8xf32>
    %36 = vector.extract_strided_slice %4 {offsets = [1, 0], sizes = [15, 8], strides = [1, 1]} : vector<16x8xf32> to vector<15x8xf32>
    %37 = tpu.concatenate %36, %35 in 0 : vector<15x8xf32>, vector<1x8xf32> -> vector<16x8xf32>
    %38 = vector.broadcast %29 : vector<16x1xf32> to vector<16x8xf32>
    %39 = arith.mulf %37, %38 : vector<16x8xf32>
    %c0_6 = arith.constant 0 : index
    %c0_7 = arith.constant 0 : index
    %40 = vector.load %arg2[%c0_6, %c0_7] : memref<24x16xbf16, #tpu.memory_space<vmem>>, vector<24x16xbf16>
    %41 = arith.truncf %34 : vector<16x8xf32> to vector<16x8xbf16>
    %42 = arith.truncf %4 : vector<16x8xf32> to vector<16x8xbf16>
    %43 = arith.truncf %39 : vector<16x8xf32> to vector<16x8xbf16>
    %44 = tpu.concatenate %41, %42, %43 in 1 : vector<16x8xbf16>, vector<16x8xbf16>, vector<16x8xbf16> -> vector<16x24xbf16>
    %cst_8 = arith.constant dense<0.000000e+00> : vector<16x16xf32>
    %45 = tpu.matmul %44, %40, %cst_8 {dimension_numbers = #tpu.dot_dimension_numbers<[1], [0], [0], [1], [0, 0, 1, 1], [], []>} : vector<16x24xbf16>, vector<24x16xbf16>, vector<16x16xf32> -> vector<16x16xf32>
    %46 = arith.truncf %45 : vector<16x16xf32> to vector<16x16xbf16>
    %c0_9 = arith.constant 0 : index
    %c0_10 = arith.constant 0 : index
    %47 = vector.load %arg3[%c0_9, %c0_10] : memref<16x16xbf16, #tpu.memory_space<vmem>>, vector<16x16xbf16>
    tpu.vector_store %arg3[%c0_9, %c0_10], %46 {strides = array<i32>} : memref<16x16xbf16, #tpu.memory_space<vmem>>, vector<16x16xbf16>,
    %48 = arith.extf %46 : vector<16x16xbf16> to vector<16x16xf32>
    %cst_11 = arith.constant dense<0.000000e+00> : vector<16xf32>
    %49 = vector.multi_reduction <add>, %48, %cst_11 [0] : vector<16x16xf32> to vector<16xf32>
    %50 = vector.shape_cast %49 : vector<16xf32> to vector<1x16xf32>
    %51 = arith.mulf %48, %48 : vector<16x16xf32>
    %cst_12 = arith.constant dense<0.000000e+00> : vector<16xf32>
    %52 = vector.multi_reduction <add>, %51, %cst_12 [0] : vector<16x16xf32> to vector<16xf32>
    %53 = vector.shape_cast %52 : vector<16xf32> to vector<1x16xf32>
    %54 = tpu.concatenate %50, %53 in 0 : vector<1x16xf32>, vector<1x16xf32> -> vector<2x16xf32>
    %55 = vector.shape_cast %54 : vector<2x16xf32> to vector<1x2x16xf32>
    %c0_13 = arith.constant 0 : index
    %c0_14 = arith.constant 0 : index
    %c0_15 = arith.constant 0 : index
    %56 = vector.load %arg4[%c0_13, %c0_14, %c0_15] : memref<1x2x16xf32, #tpu.memory_space<vmem>>, vector<1x2x16xf32>
    tpu.vector_store %arg4[%c0_13, %c0_14, %c0_15], %55 {strides = array<i32>} : memref<1x2x16xf32, #tpu.memory_space<vmem>>, vector<1x2x16xf32>,
    return
  }
  func.func @transform_0(%arg0: i32) -> (i32, i32) {
    %c0_i32 = arith.constant 0 : i32
    %c0_i32_0 = arith.constant 0 : i32
    return %arg0, %c0_i32 : i32, i32
  }
  func.func @transform_1(%arg0: i32) -> (i32, i32) {
    %c0_i32 = arith.constant 0 : i32
    %c0_i32_0 = arith.constant 0 : i32
    %c0_i32_1 = arith.constant 0 : i32
    return %c0_i32, %c0_i32_0 : i32, i32
  }
  func.func @transform_2(%arg0: i32) -> (i32, i32) {
    %c0_i32 = arith.constant 0 : i32
    %c0_i32_0 = arith.constant 0 : i32
    return %arg0, %c0_i32 : i32, i32
  }
  func.func @transform_3(%arg0: i32) -> (i32, i32, i32) {
    %c0_i32 = arith.constant 0 : i32
    %c0_i32_0 = arith.constant 0 : i32
    %c0_i32_1 = arith.constant 0 : i32
    return %arg0, %c0_i32, %c0_i32_0 : i32, i32, i32
  }
}

module attributes {stable_mosaic.version = 11 : i64} {
  func.func @_conv3_stats_kernel(%arg0: i32, %arg1: memref<16x16xbf16, #tpu.memory_space<vmem>>, %arg2: memref<1x16xf32, #tpu.memory_space<vmem>>, %arg3: memref<1x16xf32, #tpu.memory_space<vmem>>, %arg4: memref<48x16xbf16, #tpu.memory_space<vmem>>, %arg5: memref<16x16xbf16, #tpu.memory_space<vmem>>, %arg6: memref<1x2x16xf32, #tpu.memory_space<vmem>>) attributes {dimension_semantics = [#tpu.dimension_semantics<parallel>], iteration_bounds = array<i64: 2>, scalar_prefetch = 0 : i64, scratch_operands = 0 : i64, tpu.core_type = #tpu.core_type<tc>, window_params = [{transform_indices = @transform_0, window_bounds = array<i64: 16, 16>}, {pipeline_mode = #tpu.pipeline_mode<synchronous>, transform_indices = @transform_1, window_bounds = array<i64: 1, 16>}, {pipeline_mode = #tpu.pipeline_mode<synchronous>, transform_indices = @transform_2, window_bounds = array<i64: 1, 16>}, {pipeline_mode = #tpu.pipeline_mode<synchronous>, transform_indices = @transform_3, window_bounds = array<i64: 48, 16>}, {transform_indices = @transform_4, window_bounds = array<i64: 16, 16>}, {transform_indices = @transform_5, window_bounds = array<i64: 1, 2, 16>}]} {
    %c0 = arith.constant 0 : index
    %c0_0 = arith.constant 0 : index
    %0 = vector.load %arg1[%c0, %c0_0] : memref<16x16xbf16, #tpu.memory_space<vmem>>, vector<16x16xbf16>
    %1 = arith.extf %0 : vector<16x16xbf16> to vector<16x16xf32>
    %c0_1 = arith.constant 0 : index
    %c0_2 = arith.constant 0 : index
    %2 = vector.load %arg2[%c0_1, %c0_2] : memref<1x16xf32, #tpu.memory_space<vmem>>, vector<1x16xf32>
    %3 = vector.broadcast %2 : vector<1x16xf32> to vector<16x16xf32>
    %4 = arith.mulf %1, %3 : vector<16x16xf32>
    %c0_3 = arith.constant 0 : index
    %c0_4 = arith.constant 0 : index
    %5 = vector.load %arg3[%c0_3, %c0_4] : memref<1x16xf32, #tpu.memory_space<vmem>>, vector<1x16xf32>
    %6 = vector.broadcast %5 : vector<1x16xf32> to vector<16x16xf32>
    %7 = arith.addf %4, %6 : vector<16x16xf32>
    %cst = arith.constant 0.000000e+00 : f32
    %8 = vector.broadcast %cst : f32 to vector<16x16xf32>
    %9 = arith.maximumf %7, %8 : vector<16x16xf32>
    %10 = tpu.iota {dimensions = array<i32: 0>} : vector<16x1xi32>
    %c8_i32 = arith.constant 8 : i32
    %c0_i32 = arith.constant 0 : i32
    %11 = arith.cmpi eq, %c8_i32, %c0_i32 : i32
    %c1_i32 = arith.constant 1 : i32
    %12 = arith.select %11, %c1_i32, %c8_i32 : i32
    %13 = vector.broadcast %12 : i32 to vector<16x1xi32>
    %14 = arith.remsi %10, %13 : vector<16x1xi32>
    %c0_i32_5 = arith.constant 0 : i32
    %15 = vector.broadcast %c0_i32_5 : i32 to vector<16x1xi32>
    %16 = arith.cmpi ne, %14, %15 : vector<16x1xi32>
    %c0_i32_6 = arith.constant 0 : i32
    %17 = vector.broadcast %c0_i32_6 : i32 to vector<16x1xi32>
    %18 = arith.cmpi slt, %14, %17 : vector<16x1xi32>
    %c0_i32_7 = arith.constant 0 : i32
    %19 = arith.cmpi slt, %12, %c0_i32_7 : i32
    %20 = vector.broadcast %19 : i1 to vector<16x1xi1>
    %21 = vector.broadcast %20 : vector<16x1xi1> to vector<16x1xi1>
    %22 = arith.xori %18, %21 : vector<16x1xi1>
    %23 = arith.andi %22, %16 : vector<16x1xi1>
    %24 = vector.broadcast %12 : i32 to vector<16x1xi32>
    %25 = arith.addi %14, %24 : vector<16x1xi32>
    %26 = arith.select %23, %25, %14 : vector<16x1xi1>, vector<16x1xi32>
    %c0_i32_8 = arith.constant 0 : i32
    %27 = vector.broadcast %c0_i32_8 : i32 to vector<16x1xi32>
    %28 = arith.cmpi ne, %26, %27 : vector<16x1xi32>
    %29 = arith.extui %28 : vector<16x1xi1> to vector<16x1xi32>
    %30 = arith.sitofp %29 : vector<16x1xi32> to vector<16x1xf32>
    %c7_i32 = arith.constant 7 : i32
    %31 = vector.broadcast %c7_i32 : i32 to vector<16x1xi32>
    %32 = arith.cmpi ne, %26, %31 : vector<16x1xi32>
    %33 = arith.extui %32 : vector<16x1xi1> to vector<16x1xi32>
    %34 = arith.sitofp %33 : vector<16x1xi32> to vector<16x1xf32>
    %cst_9 = arith.constant 0.000000e+00 : f32
    %35 = vector.broadcast %cst_9 : f32 to vector<1x16xf32>
    %36 = vector.extract_strided_slice %9 {offsets = [0, 0], sizes = [15, 16], strides = [1, 1]} : vector<16x16xf32> to vector<15x16xf32>
    %37 = tpu.concatenate %35, %36 in 0 : vector<1x16xf32>, vector<15x16xf32> -> vector<16x16xf32>
    %38 = vector.broadcast %30 : vector<16x1xf32> to vector<16x16xf32>
    %39 = arith.mulf %37, %38 : vector<16x16xf32>
    %cst_10 = arith.constant 0.000000e+00 : f32
    %40 = vector.broadcast %cst_10 : f32 to vector<1x16xf32>
    %41 = vector.extract_strided_slice %9 {offsets = [1, 0], sizes = [15, 16], strides = [1, 1]} : vector<16x16xf32> to vector<15x16xf32>
    %42 = tpu.concatenate %41, %40 in 0 : vector<15x16xf32>, vector<1x16xf32> -> vector<16x16xf32>
    %43 = vector.broadcast %34 : vector<16x1xf32> to vector<16x16xf32>
    %44 = arith.mulf %42, %43 : vector<16x16xf32>
    %c0_11 = arith.constant 0 : index
    %c0_12 = arith.constant 0 : index
    %45 = vector.load %arg4[%c0_11, %c0_12] : memref<48x16xbf16, #tpu.memory_space<vmem>>, vector<48x16xbf16>
    %46 = arith.truncf %39 : vector<16x16xf32> to vector<16x16xbf16>
    %47 = arith.truncf %9 : vector<16x16xf32> to vector<16x16xbf16>
    %48 = arith.truncf %44 : vector<16x16xf32> to vector<16x16xbf16>
    %49 = tpu.concatenate %46, %47, %48 in 1 : vector<16x16xbf16>, vector<16x16xbf16>, vector<16x16xbf16> -> vector<16x48xbf16>
    %cst_13 = arith.constant dense<0.000000e+00> : vector<16x16xf32>
    %50 = tpu.matmul %49, %45, %cst_13 {dimension_numbers = #tpu.dot_dimension_numbers<[1], [0], [0], [1], [0, 0, 1, 1], [], []>} : vector<16x48xbf16>, vector<48x16xbf16>, vector<16x16xf32> -> vector<16x16xf32>
    %51 = arith.truncf %50 : vector<16x16xf32> to vector<16x16xbf16>
    %c0_14 = arith.constant 0 : index
    %c0_15 = arith.constant 0 : index
    %52 = vector.load %arg5[%c0_14, %c0_15] : memref<16x16xbf16, #tpu.memory_space<vmem>>, vector<16x16xbf16>
    tpu.vector_store %arg5[%c0_14, %c0_15], %51 {strides = array<i32>} : memref<16x16xbf16, #tpu.memory_space<vmem>>, vector<16x16xbf16>,
    %53 = arith.extf %51 : vector<16x16xbf16> to vector<16x16xf32>
    %cst_16 = arith.constant dense<0.000000e+00> : vector<16xf32>
    %54 = vector.multi_reduction <add>, %53, %cst_16 [0] : vector<16x16xf32> to vector<16xf32>
    %55 = vector.shape_cast %54 : vector<16xf32> to vector<1x16xf32>
    %56 = arith.mulf %53, %53 : vector<16x16xf32>
    %cst_17 = arith.constant dense<0.000000e+00> : vector<16xf32>
    %57 = vector.multi_reduction <add>, %56, %cst_17 [0] : vector<16x16xf32> to vector<16xf32>
    %58 = vector.shape_cast %57 : vector<16xf32> to vector<1x16xf32>
    %59 = tpu.concatenate %55, %58 in 0 : vector<1x16xf32>, vector<1x16xf32> -> vector<2x16xf32>
    %60 = vector.shape_cast %59 : vector<2x16xf32> to vector<1x2x16xf32>
    %c0_18 = arith.constant 0 : index
    %c0_19 = arith.constant 0 : index
    %c0_20 = arith.constant 0 : index
    %61 = vector.load %arg6[%c0_18, %c0_19, %c0_20] : memref<1x2x16xf32, #tpu.memory_space<vmem>>, vector<1x2x16xf32>
    tpu.vector_store %arg6[%c0_18, %c0_19, %c0_20], %60 {strides = array<i32>} : memref<1x2x16xf32, #tpu.memory_space<vmem>>, vector<1x2x16xf32>,
    return
  }
  func.func @transform_0(%arg0: i32) -> (i32, i32) {
    %c0_i32 = arith.constant 0 : i32
    %c0_i32_0 = arith.constant 0 : i32
    return %arg0, %c0_i32 : i32, i32
  }
  func.func @transform_1(%arg0: i32) -> (i32, i32) {
    %c0_i32 = arith.constant 0 : i32
    %c0_i32_0 = arith.constant 0 : i32
    %c0_i32_1 = arith.constant 0 : i32
    return %c0_i32, %c0_i32_0 : i32, i32
  }
  func.func @transform_2(%arg0: i32) -> (i32, i32) {
    %c0_i32 = arith.constant 0 : i32
    %c0_i32_0 = arith.constant 0 : i32
    %c0_i32_1 = arith.constant 0 : i32
    return %c0_i32, %c0_i32_0 : i32, i32
  }
  func.func @transform_3(%arg0: i32) -> (i32, i32) {
    %c0_i32 = arith.constant 0 : i32
    %c0_i32_0 = arith.constant 0 : i32
    %c0_i32_1 = arith.constant 0 : i32
    return %c0_i32, %c0_i32_0 : i32, i32
  }
  func.func @transform_4(%arg0: i32) -> (i32, i32) {
    %c0_i32 = arith.constant 0 : i32
    %c0_i32_0 = arith.constant 0 : i32
    return %arg0, %c0_i32 : i32, i32
  }
  func.func @transform_5(%arg0: i32) -> (i32, i32, i32) {
    %c0_i32 = arith.constant 0 : i32
    %c0_i32_0 = arith.constant 0 : i32
    %c0_i32_1 = arith.constant 0 : i32
    return %arg0, %c0_i32, %c0_i32_0 : i32, i32, i32
  }
}

module attributes {stable_mosaic.version = 11 : i64} {
  func.func @_dense_kernel(%arg0: i32, %arg1: memref<16x16xbf16, #tpu.memory_space<vmem>>, %arg2: memref<1x16xf32, #tpu.memory_space<vmem>>, %arg3: memref<1x16xf32, #tpu.memory_space<vmem>>, %arg4: memref<16x16xbf16, #tpu.memory_space<vmem>>, %arg5: memref<1x16xf32, #tpu.memory_space<vmem>>, %arg6: memref<16x16xbf16, #tpu.memory_space<vmem>>) attributes {dimension_semantics = [#tpu.dimension_semantics<parallel>], iteration_bounds = array<i64: 2>, scalar_prefetch = 0 : i64, scratch_operands = 0 : i64, tpu.core_type = #tpu.core_type<tc>, window_params = [{transform_indices = @transform_0, window_bounds = array<i64: 16, 16>}, {pipeline_mode = #tpu.pipeline_mode<synchronous>, transform_indices = @transform_1, window_bounds = array<i64: 1, 16>}, {pipeline_mode = #tpu.pipeline_mode<synchronous>, transform_indices = @transform_2, window_bounds = array<i64: 1, 16>}, {pipeline_mode = #tpu.pipeline_mode<synchronous>, transform_indices = @transform_3, window_bounds = array<i64: 16, 16>}, {pipeline_mode = #tpu.pipeline_mode<synchronous>, transform_indices = @transform_4, window_bounds = array<i64: 1, 16>}, {transform_indices = @transform_5, window_bounds = array<i64: 16, 16>}]} {
    %c0 = arith.constant 0 : index
    %c0_0 = arith.constant 0 : index
    %0 = vector.load %arg1[%c0, %c0_0] : memref<16x16xbf16, #tpu.memory_space<vmem>>, vector<16x16xbf16>
    %1 = arith.extf %0 : vector<16x16xbf16> to vector<16x16xf32>
    %c0_1 = arith.constant 0 : index
    %c0_2 = arith.constant 0 : index
    %2 = vector.load %arg2[%c0_1, %c0_2] : memref<1x16xf32, #tpu.memory_space<vmem>>, vector<1x16xf32>
    %3 = vector.broadcast %2 : vector<1x16xf32> to vector<16x16xf32>
    %4 = arith.mulf %1, %3 : vector<16x16xf32>
    %c0_3 = arith.constant 0 : index
    %c0_4 = arith.constant 0 : index
    %5 = vector.load %arg3[%c0_3, %c0_4] : memref<1x16xf32, #tpu.memory_space<vmem>>, vector<1x16xf32>
    %6 = vector.broadcast %5 : vector<1x16xf32> to vector<16x16xf32>
    %7 = arith.addf %4, %6 : vector<16x16xf32>
    %cst = arith.constant 0.000000e+00 : f32
    %8 = vector.broadcast %cst : f32 to vector<16x16xf32>
    %9 = arith.maximumf %7, %8 : vector<16x16xf32>
    %10 = arith.truncf %9 : vector<16x16xf32> to vector<16x16xbf16>
    %c0_5 = arith.constant 0 : index
    %c0_6 = arith.constant 0 : index
    %11 = vector.load %arg4[%c0_5, %c0_6] : memref<16x16xbf16, #tpu.memory_space<vmem>>, vector<16x16xbf16>
    %cst_7 = arith.constant dense<0.000000e+00> : vector<16x16xf32>
    %12 = tpu.matmul %10, %11, %cst_7 {dimension_numbers = #tpu.dot_dimension_numbers<[1], [0], [0], [1], [0, 0, 1, 1], [], []>} : vector<16x16xbf16>, vector<16x16xbf16>, vector<16x16xf32> -> vector<16x16xf32>
    %c0_8 = arith.constant 0 : index
    %c0_9 = arith.constant 0 : index
    %13 = vector.load %arg5[%c0_8, %c0_9] : memref<1x16xf32, #tpu.memory_space<vmem>>, vector<1x16xf32>
    %14 = vector.broadcast %13 : vector<1x16xf32> to vector<16x16xf32>
    %15 = arith.addf %12, %14 : vector<16x16xf32>
    %16 = arith.truncf %15 : vector<16x16xf32> to vector<16x16xbf16>
    %c0_10 = arith.constant 0 : index
    %c0_11 = arith.constant 0 : index
    %17 = vector.load %arg6[%c0_10, %c0_11] : memref<16x16xbf16, #tpu.memory_space<vmem>>, vector<16x16xbf16>
    tpu.vector_store %arg6[%c0_10, %c0_11], %16 {strides = array<i32>} : memref<16x16xbf16, #tpu.memory_space<vmem>>, vector<16x16xbf16>,
    return
  }
  func.func @transform_0(%arg0: i32) -> (i32, i32) {
    %c0_i32 = arith.constant 0 : i32
    %c0_i32_0 = arith.constant 0 : i32
    return %arg0, %c0_i32 : i32, i32
  }
  func.func @transform_1(%arg0: i32) -> (i32, i32) {
    %c0_i32 = arith.constant 0 : i32
    %c0_i32_0 = arith.constant 0 : i32
    %c0_i32_1 = arith.constant 0 : i32
    return %c0_i32, %c0_i32_0 : i32, i32
  }
  func.func @transform_2(%arg0: i32) -> (i32, i32) {
    %c0_i32 = arith.constant 0 : i32
    %c0_i32_0 = arith.constant 0 : i32
    %c0_i32_1 = arith.constant 0 : i32
    return %c0_i32, %c0_i32_0 : i32, i32
  }
  func.func @transform_3(%arg0: i32) -> (i32, i32) {
    %c0_i32 = arith.constant 0 : i32
    %c0_i32_0 = arith.constant 0 : i32
    %c0_i32_1 = arith.constant 0 : i32
    return %c0_i32, %c0_i32_0 : i32, i32
  }
  func.func @transform_4(%arg0: i32) -> (i32, i32) {
    %c0_i32 = arith.constant 0 : i32
    %c0_i32_0 = arith.constant 0 : i32
    %c0_i32_1 = arith.constant 0 : i32
    return %c0_i32, %c0_i32_0 : i32, i32
  }
  func.func @transform_5(%arg0: i32) -> (i32, i32) {
    %c0_i32 = arith.constant 0 : i32
    %c0_i32_0 = arith.constant 0 : i32
    return %arg0, %c0_i32 : i32, i32
  }
}

module attributes {stable_mosaic.version = 11 : i64} {
  func.func @_conv3_stats_kernel(%arg0: i32, %arg1: memref<32x16xbf16, #tpu.memory_space<vmem>>, %arg2: memref<48x8xbf16, #tpu.memory_space<vmem>>, %arg3: memref<32x8xbf16, #tpu.memory_space<vmem>>, %arg4: memref<1x2x8xf32, #tpu.memory_space<vmem>>) attributes {dimension_semantics = [#tpu.dimension_semantics<parallel>], iteration_bounds = array<i64: 2>, scalar_prefetch = 0 : i64, scratch_operands = 0 : i64, tpu.core_type = #tpu.core_type<tc>, window_params = [{transform_indices = @transform_0, window_bounds = array<i64: 32, 16>}, {pipeline_mode = #tpu.pipeline_mode<synchronous>, transform_indices = @transform_1, window_bounds = array<i64: 48, 8>}, {transform_indices = @transform_2, window_bounds = array<i64: 32, 8>}, {transform_indices = @transform_3, window_bounds = array<i64: 1, 2, 8>}]} {
    %c0 = arith.constant 0 : index
    %c0_0 = arith.constant 0 : index
    %0 = vector.load %arg1[%c0, %c0_0] : memref<32x16xbf16, #tpu.memory_space<vmem>>, vector<32x16xbf16>
    %1 = arith.extf %0 : vector<32x16xbf16> to vector<32x16xf32>
    %2 = tpu.iota {dimensions = array<i32: 0>} : vector<32x1xi32>
    %c16_i32 = arith.constant 16 : i32
    %c0_i32 = arith.constant 0 : i32
    %3 = arith.cmpi eq, %c16_i32, %c0_i32 : i32
    %c1_i32 = arith.constant 1 : i32
    %4 = arith.select %3, %c1_i32, %c16_i32 : i32
    %5 = vector.broadcast %4 : i32 to vector<32x1xi32>
    %6 = arith.remsi %2, %5 : vector<32x1xi32>
    %c0_i32_1 = arith.constant 0 : i32
    %7 = vector.broadcast %c0_i32_1 : i32 to vector<32x1xi32>
    %8 = arith.cmpi ne, %6, %7 : vector<32x1xi32>
    %c0_i32_2 = arith.constant 0 : i32
    %9 = vector.broadcast %c0_i32_2 : i32 to vector<32x1xi32>
    %10 = arith.cmpi slt, %6, %9 : vector<32x1xi32>
    %c0_i32_3 = arith.constant 0 : i32
    %11 = arith.cmpi slt, %4, %c0_i32_3 : i32
    %12 = vector.broadcast %11 : i1 to vector<32x1xi1>
    %13 = vector.broadcast %12 : vector<32x1xi1> to vector<32x1xi1>
    %14 = arith.xori %10, %13 : vector<32x1xi1>
    %15 = arith.andi %14, %8 : vector<32x1xi1>
    %16 = vector.broadcast %4 : i32 to vector<32x1xi32>
    %17 = arith.addi %6, %16 : vector<32x1xi32>
    %18 = arith.select %15, %17, %6 : vector<32x1xi1>, vector<32x1xi32>
    %c0_i32_4 = arith.constant 0 : i32
    %19 = vector.broadcast %c0_i32_4 : i32 to vector<32x1xi32>
    %20 = arith.cmpi ne, %18, %19 : vector<32x1xi32>
    %21 = arith.extui %20 : vector<32x1xi1> to vector<32x1xi32>
    %22 = arith.sitofp %21 : vector<32x1xi32> to vector<32x1xf32>
    %c15_i32 = arith.constant 15 : i32
    %23 = vector.broadcast %c15_i32 : i32 to vector<32x1xi32>
    %24 = arith.cmpi ne, %18, %23 : vector<32x1xi32>
    %25 = arith.extui %24 : vector<32x1xi1> to vector<32x1xi32>
    %26 = arith.sitofp %25 : vector<32x1xi32> to vector<32x1xf32>
    %cst = arith.constant 0.000000e+00 : f32
    %27 = vector.broadcast %cst : f32 to vector<1x16xf32>
    %28 = vector.extract_strided_slice %1 {offsets = [0, 0], sizes = [31, 16], strides = [1, 1]} : vector<32x16xf32> to vector<31x16xf32>
    %29 = tpu.concatenate %27, %28 in 0 : vector<1x16xf32>, vector<31x16xf32> -> vector<32x16xf32>
    %30 = vector.broadcast %22 : vector<32x1xf32> to vector<32x16xf32>
    %31 = arith.mulf %29, %30 : vector<32x16xf32>
    %cst_5 = arith.constant 0.000000e+00 : f32
    %32 = vector.broadcast %cst_5 : f32 to vector<1x16xf32>
    %33 = vector.extract_strided_slice %1 {offsets = [1, 0], sizes = [31, 16], strides = [1, 1]} : vector<32x16xf32> to vector<31x16xf32>
    %34 = tpu.concatenate %33, %32 in 0 : vector<31x16xf32>, vector<1x16xf32> -> vector<32x16xf32>
    %35 = vector.broadcast %26 : vector<32x1xf32> to vector<32x16xf32>
    %36 = arith.mulf %34, %35 : vector<32x16xf32>
    %c0_6 = arith.constant 0 : index
    %c0_7 = arith.constant 0 : index
    %37 = vector.load %arg2[%c0_6, %c0_7] : memref<48x8xbf16, #tpu.memory_space<vmem>>, vector<48x8xbf16>
    %38 = arith.truncf %31 : vector<32x16xf32> to vector<32x16xbf16>
    %39 = arith.truncf %1 : vector<32x16xf32> to vector<32x16xbf16>
    %40 = arith.truncf %36 : vector<32x16xf32> to vector<32x16xbf16>
    %41 = tpu.concatenate %38, %39, %40 in 1 : vector<32x16xbf16>, vector<32x16xbf16>, vector<32x16xbf16> -> vector<32x48xbf16>
    %cst_8 = arith.constant dense<0.000000e+00> : vector<32x8xf32>
    %42 = tpu.matmul %41, %37, %cst_8 {dimension_numbers = #tpu.dot_dimension_numbers<[1], [0], [0], [1], [0, 0, 1, 1], [], []>} : vector<32x48xbf16>, vector<48x8xbf16>, vector<32x8xf32> -> vector<32x8xf32>
    %43 = arith.truncf %42 : vector<32x8xf32> to vector<32x8xbf16>
    %c0_9 = arith.constant 0 : index
    %c0_10 = arith.constant 0 : index
    %44 = vector.load %arg3[%c0_9, %c0_10] : memref<32x8xbf16, #tpu.memory_space<vmem>>, vector<32x8xbf16>
    tpu.vector_store %arg3[%c0_9, %c0_10], %43 {strides = array<i32>} : memref<32x8xbf16, #tpu.memory_space<vmem>>, vector<32x8xbf16>,
    %45 = arith.extf %43 : vector<32x8xbf16> to vector<32x8xf32>
    %cst_11 = arith.constant dense<0.000000e+00> : vector<8xf32>
    %46 = vector.multi_reduction <add>, %45, %cst_11 [0] : vector<32x8xf32> to vector<8xf32>
    %47 = vector.shape_cast %46 : vector<8xf32> to vector<1x8xf32>
    %48 = arith.mulf %45, %45 : vector<32x8xf32>
    %cst_12 = arith.constant dense<0.000000e+00> : vector<8xf32>
    %49 = vector.multi_reduction <add>, %48, %cst_12 [0] : vector<32x8xf32> to vector<8xf32>
    %50 = vector.shape_cast %49 : vector<8xf32> to vector<1x8xf32>
    %51 = tpu.concatenate %47, %50 in 0 : vector<1x8xf32>, vector<1x8xf32> -> vector<2x8xf32>
    %52 = vector.shape_cast %51 : vector<2x8xf32> to vector<1x2x8xf32>
    %c0_13 = arith.constant 0 : index
    %c0_14 = arith.constant 0 : index
    %c0_15 = arith.constant 0 : index
    %53 = vector.load %arg4[%c0_13, %c0_14, %c0_15] : memref<1x2x8xf32, #tpu.memory_space<vmem>>, vector<1x2x8xf32>
    tpu.vector_store %arg4[%c0_13, %c0_14, %c0_15], %52 {strides = array<i32>} : memref<1x2x8xf32, #tpu.memory_space<vmem>>, vector<1x2x8xf32>,
    return
  }
  func.func @transform_0(%arg0: i32) -> (i32, i32) {
    %c0_i32 = arith.constant 0 : i32
    %c0_i32_0 = arith.constant 0 : i32
    return %arg0, %c0_i32 : i32, i32
  }
  func.func @transform_1(%arg0: i32) -> (i32, i32) {
    %c0_i32 = arith.constant 0 : i32
    %c0_i32_0 = arith.constant 0 : i32
    %c0_i32_1 = arith.constant 0 : i32
    return %c0_i32, %c0_i32_0 : i32, i32
  }
  func.func @transform_2(%arg0: i32) -> (i32, i32) {
    %c0_i32 = arith.constant 0 : i32
    %c0_i32_0 = arith.constant 0 : i32
    return %arg0, %c0_i32 : i32, i32
  }
  func.func @transform_3(%arg0: i32) -> (i32, i32, i32) {
    %c0_i32 = arith.constant 0 : i32
    %c0_i32_0 = arith.constant 0 : i32
    %c0_i32_1 = arith.constant 0 : i32
    return %arg0, %c0_i32, %c0_i32_0 : i32, i32, i32
  }
}

module attributes {stable_mosaic.version = 11 : i64} {
  func.func @_dense_kernel(%arg0: i32, %arg1: memref<32x8xbf16, #tpu.memory_space<vmem>>, %arg2: memref<1x8xf32, #tpu.memory_space<vmem>>, %arg3: memref<1x8xf32, #tpu.memory_space<vmem>>, %arg4: memref<8x16xbf16, #tpu.memory_space<vmem>>, %arg5: memref<1x16xf32, #tpu.memory_space<vmem>>, %arg6: memref<32x16xbf16, #tpu.memory_space<vmem>>) attributes {dimension_semantics = [#tpu.dimension_semantics<parallel>], iteration_bounds = array<i64: 2>, scalar_prefetch = 0 : i64, scratch_operands = 0 : i64, tpu.core_type = #tpu.core_type<tc>, window_params = [{transform_indices = @transform_0, window_bounds = array<i64: 32, 8>}, {pipeline_mode = #tpu.pipeline_mode<synchronous>, transform_indices = @transform_1, window_bounds = array<i64: 1, 8>}, {pipeline_mode = #tpu.pipeline_mode<synchronous>, transform_indices = @transform_2, window_bounds = array<i64: 1, 8>}, {pipeline_mode = #tpu.pipeline_mode<synchronous>, transform_indices = @transform_3, window_bounds = array<i64: 8, 16>}, {pipeline_mode = #tpu.pipeline_mode<synchronous>, transform_indices = @transform_4, window_bounds = array<i64: 1, 16>}, {transform_indices = @transform_5, window_bounds = array<i64: 32, 16>}]} {
    %c0 = arith.constant 0 : index
    %c0_0 = arith.constant 0 : index
    %0 = vector.load %arg1[%c0, %c0_0] : memref<32x8xbf16, #tpu.memory_space<vmem>>, vector<32x8xbf16>
    %1 = arith.extf %0 : vector<32x8xbf16> to vector<32x8xf32>
    %c0_1 = arith.constant 0 : index
    %c0_2 = arith.constant 0 : index
    %2 = vector.load %arg2[%c0_1, %c0_2] : memref<1x8xf32, #tpu.memory_space<vmem>>, vector<1x8xf32>
    %3 = vector.broadcast %2 : vector<1x8xf32> to vector<32x8xf32>
    %4 = arith.mulf %1, %3 : vector<32x8xf32>
    %c0_3 = arith.constant 0 : index
    %c0_4 = arith.constant 0 : index
    %5 = vector.load %arg3[%c0_3, %c0_4] : memref<1x8xf32, #tpu.memory_space<vmem>>, vector<1x8xf32>
    %6 = vector.broadcast %5 : vector<1x8xf32> to vector<32x8xf32>
    %7 = arith.addf %4, %6 : vector<32x8xf32>
    %cst = arith.constant 0.000000e+00 : f32
    %8 = vector.broadcast %cst : f32 to vector<32x8xf32>
    %9 = arith.maximumf %7, %8 : vector<32x8xf32>
    %10 = arith.truncf %9 : vector<32x8xf32> to vector<32x8xbf16>
    %c0_5 = arith.constant 0 : index
    %c0_6 = arith.constant 0 : index
    %11 = vector.load %arg4[%c0_5, %c0_6] : memref<8x16xbf16, #tpu.memory_space<vmem>>, vector<8x16xbf16>
    %cst_7 = arith.constant dense<0.000000e+00> : vector<32x16xf32>
    %12 = tpu.matmul %10, %11, %cst_7 {dimension_numbers = #tpu.dot_dimension_numbers<[1], [0], [0], [1], [0, 0, 1, 1], [], []>} : vector<32x8xbf16>, vector<8x16xbf16>, vector<32x16xf32> -> vector<32x16xf32>
    %c0_8 = arith.constant 0 : index
    %c0_9 = arith.constant 0 : index
    %13 = vector.load %arg5[%c0_8, %c0_9] : memref<1x16xf32, #tpu.memory_space<vmem>>, vector<1x16xf32>
    %14 = vector.broadcast %13 : vector<1x16xf32> to vector<32x16xf32>
    %15 = arith.addf %12, %14 : vector<32x16xf32>
    %16 = arith.truncf %15 : vector<32x16xf32> to vector<32x16xbf16>
    %c0_10 = arith.constant 0 : index
    %c0_11 = arith.constant 0 : index
    %17 = vector.load %arg6[%c0_10, %c0_11] : memref<32x16xbf16, #tpu.memory_space<vmem>>, vector<32x16xbf16>
    tpu.vector_store %arg6[%c0_10, %c0_11], %16 {strides = array<i32>} : memref<32x16xbf16, #tpu.memory_space<vmem>>, vector<32x16xbf16>,
    return
  }
  func.func @transform_0(%arg0: i32) -> (i32, i32) {
    %c0_i32 = arith.constant 0 : i32
    %c0_i32_0 = arith.constant 0 : i32
    return %arg0, %c0_i32 : i32, i32
  }
  func.func @transform_1(%arg0: i32) -> (i32, i32) {
    %c0_i32 = arith.constant 0 : i32
    %c0_i32_0 = arith.constant 0 : i32
    %c0_i32_1 = arith.constant 0 : i32
    return %c0_i32, %c0_i32_0 : i32, i32
  }
  func.func @transform_2(%arg0: i32) -> (i32, i32) {
    %c0_i32 = arith.constant 0 : i32
    %c0_i32_0 = arith.constant 0 : i32
    %c0_i32_1 = arith.constant 0 : i32
    return %c0_i32, %c0_i32_0 : i32, i32
  }
  func.func @transform_3(%arg0: i32) -> (i32, i32) {
    %c0_i32 = arith.constant 0 : i32
    %c0_i32_0 = arith.constant 0 : i32
    %c0_i32_1 = arith.constant 0 : i32
    return %c0_i32, %c0_i32_0 : i32, i32
  }
  func.func @transform_4(%arg0: i32) -> (i32, i32) {
    %c0_i32 = arith.constant 0 : i32
    %c0_i32_0 = arith.constant 0 : i32
    %c0_i32_1 = arith.constant 0 : i32
    return %c0_i32, %c0_i32_0 : i32, i32
  }
  func.func @transform_5(%arg0: i32) -> (i32, i32) {
    %c0_i32 = arith.constant 0 : i32
    %c0_i32_0 = arith.constant 0 : i32
    return %arg0, %c0_i32 : i32, i32
  }
}

module attributes {stable_mosaic.version = 11 : i64} {
  func.func @_conv3_stats_kernel(%arg0: i32, %arg1: memref<64x16xbf16, #tpu.memory_space<vmem>>, %arg2: memref<48x8xbf16, #tpu.memory_space<vmem>>, %arg3: memref<64x8xbf16, #tpu.memory_space<vmem>>, %arg4: memref<1x2x8xf32, #tpu.memory_space<vmem>>) attributes {dimension_semantics = [#tpu.dimension_semantics<parallel>], iteration_bounds = array<i64: 2>, scalar_prefetch = 0 : i64, scratch_operands = 0 : i64, tpu.core_type = #tpu.core_type<tc>, window_params = [{transform_indices = @transform_0, window_bounds = array<i64: 64, 16>}, {pipeline_mode = #tpu.pipeline_mode<synchronous>, transform_indices = @transform_1, window_bounds = array<i64: 48, 8>}, {transform_indices = @transform_2, window_bounds = array<i64: 64, 8>}, {transform_indices = @transform_3, window_bounds = array<i64: 1, 2, 8>}]} {
    %c0 = arith.constant 0 : index
    %c0_0 = arith.constant 0 : index
    %0 = vector.load %arg1[%c0, %c0_0] : memref<64x16xbf16, #tpu.memory_space<vmem>>, vector<64x16xbf16>
    %1 = arith.extf %0 : vector<64x16xbf16> to vector<64x16xf32>
    %2 = tpu.iota {dimensions = array<i32: 0>} : vector<64x1xi32>
    %c32_i32 = arith.constant 32 : i32
    %c0_i32 = arith.constant 0 : i32
    %3 = arith.cmpi eq, %c32_i32, %c0_i32 : i32
    %c1_i32 = arith.constant 1 : i32
    %4 = arith.select %3, %c1_i32, %c32_i32 : i32
    %5 = vector.broadcast %4 : i32 to vector<64x1xi32>
    %6 = arith.remsi %2, %5 : vector<64x1xi32>
    %c0_i32_1 = arith.constant 0 : i32
    %7 = vector.broadcast %c0_i32_1 : i32 to vector<64x1xi32>
    %8 = arith.cmpi ne, %6, %7 : vector<64x1xi32>
    %c0_i32_2 = arith.constant 0 : i32
    %9 = vector.broadcast %c0_i32_2 : i32 to vector<64x1xi32>
    %10 = arith.cmpi slt, %6, %9 : vector<64x1xi32>
    %c0_i32_3 = arith.constant 0 : i32
    %11 = arith.cmpi slt, %4, %c0_i32_3 : i32
    %12 = vector.broadcast %11 : i1 to vector<64x1xi1>
    %13 = vector.broadcast %12 : vector<64x1xi1> to vector<64x1xi1>
    %14 = arith.xori %10, %13 : vector<64x1xi1>
    %15 = arith.andi %14, %8 : vector<64x1xi1>
    %16 = vector.broadcast %4 : i32 to vector<64x1xi32>
    %17 = arith.addi %6, %16 : vector<64x1xi32>
    %18 = arith.select %15, %17, %6 : vector<64x1xi1>, vector<64x1xi32>
    %c0_i32_4 = arith.constant 0 : i32
    %19 = vector.broadcast %c0_i32_4 : i32 to vector<64x1xi32>
    %20 = arith.cmpi ne, %18, %19 : vector<64x1xi32>
    %21 = arith.extui %20 : vector<64x1xi1> to vector<64x1xi32>
    %22 = arith.sitofp %21 : vector<64x1xi32> to vector<64x1xf32>
    %c31_i32 = arith.constant 31 : i32
    %23 = vector.broadcast %c31_i32 : i32 to vector<64x1xi32>
    %24 = arith.cmpi ne, %18, %23 : vector<64x1xi32>
    %25 = arith.extui %24 : vector<64x1xi1> to vector<64x1xi32>
    %26 = arith.sitofp %25 : vector<64x1xi32> to vector<64x1xf32>
    %cst = arith.constant 0.000000e+00 : f32
    %27 = vector.broadcast %cst : f32 to vector<1x16xf32>
    %28 = vector.extract_strided_slice %1 {offsets = [0, 0], sizes = [63, 16], strides = [1, 1]} : vector<64x16xf32> to vector<63x16xf32>
    %29 = tpu.concatenate %27, %28 in 0 : vector<1x16xf32>, vector<63x16xf32> -> vector<64x16xf32>
    %30 = vector.broadcast %22 : vector<64x1xf32> to vector<64x16xf32>
    %31 = arith.mulf %29, %30 : vector<64x16xf32>
    %cst_5 = arith.constant 0.000000e+00 : f32
    %32 = vector.broadcast %cst_5 : f32 to vector<1x16xf32>
    %33 = vector.extract_strided_slice %1 {offsets = [1, 0], sizes = [63, 16], strides = [1, 1]} : vector<64x16xf32> to vector<63x16xf32>
    %34 = tpu.concatenate %33, %32 in 0 : vector<63x16xf32>, vector<1x16xf32> -> vector<64x16xf32>
    %35 = vector.broadcast %26 : vector<64x1xf32> to vector<64x16xf32>
    %36 = arith.mulf %34, %35 : vector<64x16xf32>
    %c0_6 = arith.constant 0 : index
    %c0_7 = arith.constant 0 : index
    %37 = vector.load %arg2[%c0_6, %c0_7] : memref<48x8xbf16, #tpu.memory_space<vmem>>, vector<48x8xbf16>
    %38 = arith.truncf %31 : vector<64x16xf32> to vector<64x16xbf16>
    %39 = arith.truncf %1 : vector<64x16xf32> to vector<64x16xbf16>
    %40 = arith.truncf %36 : vector<64x16xf32> to vector<64x16xbf16>
    %41 = tpu.concatenate %38, %39, %40 in 1 : vector<64x16xbf16>, vector<64x16xbf16>, vector<64x16xbf16> -> vector<64x48xbf16>
    %cst_8 = arith.constant dense<0.000000e+00> : vector<64x8xf32>
    %42 = tpu.matmul %41, %37, %cst_8 {dimension_numbers = #tpu.dot_dimension_numbers<[1], [0], [0], [1], [0, 0, 1, 1], [], []>} : vector<64x48xbf16>, vector<48x8xbf16>, vector<64x8xf32> -> vector<64x8xf32>
    %43 = arith.truncf %42 : vector<64x8xf32> to vector<64x8xbf16>
    %c0_9 = arith.constant 0 : index
    %c0_10 = arith.constant 0 : index
    %44 = vector.load %arg3[%c0_9, %c0_10] : memref<64x8xbf16, #tpu.memory_space<vmem>>, vector<64x8xbf16>
    tpu.vector_store %arg3[%c0_9, %c0_10], %43 {strides = array<i32>} : memref<64x8xbf16, #tpu.memory_space<vmem>>, vector<64x8xbf16>,
    %45 = arith.extf %43 : vector<64x8xbf16> to vector<64x8xf32>
    %cst_11 = arith.constant dense<0.000000e+00> : vector<8xf32>
    %46 = vector.multi_reduction <add>, %45, %cst_11 [0] : vector<64x8xf32> to vector<8xf32>
    %47 = vector.shape_cast %46 : vector<8xf32> to vector<1x8xf32>
    %48 = arith.mulf %45, %45 : vector<64x8xf32>
    %cst_12 = arith.constant dense<0.000000e+00> : vector<8xf32>
    %49 = vector.multi_reduction <add>, %48, %cst_12 [0] : vector<64x8xf32> to vector<8xf32>
    %50 = vector.shape_cast %49 : vector<8xf32> to vector<1x8xf32>
    %51 = tpu.concatenate %47, %50 in 0 : vector<1x8xf32>, vector<1x8xf32> -> vector<2x8xf32>
    %52 = vector.shape_cast %51 : vector<2x8xf32> to vector<1x2x8xf32>
    %c0_13 = arith.constant 0 : index
    %c0_14 = arith.constant 0 : index
    %c0_15 = arith.constant 0 : index
    %53 = vector.load %arg4[%c0_13, %c0_14, %c0_15] : memref<1x2x8xf32, #tpu.memory_space<vmem>>, vector<1x2x8xf32>
    tpu.vector_store %arg4[%c0_13, %c0_14, %c0_15], %52 {strides = array<i32>} : memref<1x2x8xf32, #tpu.memory_space<vmem>>, vector<1x2x8xf32>,
    return
  }
  func.func @transform_0(%arg0: i32) -> (i32, i32) {
    %c0_i32 = arith.constant 0 : i32
    %c0_i32_0 = arith.constant 0 : i32
    return %arg0, %c0_i32 : i32, i32
  }
  func.func @transform_1(%arg0: i32) -> (i32, i32) {
    %c0_i32 = arith.constant 0 : i32
    %c0_i32_0 = arith.constant 0 : i32
    %c0_i32_1 = arith.constant 0 : i32
    return %c0_i32, %c0_i32_0 : i32, i32
  }
  func.func @transform_2(%arg0: i32) -> (i32, i32) {
    %c0_i32 = arith.constant 0 : i32
    %c0_i32_0 = arith.constant 0 : i32
    return %arg0, %c0_i32 : i32, i32
  }
  func.func @transform_3(%arg0: i32) -> (i32, i32, i32) {
    %c0_i32 = arith.constant 0 : i32
    %c0_i32_0 = arith.constant 0 : i32
    %c0_i32_1 = arith.constant 0 : i32
    return %arg0, %c0_i32, %c0_i32_0 : i32, i32, i32
  }
}

module attributes {stable_mosaic.version = 11 : i64} {
  func.func @_dense_kernel(%arg0: i32, %arg1: memref<64x8xbf16, #tpu.memory_space<vmem>>, %arg2: memref<1x8xf32, #tpu.memory_space<vmem>>, %arg3: memref<1x8xf32, #tpu.memory_space<vmem>>, %arg4: memref<8x8xbf16, #tpu.memory_space<vmem>>, %arg5: memref<1x8xf32, #tpu.memory_space<vmem>>, %arg6: memref<64x8xbf16, #tpu.memory_space<vmem>>) attributes {dimension_semantics = [#tpu.dimension_semantics<parallel>], iteration_bounds = array<i64: 2>, scalar_prefetch = 0 : i64, scratch_operands = 0 : i64, tpu.core_type = #tpu.core_type<tc>, window_params = [{transform_indices = @transform_0, window_bounds = array<i64: 64, 8>}, {pipeline_mode = #tpu.pipeline_mode<synchronous>, transform_indices = @transform_1, window_bounds = array<i64: 1, 8>}, {pipeline_mode = #tpu.pipeline_mode<synchronous>, transform_indices = @transform_2, window_bounds = array<i64: 1, 8>}, {pipeline_mode = #tpu.pipeline_mode<synchronous>, transform_indices = @transform_3, window_bounds = array<i64: 8, 8>}, {pipeline_mode = #tpu.pipeline_mode<synchronous>, transform_indices = @transform_4, window_bounds = array<i64: 1, 8>}, {transform_indices = @transform_5, window_bounds = array<i64: 64, 8>}]} {
    %c0 = arith.constant 0 : index
    %c0_0 = arith.constant 0 : index
    %0 = vector.load %arg1[%c0, %c0_0] : memref<64x8xbf16, #tpu.memory_space<vmem>>, vector<64x8xbf16>
    %1 = arith.extf %0 : vector<64x8xbf16> to vector<64x8xf32>
    %c0_1 = arith.constant 0 : index
    %c0_2 = arith.constant 0 : index
    %2 = vector.load %arg2[%c0_1, %c0_2] : memref<1x8xf32, #tpu.memory_space<vmem>>, vector<1x8xf32>
    %3 = vector.broadcast %2 : vector<1x8xf32> to vector<64x8xf32>
    %4 = arith.mulf %1, %3 : vector<64x8xf32>
    %c0_3 = arith.constant 0 : index
    %c0_4 = arith.constant 0 : index
    %5 = vector.load %arg3[%c0_3, %c0_4] : memref<1x8xf32, #tpu.memory_space<vmem>>, vector<1x8xf32>
    %6 = vector.broadcast %5 : vector<1x8xf32> to vector<64x8xf32>
    %7 = arith.addf %4, %6 : vector<64x8xf32>
    %cst = arith.constant 0.000000e+00 : f32
    %8 = vector.broadcast %cst : f32 to vector<64x8xf32>
    %9 = arith.maximumf %7, %8 : vector<64x8xf32>
    %10 = arith.truncf %9 : vector<64x8xf32> to vector<64x8xbf16>
    %c0_5 = arith.constant 0 : index
    %c0_6 = arith.constant 0 : index
    %11 = vector.load %arg4[%c0_5, %c0_6] : memref<8x8xbf16, #tpu.memory_space<vmem>>, vector<8x8xbf16>
    %cst_7 = arith.constant dense<0.000000e+00> : vector<64x8xf32>
    %12 = tpu.matmul %10, %11, %cst_7 {dimension_numbers = #tpu.dot_dimension_numbers<[1], [0], [0], [1], [0, 0, 1, 1], [], []>} : vector<64x8xbf16>, vector<8x8xbf16>, vector<64x8xf32> -> vector<64x8xf32>
    %c0_8 = arith.constant 0 : index
    %c0_9 = arith.constant 0 : index
    %13 = vector.load %arg5[%c0_8, %c0_9] : memref<1x8xf32, #tpu.memory_space<vmem>>, vector<1x8xf32>
    %14 = vector.broadcast %13 : vector<1x8xf32> to vector<64x8xf32>
    %15 = arith.addf %12, %14 : vector<64x8xf32>
    %cst_10 = arith.constant 0.000000e+00 : f32
    %16 = vector.broadcast %cst_10 : f32 to vector<64x8xf32>
    %17 = arith.maximumf %15, %16 : vector<64x8xf32>
    %18 = arith.truncf %17 : vector<64x8xf32> to vector<64x8xbf16>
    %c0_11 = arith.constant 0 : index
    %c0_12 = arith.constant 0 : index
    %19 = vector.load %arg6[%c0_11, %c0_12] : memref<64x8xbf16, #tpu.memory_space<vmem>>, vector<64x8xbf16>
    tpu.vector_store %arg6[%c0_11, %c0_12], %18 {strides = array<i32>} : memref<64x8xbf16, #tpu.memory_space<vmem>>, vector<64x8xbf16>,
    return
  }
  func.func @transform_0(%arg0: i32) -> (i32, i32) {
    %c0_i32 = arith.constant 0 : i32
    %c0_i32_0 = arith.constant 0 : i32
    return %arg0, %c0_i32 : i32, i32
  }
  func.func @transform_1(%arg0: i32) -> (i32, i32) {
    %c0_i32 = arith.constant 0 : i32
    %c0_i32_0 = arith.constant 0 : i32
    %c0_i32_1 = arith.constant 0 : i32
    return %c0_i32, %c0_i32_0 : i32, i32
  }
  func.func @transform_2(%arg0: i32) -> (i32, i32) {
    %c0_i32 = arith.constant 0 : i32
    %c0_i32_0 = arith.constant 0 : i32
    %c0_i32_1 = arith.constant 0 : i32
    return %c0_i32, %c0_i32_0 : i32, i32
  }
  func.func @transform_3(%arg0: i32) -> (i32, i32) {
    %c0_i32 = arith.constant 0 : i32
    %c0_i32_0 = arith.constant 0 : i32
    %c0_i32_1 = arith.constant 0 : i32
    return %c0_i32, %c0_i32_0 : i32, i32
  }
  func.func @transform_4(%arg0: i32) -> (i32, i32) {
    %c0_i32 = arith.constant 0 : i32
    %c0_i32_0 = arith.constant 0 : i32
    %c0_i32_1 = arith.constant 0 : i32
    return %c0_i32, %c0_i32_0 : i32, i32
  }
  func.func @transform_5(%arg0: i32) -> (i32, i32) {
    %c0_i32 = arith.constant 0 : i32
    %c0_i32_0 = arith.constant 0 : i32
    return %arg0, %c0_i32 : i32, i32
  }
}

module attributes {stable_mosaic.version = 11 : i64} {
  func.func @_dense_kernel(%arg0: i32, %arg1: memref<4x256xbf16, #tpu.memory_space<vmem>>, %arg2: memref<256x8xbf16, #tpu.memory_space<vmem>>, %arg3: memref<1x8xf32, #tpu.memory_space<vmem>>, %arg4: memref<4x8xf32, #tpu.memory_space<vmem>>) attributes {dimension_semantics = [#tpu.dimension_semantics<parallel>], iteration_bounds = array<i64: 1>, scalar_prefetch = 0 : i64, scratch_operands = 0 : i64, tpu.core_type = #tpu.core_type<tc>, window_params = [{transform_indices = @transform_0, window_bounds = array<i64: 4, 256>}, {pipeline_mode = #tpu.pipeline_mode<synchronous>, transform_indices = @transform_1, window_bounds = array<i64: 256, 8>}, {pipeline_mode = #tpu.pipeline_mode<synchronous>, transform_indices = @transform_2, window_bounds = array<i64: 1, 8>}, {transform_indices = @transform_3, window_bounds = array<i64: 4, 8>}]} {
    %c0 = arith.constant 0 : index
    %c0_0 = arith.constant 0 : index
    %0 = vector.load %arg1[%c0, %c0_0] : memref<4x256xbf16, #tpu.memory_space<vmem>>, vector<4x256xbf16>
    %1 = arith.extf %0 : vector<4x256xbf16> to vector<4x256xf32>
    %2 = arith.truncf %1 : vector<4x256xf32> to vector<4x256xbf16>
    %c0_1 = arith.constant 0 : index
    %c0_2 = arith.constant 0 : index
    %3 = vector.load %arg2[%c0_1, %c0_2] : memref<256x8xbf16, #tpu.memory_space<vmem>>, vector<256x8xbf16>
    %cst = arith.constant dense<0.000000e+00> : vector<4x8xf32>
    %4 = tpu.matmul %2, %3, %cst {dimension_numbers = #tpu.dot_dimension_numbers<[1], [0], [0], [1], [0, 0, 1, 1], [], []>} : vector<4x256xbf16>, vector<256x8xbf16>, vector<4x8xf32> -> vector<4x8xf32>
    %c0_3 = arith.constant 0 : index
    %c0_4 = arith.constant 0 : index
    %5 = vector.load %arg3[%c0_3, %c0_4] : memref<1x8xf32, #tpu.memory_space<vmem>>, vector<1x8xf32>
    %6 = vector.broadcast %5 : vector<1x8xf32> to vector<4x8xf32>
    %7 = arith.addf %4, %6 : vector<4x8xf32>
    %c0_5 = arith.constant 0 : index
    %c0_6 = arith.constant 0 : index
    %8 = vector.load %arg4[%c0_5, %c0_6] : memref<4x8xf32, #tpu.memory_space<vmem>>, vector<4x8xf32>
    tpu.vector_store %arg4[%c0_5, %c0_6], %7 {strides = array<i32>} : memref<4x8xf32, #tpu.memory_space<vmem>>, vector<4x8xf32>,
    return
  }
  func.func @transform_0(%arg0: i32) -> (i32, i32) {
    %c0_i32 = arith.constant 0 : i32
    %c0_i32_0 = arith.constant 0 : i32
    return %arg0, %c0_i32 : i32, i32
  }
  func.func @transform_1(%arg0: i32) -> (i32, i32) {
    %c0_i32 = arith.constant 0 : i32
    %c0_i32_0 = arith.constant 0 : i32
    %c0_i32_1 = arith.constant 0 : i32
    return %c0_i32, %c0_i32_0 : i32, i32
  }
  func.func @transform_2(%arg0: i32) -> (i32, i32) {
    %c0_i32 = arith.constant 0 : i32
    %c0_i32_0 = arith.constant 0 : i32
    %c0_i32_1 = arith.constant 0 : i32
    return %c0_i32, %c0_i32_0 : i32, i32
  }
  func.func @transform_3(%arg0: i32) -> (i32, i32) {
    %c0_i32 = arith.constant 0 : i32
    %c0_i32_0 = arith.constant 0 : i32
    return %arg0, %c0_i32 : i32, i32
  }
}

</mosaic_0001>

<bundles_post_ra>
// kernel: unet_forward_pallas.18
= control target key start
LH: loop header
LB: loop body
LE: loop exit
PB: predicated region body
PF: predicated region fallthrough
CT: control target
= control target key end

     0   :  { %s409_s12 = smov 0   ;;  %s447_s0 = inlined_call_operand.vmem [shape: bf16[128,8], index: 0, kind: input, shape index: {}]   ;;  %s448_s1 = inlined_call_operand.vmem [shape: f32[1,8], index: 1, kind: input, shape index: {}]   ;;  %s449_s2 = inlined_call_operand.vmem [shape: f32[1,8], index: 2, kind: input, shape index: {}]   ;;  %s450_s3 = inlined_call_operand.vmem [shape: bf16[128,8], index: 3, kind: output, shape index: {}]  }
   0x1 LB: > { %s325_s13 = sadd.s32 4294967295, %s387_s12   ;;  %p329_p0 = scmp.ge.s32.totalorder %s387_s12, 1  ;;  %s387_s12 = sphi %s409_s12, %s13_s12  }
   0x2   : > { %p138_p1 = scmp.lt.s32.totalorder %s387_s12, 3 }
   0x4   : > { %p139_p2 = pnand %p329_p0, %p138_p1 }
   0x5   : > { %s330_s14 = sshll.u32 (!%p139_p2), %s325_s13, 3 }
   0x6   : > { %142 = sbr.rel (%p139_p2) target bundleno = 29 (0x1d), region = 32  ;;  %p163_p3 = scmp.lt.s32.totalorder (!%p139_p2), %s330_s14, 15 }
   0xb   : > { %s452_s14 = smov (!%p163_p3, %s330_s14), 15  ;;  %v334_v0 = vld [vmem:[%s448_s1] ss:$0 sm:$0xff]  ;;  %vm260_vm0 = vcmask 60416  }
   0xc   : > { %s331_s15 = sshll.u32 %s452_s14, 2  ;;  %v335_v9 = vld [vmem:[%s449_s2] ss:$0 sm:$0xff] }
   0xd   : > { %s166_s18 = scalar_lea.vmem %s447_s0, %s331_s15  ;;  %s172_s25 = scalar_lea.vmem %s450_s3, %s331_s15 }
   0xe   : > { %v355_v1 = vld [vmem:[%s166_s18] sm:$0xff]   ;;  %v370_v2 = vld [vmem:[%s166_s18 + $0x8] sm:$0xff]   ;;  %v371_v3 = vld [vmem:[%s166_s18 + $0x10] sm:$0xff]  }
   0xf   : > { %v356_v4 = vunpack.c.l.bf16 %v355_v1  ;;  %v357_v5 = vunpack.c.h.bf16 %v355_v1  ;;  %v360_v6 = vunpack.c.l.bf16 %v370_v2  ;;  %v361_v7 = vunpack.c.h.bf16 %v370_v2  ;;  %v372_v8 = vld [vmem:[%s166_s18 + $0x18] sm:$0xff]  }
  0x10   : > { %v364_v10 = vunpack.c.l.bf16 %v371_v3  ;;  %v365_v11 = vunpack.c.h.bf16 %v371_v3  ;;  %v368_v12 = vunpack.c.l.bf16 %v372_v8  ;;  %v369_v13 = vunpack.c.h.bf16 %v372_v8 }
  0x11   : > { %v197_v14 = vmul.f32 %v356_v4, %v334_v0  ;;  %v198_v15 = vmul.f32 %v357_v5, %v334_v0  ;;  %v199_v16 = vmul.f32 %v360_v6, %v334_v0  ;;  %v200_v17 = vmul.f32 %v361_v7, %v334_v0 }
  0x12   : > { %v201_v18 = vmul.f32 %v364_v10, %v334_v0  ;;  %v202_v19 = vmul.f32 %v365_v11, %v334_v0  ;;  %v203_v20 = vmul.f32 %v368_v12, %v334_v0  ;;  %v204_v21 = vmul.f32 %v369_v13, %v334_v0 }
  0x13   : > { %v212_v22 = vadd.f32 %v335_v9, %v197_v14  ;;  %v213_v23 = vadd.f32 %v335_v9, %v198_v15  ;;  %v214_v24 = vadd.f32 %v335_v9, %v199_v16  ;;  %v215_v25 = vadd.f32 %v335_v9, %v200_v17 }
  0x14   : > { %v216_v26 = vadd.f32 %v335_v9, %v201_v18  ;;  %v217_v27 = vadd.f32 %v335_v9, %v202_v19  ;;  %v218_v28 = vadd.f32 %v335_v9, %v203_v20  ;;  %v219_v29 = vadd.f32 %v335_v9, %v204_v21 }
  0x15   : > { %v220_v30 = vmax.f32 %v212_v22, 0.0  ;;  %v221_v31 = vmax.f32 %v213_v23, 0.0  ;;  %v222_v32 = vmax.f32 %v214_v24, 0.0  ;;  %v223_v33 = vmax.f32 %v215_v25, 0.0 }
  0x16   : > { %v224_v34 = vmax.f32 %v216_v26, 0.0  ;;  %v225_v35 = vmax.f32 %v217_v27, 0.0  ;;  %v226_v36 = vmax.f32 %v218_v28, 0.0  ;;  %v227_v37 = vmax.f32 %v219_v29, 0.0 }
  0x17   : > { %v346_v38 = vpack.c.bf16 %v220_v30, %v220_v30  ;;  %v347_v39 = vpack.c.bf16 %v221_v31, %v221_v31  ;;  %v348_v40 = vpack.c.bf16 %v222_v32, %v222_v32  ;;  %v349_v41 = vpack.c.bf16 %v223_v33, %v223_v33 }
  0x18   : > { %v350_v42 = vpack.c.bf16 %v224_v34, %v224_v34  ;;  %v351_v43 = vpack.c.bf16 %v225_v35, %v225_v35  ;;  %v352_v44 = vpack.c.bf16 %v226_v36, %v226_v36  ;;  %v353_v45 = vpack.c.bf16 %v227_v37, %v227_v37 }
  0x19   : > { %261 = vst.msk [vmem:[%s172_s25] sm:$0xf] %vm260_vm0, %v346_v38  ;;  %262 = vst.msk [vmem:[%s172_s25 + $0x4] sm:$0xf] %vm260_vm0, %v347_v39 }
  0x1a   : > { %263 = vst.msk [vmem:[%s172_s25 + $0x8] sm:$0xf] %vm260_vm0, %v348_v40  ;;  %264 = vst.msk [vmem:[%s172_s25 + $0xc] sm:$0xf] %vm260_vm0, %v349_v41 }
  0x1b   : > { %265 = vst.msk [vmem:[%s172_s25 + $0x10] sm:$0xf] %vm260_vm0, %v350_v42  ;;  %266 = vst.msk [vmem:[%s172_s25 + $0x14] sm:$0xf] %vm260_vm0, %v351_v43 }
  0x1c   : > { %267 = vst.msk [vmem:[%s172_s25 + $0x18] sm:$0xf] %vm260_vm0, %v352_v44  ;;  %268 = vst.msk [vmem:[%s172_s25 + $0x1c] sm:$0xf] %vm260_vm0, %v353_v45 }
  0x1d PF: > { %s13_s12 = sadd.s32 1, %s387_s12  }
  0x1e   : > { %p10_p4 = scmp.ge.s32.totalorder %s13_s12, 4  }
  0x20   :  { %12 = sbr.rel (!%p10_p4) target bundleno = 1 (0x1), region = 62 }

// kernel: unet_forward_pallas.17
= control target key start
LH: loop header
LB: loop body
LE: loop exit
PB: predicated region body
PF: predicated region fallthrough
CT: control target
= control target key end

     0   :  { %s995_s18 = smov 0   ;;  %s1137_s0 = inlined_call_operand.vmem [shape: bf16[128,8], index: 0, kind: input, shape index: {}]   ;;  %s1138_s1 = inlined_call_operand.vmem [shape: f32[1,8], index: 1, kind: input, shape index: {}]   ;;  %s1139_s2 = inlined_call_operand.vmem [shape: f32[1,8], index: 2, kind: input, shape index: {}]   ;;  %s1140_s3 = inlined_call_operand.vmem [shape: bf16[24,8], index: 3, kind: input, shape index: {}]   ;;  %s1141_s4 = inlined_call_operand.vmem [shape: bf16[128,8], index: 4, kind: output, shape index: {0}]   ;;  %s1142_s5 = inlined_call_operand.vmem [shape: f32[2,2,8], index: 5, kind: output, shape index: {1}]  }
   0x1 LB: > { %s1001_s19 = sadd.s32 4294967295, %s960_s18   ;;  %p862_p0 = scmp.ge.s32.totalorder %s960_s18, 1  ;;  %s960_s18 = sphi %s995_s18, %s16_s18  }
   0x2   : > { %p191_p1 = scmp.lt.s32.totalorder %s960_s18, 3 }
   0x4   : > { %p192_p2 = pnand %p862_p0, %p191_p1 }
   0x5   : > { %s863_s20 = sshll.u32 (!%p192_p2), %s1001_s19, 3  ;;  %s963_s8 = smov (!%p192_p2), 8  }
   0x6   : > { %195 = sbr.rel (%p192_p2) target bundleno = 387 (0x183), region = 36  ;;  %p224_p3 = scmp.lt.s32.totalorder (!%p192_p2), %s863_s20, 15 }
   0x7   : > { %s964_s9 = smov (!%p192_p2), 16   ;;  %p235_p4 = scmp.lt.s32.totalorder (!%p192_p2), %s1001_s19, 1 }
   0xb   : > { %v294_v0 = vlaneseq  ;;  %s1146_s20 = smov (!%p224_p3, %s863_s20), 15  ;;  %v952_v4 = vld [vmem:[%s1140_s3 + $0x8] ss:$0 sps:$4 sm:$0xff]   ;;  %vm600_vm0 = vcmask 1043456   ;;  %v868_v6 = vld [vmem:[%s1138_s1] ss:$0 sm:$0xff] }
   0xc   : > { %s864_s23 = sshll.u32 %s1146_s20, 2  ;;  %939 = vmatprep.subr.msk.bf16.mxu0 %vm600_vm0, %v952_v4  ;;  %v602_v7 = vsel %vm600_vm0, %v952_v4, 0  ;;  %940 = vmatprep.subr.msk.bf16.mxu1 %vm600_vm0, %v952_v4  ;;  %v962_v12 = vmov 0.0   ;;  %vm488_vm2 = vcmask 1046528   ;;  %v953_v19 = vld [vmem:[%s1140_s3] sm:$0xff]   ;;  %vm455_vm4 = vcmask 1040384  }
   0xd   : > { %v1006_v1 = vshrl.u32 %v294_v0, 7  ;;  %s227_s26 = scalar_lea.vmem %s1137_s0, %s864_s23  ;;  %924 = vmatpush3.bf16.msra.mxu0 %v602_v7  ;;  %937 = vmatpush3.bf16.msra.mxu1 %v602_v7  ;;  %v869_v20 = vld [vmem:[%s1139_s2] ss:$0 sm:$0xff]  ;;  %vm560_vm7 = vcmask 64512   ;;  %vm573_vm8 = vcmask 130048   ;;  %vm591_vm9 = vcmask 195584   ;;  %s1094_s12 = scalar_lea.vmem %s1141_s4, %s864_s23 }
   0xe   : > { %v899_v8 = vld [vmem:[%s227_s26] sm:$0xff]   ;;  %v915_v9 = vld [vmem:[%s227_s26 + $0x10] sm:$0xff]   ;;  %v914_v10 = vld [vmem:[%s227_s26 + $0x8] sm:$0xff]   ;;  %925 = vmatprep.subr.bf16.mxu0 %v953_v19  ;;  %936 = vmatprep.subr.bf16.mxu1 %v953_v19  ;;  %vm701_vm10 = vcmask 60416   ;;  %s1148_s19 = smov (!%p235_p4, %s1001_s19), 1  ;;  %vm769_vm11 = vcmask 58368  }
   0xf   : > { %v298_v2 = vadd.s32 24, %v1006_v1  ;;  %v307_v3 = vand.u32 31, %v1006_v1  ;;  %v1017_v5 = vadd.s32 56, %v1006_v1  ;;  %v900_v14 = vunpack.c.l.bf16 %v899_v8  ;;  %v916_v18 = vld [vmem:[%s227_s26 + $0x18] sm:$0xff]   ;;  %s867_s13 = sshll.u32 %s1148_s19, 1 }
  0x10   : > { %v901_v15 = vunpack.c.h.bf16 %v899_v8  ;;  %v904_v16 = vunpack.c.l.bf16 %v914_v10  ;;  %v905_v17 = vunpack.c.h.bf16 %v914_v10  ;;  %v908_v21 = vunpack.c.l.bf16 %v915_v9  ;;  %s238_s16 = scalar_lea.vmem %s1142_s5, %s867_s13 }
  0x11   : > { %vm399_vm1 = vcmp.ne.s32.totalorder %v307_v3, 0  ;;  %v328_v11 = vand.u32 31, %v298_v2  ;;  %v909_v22 = vunpack.c.h.bf16 %v915_v9  ;;  %v912_v23 = vunpack.c.l.bf16 %v916_v18  ;;  %926 = vmatpush3.bf16.msra.mxu0 %v953_v19  ;;  %938 = vmatpush3.bf16.msra.mxu1 %v953_v19 }
  0x12   : > { %v1028_v13 = vsel %vm399_vm1, 1.0, %v962_v12  ;;  %v356_v24 = vand.u32 31, %v1017_v5  ;;  %v263_v25 = vmul.f32 %v900_v14, %v868_v6  ;;  %v264_v26 = vmul.f32 %v901_v15, %v868_v6 }
  0x13   : > { %v265_v27 = vmul.f32 %v904_v16, %v868_v6  ;;  %v266_v28 = vmul.f32 %v905_v17, %v868_v6  ;;  %v267_v29 = vmul.f32 %v908_v21, %v868_v6  ;;  %vm1037_vm3 = vcmp.ne.s32.totalorder %v328_v11, 31 }
  0x14   : > { %v268_v31 = vmul.f32 %v909_v22, %v868_v6  ;;  %v913_v32 = vunpack.c.h.bf16 %v916_v18  ;;  %v278_v33 = vadd.f32 %v869_v20, %v263_v25  ;;  %v279_v34 = vadd.f32 %v869_v20, %v264_v26 }
  0x15   : > { %v280_v35 = vadd.f32 %v869_v20, %v265_v27  ;;  %v281_v36 = vadd.f32 %v869_v20, %v266_v28  ;;  %v282_v37 = vadd.f32 %v869_v20, %v267_v29  ;;  %v269_v39 = vmul.f32 %v912_v23, %v868_v6 }
  0x16   : > { %v283_v38 = vadd.f32 %v869_v20, %v268_v31  ;;  %v270_v40 = vmul.f32 %v913_v32, %v868_v6  ;;  %v286_v41 = vmax.f32 %v278_v33, 0.0  ;;  %v287_v42 = vmax.f32 %v279_v34, 0.0 }
  0x17   : > { %v288_v43 = vmax.f32 %v280_v35, 0.0  ;;  %v289_v44 = vmax.f32 %v281_v36, 0.0  ;;  %v290_v45 = vmax.f32 %v282_v37, 0.0  ;;  %v284_v47 = vadd.f32 %v869_v20, %v269_v39 }
  0x18   : > { %v1041_v46 = vmax.f32 %v283_v38, 0.0  ;;  %v285_v48 = vadd.f32 %v869_v20, %v270_v40  ;;  %v457_v49 = vrot.slane %v287_v42, 7  ;;  %v528_v50 = vpack.c.bf16 %v287_v42, %v286_v41 }
  0x19   : > { %v489_v51 = vrot.slane %v286_v41, 1  ;;  %v872_v52 = vsel %vm1037_vm3, 1.0, %v962_v12  ;;  %v456_v53 = vrot.slane %v286_v41, 7  ;;  %v490_v54 = vrot.slane %v287_v42, 1 }
  0x1a   : > { %v492_v55 = vrot.slane %v288_v43, 1  ;;  %v494_v56 = vrot.slane %v289_v44, 1  ;;  %540 = vrot.lane.b32.xlu0 %v528_v50, %s963_s8  ;;  %v529_v57 = vpack.c.bf16 %v289_v44, %v288_v43  ;;  %v496_v58 = vrot.slane %v290_v45, 1 }
  0x1b   : > { %v292_v59 = vmax.f32 %v284_v47, 0.0  ;;  %v293_v60 = vmax.f32 %v285_v48, 0.0  ;;  %v491_v61 = vsel %vm488_vm2, %v489_v51, %v490_v54  ;;  %v498_v63 = vrot.slane %v1041_v46, 1 }
  0x1c   : > { %v493_v62 = vsel %vm488_vm2, %v490_v54, %v492_v55  ;;  %v299_v0 = vadd.s32 32, %v1006_v1  ;;  %v495_v3 = vsel %vm488_vm2, %v492_v55, %v494_v56  ;;  %v497_v4 = vsel %vm488_vm2, %v494_v56, %v496_v58 }
  0x1d   : > { %v532_v2 = vpack.c.bf16 %v493_v62, %v491_v61  ;;  %v500_v5 = vrot.slane %v292_v59, 1  ;;  %v516_v6 = vmul.f32 %v872_v52, %v497_v4  ;;  %v530_v7 = vpack.c.bf16 %v1041_v46, %v290_v45 }
  0x1e   : > { %vm430_vm5 = vcmp.ne.s32.totalorder %v356_v24, 31  ;;  %v502_v8 = vrot.slane %v293_v60, 1  ;;  %542 = vrot.lane.b32.xlu0 %v529_v57, %s963_s8  ;;  %v499_v9 = vsel %vm488_vm2, %v496_v58, %v498_v63  ;;  %v458_v10 = vsel %vm455_vm4, %v456_v53, %v457_v49 }
  0x1f   : > { %552 = vrot.lane.b32.xlu1 %v532_v2, %s964_s9  ;;  %v501_v1 = vsel %vm488_vm2, %v498_v63, %v500_v5  ;;  %v479_v11 = vsel %vm455_vm4, 0.0, %v456_v53  ;;  %v533_v14 = vpack.c.bf16 %v516_v6, %v495_v3  ;;  %v873_v15 = vsel %vm430_vm5, 1.0, %v962_v12 }
  0x20   : > { %v512_v16 = vsel %vm488_vm2, %v502_v8, 0.0  ;;  %v531_v17 = vpack.c.bf16 %v293_v60, %v292_v59  ;;  %v480_v18 = vmul.f32 %v1028_v13, %v479_v11  ;;  %v459_v19 = vrot.slane %v288_v43, 7 }
  0x21   : > { %v461_v20 = vrot.slane %v289_v44, 7  ;;  %v534_v21 = vpack.c.bf16 %v501_v1, %v499_v9  ;;  %v503_v22 = vsel %vm488_vm2, %v500_v5, %v502_v8  ;;  %v335_v23 = vand.u32 31, %v299_v0 }
  0x22   : > { %v463_v24 = vrot.slane %v290_v45, 7  ;;  %544 = vrot.lane.b32.xlu0 %v530_v7, %s963_s8  ;;  %v520_v25 = vmul.f32 %v873_v15, %v512_v16  ;;  %v524_v26 = vpack.c.bf16 %v458_v10, %v480_v18  ;;  %v460_v27 = vsel %vm455_vm4, %v457_v49, %v459_v19 }
  0x23   : > { %554 = vrot.lane.b32.xlu1 %v533_v14, %s964_s9  ;;  %v465_v28 = vrot.slane %v1041_v46, 7  ;;  %v462_v29 = vsel %vm455_vm4, %v459_v19, %v461_v20  ;;  %vm403_vm6 = vcmp.ne.s32.totalorder %v335_v23, 0  ;;  %v467_v30 = vrot.slane %v292_v59, 7 }
  0x24   : > { %v464_v13 = vsel %vm455_vm4, %v461_v20, %v463_v24  ;;  %v525_v31 = vpack.c.bf16 %v462_v29, %v460_v27  ;;  %v871_v32 = vsel %vm403_vm6, 1.0, %v962_v12  ;;  %v469_v34 = vrot.slane %v293_v60, 7 }
  0x25   : > { %v466_v33 = vsel %vm455_vm4, %v463_v24, %v465_v28  ;;  %v484_v35 = vmul.f32 %v871_v32, %v464_v13  ;;  %v468_v36 = vsel %vm455_vm4, %v465_v28, %v467_v30  ;;  %v535_v37 = vpack.c.bf16 %v520_v25, %v503_v22 }
  0x26   : > { %556 = vrot.lane.b32.xlu0 %v534_v21, %s964_s9  ;;  %v470_v38 = vsel %vm455_vm4, %v467_v30, %v469_v34 }
  0x27   : > { %546 = vrot.lane.b32.xlu1 %v531_v17, %s963_s8  ;;  %v526_v39 = vpack.c.bf16 %v466_v33, %v484_v35  ;;  %v527_v40 = vpack.c.bf16 %v470_v38, %v468_v36 }
  0x2b   : > { %558 = vrot.lane.b32.xlu1 %v535_v37, %s964_s9 }
  0x8c   : > { %v541_v41 = vpop.permute.xlu0 %540 }
  0x8d   : > { %v563_v12 = vsel %vm560_vm7, %v524_v26, %v541_v41 }
  0x90   : > { %v543_v43 = vpop.permute.xlu0 %542 }
  0x91   : > { %v553_v42 = vpop.permute.xlu1 %552  ;;  %v566_v45 = vsel %vm560_vm7, %v525_v31, %v543_v43 }
  0x92   : > { %v575_v44 = vsel %vm573_vm8, %v563_v12, %v553_v42 }
  0x93   : > { %927 = vmatprep.mubr.msk.bf16.mxu0 %vm591_vm9, %v575_v44 }
  0x94   : > { %v545_v47 = vpop.permute.xlu0 %544 }
  0x95   : > { %v555_v46 = vpop.permute.xlu1 %554  ;;  %v569_v49 = vsel %vm560_vm7, %v526_v39, %v545_v47 }
  0x96   : > { %v577_v48 = vsel %vm573_vm8, %v566_v45, %v555_v46 }
  0x97   : > { %928 = vmatmul.mubr.msk.bf16.vlgmr.msra.gmra.mxu0 %vm591_vm9, %v577_v48 }
  0x98   : > { %v557_v51 = vpop.permute.xlu0 %556 }
  0x99   : > { %v547_v50 = vpop.permute.xlu1 %546  ;;  %v579_v52 = vsel %vm573_vm8, %v569_v49, %v557_v51 }
  0x9a   : > { %931 = vmatprep.mubr.msk.bf16.mxu1 %vm591_vm9, %v579_v52  ;;  %v572_v53 = vsel %vm560_vm7, %v527_v40, %v547_v50 }
  0x9d   : > { %v559_v54 = vpop.permute.xlu1 %558 }
  0x9e   : > { %v581_v55 = vsel %vm573_vm8, %v572_v53, %v559_v54 }
  0x9f   : > { %932 = vmatmul.mubr.msk.bf16.vlgmr.msra.gmra.mxu1 %vm591_vm9, %v581_v55 }
 0x157   : > { %v929_v56 = vpop.f32.mrf.mxu0 }
 0x158   : > { %v892_v57 = vpack.c.bf16 %v929_v56, %v929_v56 }
 0x159   : > { %v638_v58 = vpop.f32.mrf.mxu0 }
 0x15a   : > { %704 = vst.msk [vmem:[%s1094_s12 + $0x8] sm:$0xf] %vm701_vm10, %v892_v57  ;;  %v890_v59 = vpack.c.bf16 %v638_v58, %v638_v58 }
 0x15b   : > { %v930_v60 = vpop.f32.mrf.mxu0 }
 0x15c   : > { %702 = vst.msk [vmem:[%s1094_s12] sm:$0xf] %vm701_vm10, %v890_v59  ;;  %v670_v61 = vpack.c.bf16 %v930_v60, %v929_v56  ;;  %v893_v62 = vpack.c.bf16 %v930_v60, %v930_v60 }
 0x15d   : > { %v641_v63 = vpop.f32.mrf.mxu0 }
 0x15e   : > { %705 = vst.msk [vmem:[%s1094_s12 + $0xc] sm:$0xf] %vm701_vm10, %v893_v62  ;;  %v712_v0 = vunpack.c.l.bf16 %v670_v61  ;;  %v669_v2 = vpack.c.bf16 %v641_v63, %v638_v58  ;;  %v891_v3 = vpack.c.bf16 %v641_v63, %v641_v63  ;;  %v713_v9 = vunpack.c.h.bf16 %v670_v61 }
 0x15f   : > { %v933_v4 = vpop.f32.mrf.mxu1 }
 0x160   : > { %703 = vst.msk [vmem:[%s1094_s12 + $0x4] sm:$0xf] %vm701_vm10, %v891_v3  ;;  %v710_v5 = vunpack.c.l.bf16 %v669_v2  ;;  %v711_v6 = vunpack.c.h.bf16 %v669_v2  ;;  %v896_v7 = vpack.c.bf16 %v933_v4, %v933_v4  ;;  %v741_v1 = vmul.f32 %v712_v0, %v712_v0 }
 0x161   : > { %v654_v8 = vpop.f32.mrf.mxu1  ;;  %v721_v20 = vsel %vm560_vm7, %v712_v0, 0.0  ;;  %v742_v27 = vmul.f32 %v713_v9, %v713_v9  ;;  %v723_v31 = vsel %vm560_vm7, %v713_v9, 0.0 }
 0x162   : > { %v894_v10 = vpack.c.bf16 %v654_v8, %v654_v8  ;;  %v718_v11 = vsel %vm560_vm7, %v710_v5, 0.0  ;;  %v719_v14 = vsel %vm560_vm7, %v711_v6, 0.0  ;;  %v739_v15 = vmul.f32 %v710_v5, %v710_v5  ;;  %708 = vst.msk [vmem:[%s1094_s12 + $0x18] sm:$0xf] %vm701_vm10, %v896_v7 }
 0x163   : > { %v740_v16 = vmul.f32 %v711_v6, %v711_v6  ;;  %v934_v17 = vpop.f32.mrf.mxu1  ;;  %v720_v18 = vadd.f32 %v719_v14, %v718_v11  ;;  %v750_v28 = vsel %vm560_vm7, %v741_v1, 0.0  ;;  %v752_v36 = vsel %vm560_vm7, %v742_v27, 0.0 }
 0x164   : > { %706 = vst.msk [vmem:[%s1094_s12 + $0x10] sm:$0xf] %vm701_vm10, %v894_v10  ;;  %v897_v19 = vpack.c.bf16 %v934_v17, %v934_v17  ;;  %v747_v21 = vsel %vm560_vm7, %v739_v15, 0.0  ;;  %v672_v23 = vpack.c.bf16 %v934_v17, %v933_v4 }
 0x165   : > { %v748_v22 = vsel %vm560_vm7, %v740_v16, 0.0  ;;  %v657_v24 = vpop.f32.mrf.mxu1  ;;  %v722_v25 = vadd.f32 %v721_v20, %v720_v18 }
 0x166   : > { %v749_v26 = vadd.f32 %v748_v22, %v747_v21  ;;  %709 = vst.msk [vmem:[%s1094_s12 + $0x1c] sm:$0xf] %vm701_vm10, %v897_v19  ;;  %v671_v29 = vpack.c.bf16 %v657_v24, %v654_v8  ;;  %v895_v13 = vpack.c.bf16 %v657_v24, %v657_v24  ;;  %v716_v32 = vunpack.c.l.bf16 %v672_v23 }
 0x167   : > { %v724_v35 = vadd.f32 %v723_v31, %v722_v25  ;;  %v717_v37 = vunpack.c.h.bf16 %v672_v23 }
 0x168   : > { %v751_v30 = vadd.f32 %v750_v28, %v749_v26  ;;  %707 = vst.msk [vmem:[%s1094_s12 + $0x14] sm:$0xf] %vm701_vm10, %v895_v13  ;;  %v714_v33 = vunpack.c.l.bf16 %v671_v29  ;;  %v715_v34 = vunpack.c.h.bf16 %v671_v29  ;;  %v745_v42 = vmul.f32 %v716_v32, %v716_v32 }
 0x169   : > { %v729_v47 = vsel %vm560_vm7, %v716_v32, 0.0  ;;  %v746_v48 = vmul.f32 %v717_v37, %v717_v37  ;;  %v731_v52 = vsel %vm560_vm7, %v717_v37, 0.0 }
 0x16a   : > { %v725_v38 = vsel %vm560_vm7, %v714_v33, 0.0  ;;  %v743_v39 = vmul.f32 %v714_v33, %v714_v33  ;;  %v744_v41 = vmul.f32 %v715_v34, %v715_v34  ;;  %v753_v12 = vadd.f32 %v752_v36, %v751_v30 }
 0x16b   : > { %v726_v40 = vadd.f32 %v725_v38, %v724_v35  ;;  %v727_v43 = vsel %vm560_vm7, %v715_v34, 0.0  ;;  %v758_v53 = vsel %vm560_vm7, %v745_v42, 0.0  ;;  %v760_v56 = vsel %vm560_vm7, %v746_v48, 0.0 }
 0x16c   : > { %v754_v44 = vsel %vm560_vm7, %v743_v39, 0.0  ;;  %v756_v49 = vsel %vm560_vm7, %v744_v41, 0.0 }
 0x16d   : > { %v728_v45 = vadd.f32 %v727_v43, %v726_v40  ;;  %v755_v46 = vadd.f32 %v754_v44, %v753_v12 }
 0x16f   : > { %v730_v50 = vadd.f32 %v729_v47, %v728_v45  ;;  %v757_v51 = vadd.f32 %v756_v49, %v755_v46 }
 0x171   : > { %v732_v54 = vadd.f32 %v731_v52, %v730_v50  ;;  %v759_v55 = vadd.f32 %v758_v53, %v757_v51 }
 0x173   : > { %v733_v57 = vrot.slane %v732_v54, 4  ;;  %v761_v58 = vadd.f32 %v760_v56, %v759_v55 }
 0x175   : > { %v734_v59 = vadd.f32 %v733_v57, %v732_v54  ;;  %v762_v60 = vrot.slane %v761_v58, 4 }
 0x177   : > { %v735_v61 = vrot.slane %v734_v59, 2  ;;  %v763_v62 = vadd.f32 %v762_v60, %v761_v58 }
 0x179   : > { %v736_v63 = vadd.f32 %v735_v61, %v734_v59  ;;  %v764_v0 = vrot.slane %v763_v62, 2 }
 0x17b   : > { %v737_v2 = vrot.slane %v736_v63, 1  ;;  %v765_v3 = vadd.f32 %v764_v0, %v763_v62 }
 0x17d   : > { %v766_v4 = vrot.slane %v765_v3, 1  ;;  %v738_v5 = vadd.f32 %v737_v2, %v736_v63 }
 0x17f   : > { %v767_v6 = vadd.f32 %v766_v4, %v765_v3 }
 0x181   : > { %v768_v7 = vsel %vm455_vm4, %v738_v5, %v767_v6 }
 0x182   : > { %770 = vst.msk [vmem:[%s238_s16] sm:$0x3] %vm769_vm11, %v768_v7 }
 0x183 PF: > { %s16_s18 = sadd.s32 1, %s960_s18  }
 0x184   : > { %p13_p5 = scmp.ge.s32.totalorder %s16_s18, 4  }
 0x186   :  { %15 = sbr.rel (!%p13_p5) target bundleno = 1 (0x1), region = 78 }

// kernel: unet_forward_pallas.16
= control target key start
LH: loop header
LB: loop body
LE: loop exit
PB: predicated region body
PF: predicated region fallthrough
CT: control target
= control target key end

     0   :  { %s864_s12 = smov 0   ;;  %s986_s0 = inlined_call_operand.vmem [shape: f32[128,8], index: 0, kind: input, shape index: {}]   ;;  %s987_s1 = inlined_call_operand.vmem [shape: bf16[24,8], index: 1, kind: input, shape index: {}]   ;;  %s988_s2 = inlined_call_operand.vmem [shape: bf16[128,8], index: 2, kind: output, shape index: {0}]   ;;  %s989_s3 = inlined_call_operand.vmem [shape: f32[2,2,8], index: 3, kind: output, shape index: {1}]  }
   0x1 LB: > { %s870_s13 = sadd.s32 4294967295, %s839_s12   ;;  %p762_p0 = scmp.ge.s32.totalorder %s839_s12, 1  ;;  %s839_s12 = sphi %s864_s12, %s14_s12  }
   0x2   : > { %p141_p1 = scmp.lt.s32.totalorder %s839_s12, 3 }
   0x4   : > { %p142_p2 = pnand %p762_p0, %p141_p1 }
   0x5   : > { %s763_s14 = sshll.u32 (!%p142_p2), %s870_s13, 3  ;;  %s842_s23 = smov (!%p142_p2), 8  }
   0x6   : > { %145 = sbr.rel (%p142_p2) target bundleno = 379 (0x17b), region = 28  ;;  %p170_p3 = scmp.lt.s32.totalorder (!%p142_p2), %s763_s14, 15 }
   0x7   : > { %s843_s24 = smov (!%p142_p2), 16   ;;  %p181_p4 = scmp.lt.s32.totalorder (!%p142_p2), %s870_s13, 1 }
   0xb   : > { %v194_v0 = vlaneseq  ;;  %vm500_vm0 = vcmask 1043456   ;;  %v831_v2 = vld [vmem:[%s987_s1 + $0x8] ss:$0 sps:$4 sm:$0xff]   ;;  %v832_v3 = vld [vmem:[%s987_s1] sm:$0xff]   ;;  %s991_s14 = smov (!%p170_p3, %s763_s14), 15  ;;  %vm355_vm1 = vcmask 1040384  }
   0xc   : > { %818 = vmatprep.subr.msk.bf16.mxu0 %vm500_vm0, %v831_v2  ;;  %v502_v7 = vsel %vm500_vm0, %v831_v2, 0  ;;  %819 = vmatprep.subr.msk.bf16.mxu1 %vm500_vm0, %v831_v2  ;;  %s764_s19 = sshll.u32 %s991_s14, 3  ;;  %vm388_vm2 = vcmask 1046528   ;;  %v841_v14 = vmov 0.0   ;;  %vm460_vm7 = vcmask 64512   ;;  %s766_s25 = sshll.u32 %s991_s14, 2 }
   0xd   : > { %v195_v1 = vshrl.u32 %v194_v0, 7  ;;  %803 = vmatpush3.bf16.msra.mxu0 %v502_v7  ;;  %816 = vmatpush3.bf16.msra.mxu1 %v502_v7  ;;  %s891_s22 = scalar_lea.vmem %s986_s0, %s764_s19  ;;  %vm473_vm8 = vcmask 130048   ;;  %vm491_vm9 = vcmask 195584   ;;  %s943_s28 = scalar_lea.vmem %s988_s2, %s766_s25  ;;  %vm601_vm10 = vcmask 60416  }
   0xe   : > { %804 = vmatprep.subr.bf16.mxu0 %v832_v3  ;;  %815 = vmatprep.subr.bf16.mxu1 %v832_v3  ;;  %v186_v10 = vld [vmem:[%s891_s22] sm:$0xff]  ;;  %v187_v11 = vld [vmem:[%s891_s22 + $0x8] sm:$0xff]  ;;  %v188_v12 = vld [vmem:[%s891_s22 + $0x10] sm:$0xff]  ;;  %s993_s13 = smov (!%p181_p4, %s870_s13), 1  ;;  %vm669_vm11 = vcmask 58368  }
   0xf   : > { %v198_v4 = vadd.s32 24, %v195_v1  ;;  %v883_v5 = vadd.s32 56, %v195_v1  ;;  %v207_v6 = vand.u32 31, %v195_v1  ;;  %v886_v8 = vadd.s32 32, %v195_v1  ;;  %v189_v21 = vld [vmem:[%s891_s22 + $0x18] sm:$0xff]  ;;  %v190_v22 = vld [vmem:[%s891_s22 + $0x20] sm:$0xff] }
  0x10   : > { %v357_v17 = vrot.slane %v187_v11, 7  ;;  %v390_v18 = vrot.slane %v187_v11, 1  ;;  %v428_v19 = vpack.c.bf16 %v187_v11, %v186_v10  ;;  %v356_v20 = vrot.slane %v186_v10, 7  ;;  %v191_v27 = vld [vmem:[%s891_s22 + $0x28] sm:$0xff]  ;;  %v192_v35 = vld [vmem:[%s891_s22 + $0x30] sm:$0xff]  ;;  %v193_v36 = vld [vmem:[%s891_s22 + $0x38] sm:$0xff] }
  0x11   : > { %v228_v9 = vand.u32 31, %v198_v4  ;;  %vm299_vm3 = vcmp.ne.s32.totalorder %v207_v6, 0  ;;  %v256_v13 = vand.u32 31, %v883_v5  ;;  %v235_v16 = vand.u32 31, %v886_v8  ;;  %805 = vmatpush3.bf16.msra.mxu0 %v832_v3  ;;  %817 = vmatpush3.bf16.msra.mxu1 %v832_v3  ;;  %s767_s29 = sshll.u32 %s993_s13, 1 }
  0x12   : > { %v768_v15 = vsel %vm299_vm3, 1.0, %v841_v14  ;;  %v389_v23 = vrot.slane %v186_v10, 1  ;;  %v359_v24 = vrot.slane %v188_v12, 7  ;;  %v392_v25 = vrot.slane %v188_v12, 1  ;;  %440 = vrot.lane.b32.xlu0 %v428_v19, %s842_s23  ;;  %s184_s5 = scalar_lea.vmem %s989_s3, %s767_s29 }
  0x13   : > { %v361_v26 = vrot.slane %v189_v21, 7  ;;  %v379_v28 = vsel %vm355_vm1, 0.0, %v356_v20  ;;  %v394_v29 = vrot.slane %v189_v21, 1  ;;  %v429_v30 = vpack.c.bf16 %v189_v21, %v188_v12 }
  0x14   : > { %vm326_vm4 = vcmp.ne.s32.totalorder %v228_v9, 31  ;;  %v391_v31 = vsel %vm388_vm2, %v389_v23, %v390_v18  ;;  %v393_v32 = vsel %vm388_vm2, %v390_v18, %v392_v25  ;;  %v396_v34 = vrot.slane %v190_v22, 1 }
  0x15   : > { %v770_v33 = vsel %vm326_vm4, 1.0, %v841_v14  ;;  %v432_v37 = vpack.c.bf16 %v393_v32, %v391_v31  ;;  %v395_v38 = vsel %vm388_vm2, %v392_v25, %v394_v29  ;;  %v365_v39 = vrot.slane %v191_v27, 7 }
  0x16   : > { %v398_v40 = vrot.slane %v191_v27, 1  ;;  %v397_v41 = vsel %vm388_vm2, %v394_v29, %v396_v34  ;;  %v430_v42 = vpack.c.bf16 %v191_v27, %v190_v22  ;;  %v367_v43 = vrot.slane %v192_v35, 7  ;;  %442 = vrot.lane.b32.xlu0 %v429_v30, %s842_s23 }
  0x17   : > { %v369_v44 = vrot.slane %v193_v36, 7  ;;  %452 = vrot.lane.b32.xlu1 %v432_v37, %s843_s24  ;;  %v416_v45 = vmul.f32 %v770_v33, %v397_v41  ;;  %v400_v46 = vrot.slane %v192_v35, 1  ;;  %v402_v47 = vrot.slane %v193_v36, 1 }
  0x18   : > { %v431_v48 = vpack.c.bf16 %v193_v36, %v192_v35  ;;  %v399_v49 = vsel %vm388_vm2, %v396_v34, %v398_v40  ;;  %vm330_vm5 = vcmp.ne.s32.totalorder %v256_v13, 31  ;;  %v358_v50 = vsel %vm355_vm1, %v356_v20, %v357_v17 }
  0x19   : > { %v380_v51 = vmul.f32 %v768_v15, %v379_v28  ;;  %v433_v52 = vpack.c.bf16 %v416_v45, %v395_v38  ;;  %v401_v53 = vsel %vm388_vm2, %v398_v40, %v400_v46  ;;  %v771_v54 = vsel %vm330_vm5, 1.0, %v841_v14 }
  0x1a   : > { %v403_v55 = vsel %vm388_vm2, %v400_v46, %v402_v47  ;;  %v434_v56 = vpack.c.bf16 %v401_v53, %v399_v49  ;;  %v412_v57 = vsel %vm388_vm2, %v402_v47, 0.0  ;;  %v360_v59 = vsel %vm355_vm1, %v357_v17, %v359_v24  ;;  %444 = vrot.lane.b32.xlu0 %v430_v42, %s842_s23 }
  0x1b   : > { %v424_v58 = vpack.c.bf16 %v358_v50, %v380_v51  ;;  %454 = vrot.lane.b32.xlu1 %v433_v52, %s843_s24  ;;  %v420_v60 = vmul.f32 %v771_v54, %v412_v57  ;;  %v362_v61 = vsel %vm355_vm1, %v359_v24, %v361_v26  ;;  %vm303_vm6 = vcmp.ne.s32.totalorder %v235_v16, 0 }
  0x1c   : > { %v363_v62 = vrot.slane %v190_v22, 7  ;;  %v425_v63 = vpack.c.bf16 %v362_v61, %v360_v59  ;;  %v769_v0 = vsel %vm303_vm6, 1.0, %v841_v14  ;;  %v368_v1 = vsel %vm355_vm1, %v365_v39, %v367_v43 }
  0x1d   : > { %v370_v2 = vsel %vm355_vm1, %v367_v43, %v369_v44  ;;  %v435_v7 = vpack.c.bf16 %v420_v60, %v403_v55 }
  0x1e   : > { %v364_v3 = vsel %vm355_vm1, %v361_v26, %v363_v62  ;;  %v366_v4 = vsel %vm355_vm1, %v363_v62, %v365_v39  ;;  %v427_v5 = vpack.c.bf16 %v370_v2, %v368_v1  ;;  %456 = vrot.lane.b32.xlu0 %v434_v56, %s843_s24 }
  0x1f   : > { %v384_v6 = vmul.f32 %v769_v0, %v364_v3  ;;  %446 = vrot.lane.b32.xlu1 %v431_v48, %s842_s23 }
  0x21   : > { %v426_v8 = vpack.c.bf16 %v366_v4, %v384_v6 }
  0x23   : > { %458 = vrot.lane.b32.xlu1 %v435_v7, %s843_s24 }
  0x84   : > { %v441_v9 = vpop.permute.xlu0 %440 }
  0x85   : > { %v463_v10 = vsel %vm460_vm7, %v424_v58, %v441_v9 }
  0x88   : > { %v443_v12 = vpop.permute.xlu0 %442 }
  0x89   : > { %v453_v11 = vpop.permute.xlu1 %452  ;;  %v466_v14 = vsel %vm460_vm7, %v425_v63, %v443_v12 }
  0x8a   : > { %v475_v13 = vsel %vm473_vm8, %v463_v10, %v453_v11 }
  0x8b   : > { %806 = vmatprep.mubr.msk.bf16.mxu0 %vm491_vm9, %v475_v13 }
  0x8c   : > { %v445_v16 = vpop.permute.xlu0 %444 }
  0x8d   : > { %v455_v15 = vpop.permute.xlu1 %454  ;;  %v469_v18 = vsel %vm460_vm7, %v426_v8, %v445_v16 }
  0x8e   : > { %v477_v17 = vsel %vm473_vm8, %v466_v14, %v455_v15 }
  0x8f   : > { %807 = vmatmul.mubr.msk.bf16.vlgmr.msra.gmra.mxu0 %vm491_vm9, %v477_v17 }
  0x90   : > { %v457_v20 = vpop.permute.xlu0 %456 }
  0x91   : > { %v447_v19 = vpop.permute.xlu1 %446  ;;  %v479_v21 = vsel %vm473_vm8, %v469_v18, %v457_v20 }
  0x92   : > { %810 = vmatprep.mubr.msk.bf16.mxu1 %vm491_vm9, %v479_v21  ;;  %v472_v22 = vsel %vm460_vm7, %v427_v5, %v447_v19 }
  0x95   : > { %v459_v23 = vpop.permute.xlu1 %458 }
  0x96   : > { %v481_v24 = vsel %vm473_vm8, %v472_v22, %v459_v23 }
  0x97   : > { %811 = vmatmul.mubr.msk.bf16.vlgmr.msra.gmra.mxu1 %vm491_vm9, %v481_v24 }
 0x14f   : > { %v808_v25 = vpop.f32.mrf.mxu0 }
 0x150   : > { %v790_v26 = vpack.c.bf16 %v808_v25, %v808_v25 }
 0x151   : > { %v538_v27 = vpop.f32.mrf.mxu0 }
 0x152   : > { %604 = vst.msk [vmem:[%s943_s28 + $0x8] sm:$0xf] %vm601_vm10, %v790_v26  ;;  %v788_v28 = vpack.c.bf16 %v538_v27, %v538_v27 }
 0x153   : > { %v809_v29 = vpop.f32.mrf.mxu0 }
 0x154   : > { %602 = vst.msk [vmem:[%s943_s28] sm:$0xf] %vm601_vm10, %v788_v28  ;;  %v570_v30 = vpack.c.bf16 %v809_v29, %v808_v25  ;;  %v791_v31 = vpack.c.bf16 %v809_v29, %v809_v29 }
 0x155   : > { %v541_v32 = vpop.f32.mrf.mxu0 }
 0x156   : > { %605 = vst.msk [vmem:[%s943_s28 + $0xc] sm:$0xf] %vm601_vm10, %v791_v31  ;;  %v612_v33 = vunpack.c.l.bf16 %v570_v30  ;;  %v569_v34 = vpack.c.bf16 %v541_v32, %v538_v27  ;;  %v789_v35 = vpack.c.bf16 %v541_v32, %v541_v32  ;;  %v613_v41 = vunpack.c.h.bf16 %v570_v30 }
 0x157   : > { %v812_v36 = vpop.f32.mrf.mxu1 }
 0x158   : > { %603 = vst.msk [vmem:[%s943_s28 + $0x4] sm:$0xf] %vm601_vm10, %v789_v35  ;;  %v610_v37 = vunpack.c.l.bf16 %v569_v34  ;;  %v611_v38 = vunpack.c.h.bf16 %v569_v34  ;;  %v794_v39 = vpack.c.bf16 %v812_v36, %v812_v36  ;;  %v641_v42 = vmul.f32 %v612_v33, %v612_v33 }
 0x159   : > { %v554_v40 = vpop.f32.mrf.mxu1  ;;  %v621_v51 = vsel %vm460_vm7, %v612_v33, 0.0  ;;  %v642_v58 = vmul.f32 %v613_v41, %v613_v41  ;;  %v623_v63 = vsel %vm460_vm7, %v613_v41, 0.0 }
 0x15a   : > { %v792_v43 = vpack.c.bf16 %v554_v40, %v554_v40  ;;  %v618_v44 = vsel %vm460_vm7, %v610_v37, 0.0  ;;  %v619_v45 = vsel %vm460_vm7, %v611_v38, 0.0  ;;  %v639_v46 = vmul.f32 %v610_v37, %v610_v37  ;;  %608 = vst.msk [vmem:[%s943_s28 + $0x18] sm:$0xf] %vm601_vm10, %v794_v39 }
 0x15b   : > { %v640_v47 = vmul.f32 %v611_v38, %v611_v38  ;;  %v813_v48 = vpop.f32.mrf.mxu1  ;;  %v620_v49 = vadd.f32 %v619_v45, %v618_v44  ;;  %v650_v59 = vsel %vm460_vm7, %v641_v42, 0.0  ;;  %v652_v4 = vsel %vm460_vm7, %v642_v58, 0.0 }
 0x15c   : > { %606 = vst.msk [vmem:[%s943_s28 + $0x10] sm:$0xf] %vm601_vm10, %v792_v43  ;;  %v795_v50 = vpack.c.bf16 %v813_v48, %v813_v48  ;;  %v647_v52 = vsel %vm460_vm7, %v639_v46, 0.0  ;;  %v572_v54 = vpack.c.bf16 %v813_v48, %v812_v36 }
 0x15d   : > { %v648_v53 = vsel %vm460_vm7, %v640_v47, 0.0  ;;  %v557_v55 = vpop.f32.mrf.mxu1  ;;  %v622_v56 = vadd.f32 %v621_v51, %v620_v49 }
 0x15e   : > { %v649_v57 = vadd.f32 %v648_v53, %v647_v52  ;;  %609 = vst.msk [vmem:[%s943_s28 + $0x1c] sm:$0xf] %vm601_vm10, %v795_v50  ;;  %v571_v60 = vpack.c.bf16 %v557_v55, %v554_v40  ;;  %v793_v61 = vpack.c.bf16 %v557_v55, %v557_v55  ;;  %v616_v0 = vunpack.c.l.bf16 %v572_v54 }
 0x15f   : > { %v624_v3 = vadd.f32 %v623_v63, %v622_v56  ;;  %v617_v5 = vunpack.c.h.bf16 %v572_v54 }
 0x160   : > { %v651_v62 = vadd.f32 %v650_v59, %v649_v57  ;;  %607 = vst.msk [vmem:[%s943_s28 + $0x14] sm:$0xf] %vm601_vm10, %v793_v61  ;;  %v614_v1 = vunpack.c.l.bf16 %v571_v60  ;;  %v615_v2 = vunpack.c.h.bf16 %v571_v60  ;;  %v645_v11 = vmul.f32 %v616_v0, %v616_v0 }
 0x161   : > { %v629_v16 = vsel %vm460_vm7, %v616_v0, 0.0  ;;  %v646_v17 = vmul.f32 %v617_v5, %v617_v5  ;;  %v631_v21 = vsel %vm460_vm7, %v617_v5, 0.0 }
 0x162   : > { %v625_v6 = vsel %vm460_vm7, %v614_v1, 0.0  ;;  %v643_v7 = vmul.f32 %v614_v1, %v614_v1  ;;  %v644_v9 = vmul.f32 %v615_v2, %v615_v2  ;;  %v653_v10 = vadd.f32 %v652_v4, %v651_v62 }
 0x163   : > { %v626_v8 = vadd.f32 %v625_v6, %v624_v3  ;;  %v627_v12 = vsel %vm460_vm7, %v615_v2, 0.0  ;;  %v658_v22 = vsel %vm460_vm7, %v645_v11, 0.0  ;;  %v660_v25 = vsel %vm460_vm7, %v646_v17, 0.0 }
 0x164   : > { %v654_v13 = vsel %vm460_vm7, %v643_v7, 0.0  ;;  %v656_v18 = vsel %vm460_vm7, %v644_v9, 0.0 }
 0x165   : > { %v628_v14 = vadd.f32 %v627_v12, %v626_v8  ;;  %v655_v15 = vadd.f32 %v654_v13, %v653_v10 }
 0x167   : > { %v630_v19 = vadd.f32 %v629_v16, %v628_v14  ;;  %v657_v20 = vadd.f32 %v656_v18, %v655_v15 }
 0x169   : > { %v632_v23 = vadd.f32 %v631_v21, %v630_v19  ;;  %v659_v24 = vadd.f32 %v658_v22, %v657_v20 }
 0x16b   : > { %v633_v26 = vrot.slane %v632_v23, 4  ;;  %v661_v27 = vadd.f32 %v660_v25, %v659_v24 }
 0x16d   : > { %v634_v28 = vadd.f32 %v633_v26, %v632_v23  ;;  %v662_v29 = vrot.slane %v661_v27, 4 }
 0x16f   : > { %v635_v30 = vrot.slane %v634_v28, 2  ;;  %v663_v31 = vadd.f32 %v662_v29, %v661_v27 }
 0x171   : > { %v636_v32 = vadd.f32 %v635_v30, %v634_v28  ;;  %v664_v33 = vrot.slane %v663_v31, 2 }
 0x173   : > { %v637_v34 = vrot.slane %v636_v32, 1  ;;  %v665_v35 = vadd.f32 %v664_v33, %v663_v31 }
 0x175   : > { %v666_v36 = vrot.slane %v665_v35, 1  ;;  %v638_v37 = vadd.f32 %v637_v34, %v636_v32 }
 0x177   : > { %v667_v38 = vadd.f32 %v666_v36, %v665_v35 }
 0x179   : > { %v668_v39 = vsel %vm355_vm1, %v638_v37, %v667_v38 }
 0x17a   : > { %670 = vst.msk [vmem:[%s184_s5] sm:$0x3] %vm669_vm11, %v668_v39 }
 0x17b PF: > { %s14_s12 = sadd.s32 1, %s839_s12  }
 0x17c   : > { %p11_p5 = scmp.ge.s32.totalorder %s14_s12, 4  }
 0x17e   :  { %13 = sbr.rel (!%p11_p5) target bundleno = 1 (0x1), region = 70 }

// kernel: unet_forward_pallas.19
= control target key start
LH: loop header
LB: loop body
LE: loop exit
PB: predicated region body
PF: predicated region fallthrough
CT: control target
= control target key end

     0   :  { %s680_s12 = smov 0   ;;  %s741_s0 = inlined_call_operand.vmem [shape: bf16[64,16], index: 0, kind: input, shape index: {}]   ;;  %s742_s1 = inlined_call_operand.vmem [shape: bf16[24,8], index: 1, kind: input, shape index: {}]   ;;  %s743_s2 = inlined_call_operand.vmem [shape: bf16[64,8], index: 2, kind: output, shape index: {0}]   ;;  %s744_s3 = inlined_call_operand.vmem [shape: f32[2,2,8], index: 3, kind: output, shape index: {1}]  }
   0x1 LB: > { %s686_s13 = sadd.s32 4294967295, %s654_s12   ;;  %p578_p0 = scmp.ge.s32.totalorder %s654_s12, 1  ;;  %s654_s12 = sphi %s680_s12, %s14_s12  }
   0x2   : > { %p141_p1 = scmp.lt.s32.totalorder %s654_s12, 3 }
   0x4   : > { %p142_p2 = pnand %p578_p0, %p141_p1 }
   0x5   : > { %s579_s14 = sshll.u32 (!%p142_p2), %s686_s13, 2  ;;  %s657_s19 = smov (!%p142_p2), 120  }
   0x6   : > { %145 = sbr.rel (%p142_p2) target bundleno = 496 (0x1f0), region = 28  ;;  %p170_p3 = scmp.lt.s32.totalorder (!%p142_p2), %s579_s14, 7 }
   0x7   : > { %s658_s24 = smov (!%p142_p2), 8   ;;  %s659_s25 = smov (!%p142_p2), 16  }
   0x8   : > { %p181_p4 = scmp.lt.s32.totalorder (!%p142_p2), %s686_s13, 1 }
   0xb   : > { %v214_v0 = vlaneseq  ;;  %s746_s14 = smov (!%p170_p3, %s579_s14), 7  ;;  %v656_v12 = vmov 0.0   ;;  %v646_v17 = vld [vmem:[%s742_s1 + $0x8] ss:$0 sps:$4 sm:$0xff]   ;;  %vm376_vm2 = vcmask 1043456   ;;  %v647_v26 = vld [vmem:[%s742_s1] sm:$0xff]  }
   0xc   : > { %s580_s15 = sshll.u32 %s746_s14, 2  ;;  %623 = vmatprep.subr.msk.bf16.mxu0 %vm376_vm2, %v646_v17  ;;  %v378_v23 = vsel %vm376_vm2, %v646_v17, 0  ;;  %vm312_vm4 = vcmask 1046528   ;;  %vm295_vm5 = vcmask 1040384   ;;  %vm350_vm7 = vcmask 64512   ;;  %s748_s13 = smov (!%p181_p4, %s686_s13), 1 }
   0xd   : > { %v215_v1 = vshrl.u32 %v214_v0, 7  ;;  %s173_s18 = scalar_lea.vmem %s741_s0, %s580_s15  ;;  %616 = vmatpush3.bf16.msra.mxu0 %v378_v23  ;;  %vm357_vm8 = vcmask 130048   ;;  %vm371_vm9 = vcmask 195584   ;;  %s179_s28 = scalar_lea.vmem %s743_s2, %s580_s15  ;;  %vm445_vm10 = vcmask 60416  }
   0xe   : > { %v603_v3 = vld [vmem:[%s173_s18] sm:$0xff]   ;;  %v610_v4 = vld [vmem:[%s173_s18 + $0x8] sm:$0xff]   ;;  %617 = vmatprep.subr.bf16.mxu0 %v647_v26  ;;  %s583_s29 = sshll.u32 %s748_s13, 1  ;;  %vm485_vm11 = vcmask 58368  }
   0xf   : > { %v217_v2 = vadd.s32 16, %v215_v1  ;;  %v605_v6 = vunpack.c.h.bf16 %v603_v3  ;;  %v608_v7 = vunpack.c.l.bf16 %v610_v4  ;;  %v609_v8 = vunpack.c.h.bf16 %v610_v4  ;;  %s184_s5 = scalar_lea.vmem %s744_s3, %s583_s29 }
  0x10   : > { %v604_v9 = vunpack.c.l.bf16 %v603_v3  ;;  %v223_v10 = vand.u32 15, %v215_v1  ;;  %v216_v16 = vadd.s32 8, %v215_v1  ;;  %v218_v20 = vadd.s32 24, %v215_v1 }
  0x11   : > { %v237_v5 = vand.u32 15, %v217_v2  ;;  %v636_v11 = vpack.i.bf16 %v608_v7, %v605_v6  ;;  %618 = vmatpush3.bf16.msra.mxu0 %v647_v26 }
  0x12   : > { %vm267_vm1 = vcmp.ne.s32.totalorder %v223_v10, 0  ;;  %v641_v14 = vpack.i.bf16 %v604_v9, %v609_v8  ;;  %v230_v19 = vand.u32 15, %v216_v16  ;;  %v244_v28 = vand.u32 15, %v218_v20 }
  0x13   : > { %vm269_vm0 = vcmp.ne.s32.totalorder %v237_v5, 0  ;;  %637 = vrot.lane.b32.xlu0 %v636_v11, %s657_s19  ;;  %v584_v15 = vsel %vm267_vm1, 1.0, %v656_v12 }
  0x14   : > { %v585_v13 = vsel %vm269_vm0, 1.0, %v656_v12  ;;  %vm280_vm3 = vcmp.ne.s32.totalorder %v230_v19, 15  ;;  %vm282_vm6 = vcmp.ne.s32.totalorder %v244_v28, 15 }
  0x15   : > { %v586_v35 = vsel %vm280_vm3, 1.0, %v656_v12  ;;  %v587_v48 = vsel %vm282_vm6, 1.0, %v656_v12 }
  0x17   : > { %642 = vrot.lane.b32.xlu0 %v641_v14, %s657_s19 }
  0x85   : > { %v638_v18 = vpop.permute.xlu0 %637 }
  0x86   : > { %v640_v21 = vunpack.i.h.bf16 %v638_v18  ;;  %v639_v22 = vunpack.i.l.bf16 %v638_v18 }
  0x88   : > { %v212_v24 = vmax.f32 %v608_v7, %v640_v21  ;;  %v211_v25 = vmax.f32 %v605_v6, %v639_v22 }
  0x89   : > { %v643_v27 = vpop.permute.xlu0 %642 }
  0x8a   : > { %v299_v29 = vrot.slane %v212_v24, 7  ;;  %v316_v30 = vrot.slane %v212_v24, 1  ;;  %v297_v31 = vrot.slane %v211_v25, 7  ;;  %v314_v32 = vrot.slane %v211_v25, 1 }
  0x8b   : > { %v645_v33 = vunpack.i.h.bf16 %v643_v27  ;;  %v644_v34 = vunpack.i.l.bf16 %v643_v27 }
  0x8c   : > { %v300_v36 = vsel %vm295_vm5, %v297_v31, %v299_v29  ;;  %v317_v39 = vsel %vm312_vm4, %v314_v32, %v316_v30 }
  0x8d   : > { %v210_v37 = vmax.f32 %v604_v9, %v645_v33  ;;  %v213_v38 = vmax.f32 %v609_v8, %v644_v34  ;;  %v310_v40 = vmul.f32 %v585_v13, %v300_v36  ;;  %v326_v46 = vmul.f32 %v586_v35, %v317_v39 }
  0x8f   : > { %v296_v41 = vrot.slane %v210_v37, 7  ;;  %v313_v42 = vrot.slane %v210_v37, 1  ;;  %v301_v43 = vrot.slane %v213_v38, 7  ;;  %v318_v44 = vrot.slane %v213_v38, 1 }
  0x90   : > { %v334_v45 = vpack.c.bf16 %v211_v25, %v210_v37  ;;  %v335_v56 = vpack.c.bf16 %v213_v38, %v212_v24 }
  0x91   : > { %v315_v47 = vsel %vm312_vm4, %v313_v42, %v314_v32  ;;  %v324_v49 = vsel %vm312_vm4, %v318_v44, 0.0  ;;  %v298_v50 = vsel %vm295_vm5, %v296_v41, %v297_v31  ;;  %v307_v52 = vsel %vm295_vm5, 0.0, %v296_v41 }
  0x92   : > { %340 = vrot.lane.b32.xlu1 %v334_v45, %s658_s24  ;;  %v336_v51 = vpack.c.bf16 %v326_v46, %v315_v47  ;;  %v302_v53 = vsel %vm295_vm5, %v299_v29, %v301_v43  ;;  %v308_v54 = vmul.f32 %v584_v15, %v307_v52  ;;  %v328_v57 = vmul.f32 %v587_v48, %v324_v49 }
  0x93   : > { %v333_v55 = vpack.c.bf16 %v302_v53, %v310_v40  ;;  %v319_v59 = vsel %vm312_vm4, %v316_v30, %v318_v44 }
  0x94   : > { %346 = vrot.lane.b32.xlu0 %v336_v51, %s659_s25  ;;  %v332_v58 = vpack.c.bf16 %v298_v50, %v308_v54  ;;  %v337_v60 = vpack.c.bf16 %v328_v57, %v319_v59 }
  0x96   : > { %342 = vrot.lane.b32.xlu1 %v335_v56, %s658_s24 }
  0x9a   : > { %348 = vrot.lane.b32.xlu1 %v337_v60, %s659_s25 }
 0x104   : > { %v341_v61 = vpop.permute.xlu1 %340 }
 0x105   : > { %v353_v62 = vsel %vm350_vm7, %v332_v58, %v341_v61 }
 0x106   : > { %v347_v63 = vpop.permute.xlu0 %346 }
 0x107   : > { %v359_v0 = vsel %vm357_vm8, %v353_v62, %v347_v63 }
 0x108   : > { %v343_v1 = vpop.permute.xlu1 %342  ;;  %619 = vmatprep.mubr.msk.bf16.mxu0 %vm371_vm9, %v359_v0 }
 0x109   : > { %v356_v2 = vsel %vm350_vm7, %v333_v55, %v343_v1 }
 0x10c   : > { %v349_v3 = vpop.permute.xlu1 %348 }
 0x10d   : > { %v361_v4 = vsel %vm357_vm8, %v356_v2, %v349_v3 }
 0x10e   : > { %620 = vmatmul.mubr.msk.bf16.vlgmr.msra.gmra.mxu0 %vm371_vm9, %v361_v4 }
 0x1ce   : > { %v621_v5 = vpop.f32.mrf.mxu0 }
 0x1cf   : > { %v600_v14 = vpack.c.bf16 %v621_v5, %v621_v5 }
 0x1d0   : > { %v414_v6 = vpop.f32.mrf.mxu0 }
 0x1d1   : > { %v598_v7 = vpack.c.bf16 %v414_v6, %v414_v6  ;;  %448 = vst.msk [vmem:[%s179_s28 + $0x8] sm:$0xf] %vm445_vm10, %v600_v14 }
 0x1d2   : > { %v622_v8 = vpop.f32.mrf.mxu0 }
 0x1d3   : > { %446 = vst.msk [vmem:[%s179_s28] sm:$0xf] %vm445_vm10, %v598_v7  ;;  %v430_v9 = vpack.c.bf16 %v622_v8, %v621_v5  ;;  %v601_v15 = vpack.c.bf16 %v622_v8, %v622_v8 }
 0x1d4   : > { %v417_v10 = vpop.f32.mrf.mxu0 }
 0x1d5   : > { %v452_v11 = vunpack.c.l.bf16 %v430_v9  ;;  %v429_v12 = vpack.c.bf16 %v417_v10, %v414_v6  ;;  %v599_v13 = vpack.c.bf16 %v417_v10, %v417_v10  ;;  %v453_v16 = vunpack.c.h.bf16 %v430_v9  ;;  %449 = vst.msk [vmem:[%s179_s28 + $0xc] sm:$0xf] %vm445_vm10, %v601_v15 }
 0x1d7   : > { %447 = vst.msk [vmem:[%s179_s28 + $0x4] sm:$0xf] %vm445_vm10, %v599_v13  ;;  %v450_v17 = vunpack.c.l.bf16 %v429_v12  ;;  %v451_v18 = vunpack.c.h.bf16 %v429_v12  ;;  %v469_v19 = vmul.f32 %v452_v11, %v452_v11  ;;  %v457_v25 = vsel %vm350_vm7, %v452_v11, 0.0 }
 0x1d8   : > { %v470_v26 = vmul.f32 %v453_v16, %v453_v16  ;;  %v459_v31 = vsel %vm350_vm7, %v453_v16, 0.0 }
 0x1d9   : > { %v454_v20 = vsel %vm350_vm7, %v450_v17, 0.0  ;;  %v455_v21 = vsel %vm350_vm7, %v451_v18, 0.0  ;;  %v467_v22 = vmul.f32 %v450_v17, %v450_v17  ;;  %v468_v23 = vmul.f32 %v451_v18, %v451_v18 }
 0x1da   : > { %v456_v24 = vadd.f32 %v455_v21, %v454_v20  ;;  %v474_v32 = vsel %vm350_vm7, %v469_v19, 0.0  ;;  %v476_v35 = vsel %vm350_vm7, %v470_v26, 0.0 }
 0x1db   : > { %v471_v27 = vsel %vm350_vm7, %v467_v22, 0.0  ;;  %v472_v28 = vsel %vm350_vm7, %v468_v23, 0.0 }
 0x1dc   : > { %v458_v29 = vadd.f32 %v457_v25, %v456_v24  ;;  %v473_v30 = vadd.f32 %v472_v28, %v471_v27 }
 0x1de   : > { %v460_v33 = vadd.f32 %v459_v31, %v458_v29  ;;  %v475_v34 = vadd.f32 %v474_v32, %v473_v30 }
 0x1e0   : > { %v461_v36 = vrot.slane %v460_v33, 4  ;;  %v477_v37 = vadd.f32 %v476_v35, %v475_v34 }
 0x1e2   : > { %v462_v38 = vadd.f32 %v461_v36, %v460_v33  ;;  %v478_v39 = vrot.slane %v477_v37, 4 }
 0x1e4   : > { %v463_v40 = vrot.slane %v462_v38, 2  ;;  %v479_v41 = vadd.f32 %v478_v39, %v477_v37 }
 0x1e6   : > { %v464_v42 = vadd.f32 %v463_v40, %v462_v38  ;;  %v480_v43 = vrot.slane %v479_v41, 2 }
 0x1e8   : > { %v465_v44 = vrot.slane %v464_v42, 1  ;;  %v481_v45 = vadd.f32 %v480_v43, %v479_v41 }
 0x1ea   : > { %v482_v46 = vrot.slane %v481_v45, 1  ;;  %v466_v47 = vadd.f32 %v465_v44, %v464_v42 }
 0x1ec   : > { %v483_v48 = vadd.f32 %v482_v46, %v481_v45 }
 0x1ee   : > { %v484_v49 = vsel %vm295_vm5, %v466_v47, %v483_v48 }
 0x1ef   : > { %486 = vst.msk [vmem:[%s184_s5] sm:$0x3] %vm485_vm11, %v484_v49 }
 0x1f0 PF: > { %s14_s12 = sadd.s32 1, %s654_s12  }
 0x1f1   : > { %p11_p5 = scmp.ge.s32.totalorder %s14_s12, 4  }
 0x1f3   :  { %13 = sbr.rel (!%p11_p5) target bundleno = 1 (0x1), region = 70 }

// kernel: unet_forward_pallas.21
= control target key start
LH: loop header
LB: loop body
LE: loop exit
PB: predicated region body
PF: predicated region fallthrough
CT: control target
= control target key end

     0   :  { %s351_s12 = smov 0   ;;  %s374_s0 = inlined_call_operand.vmem [shape: bf16[64,8], index: 0, kind: input, shape index: {}]   ;;  %s375_s1 = inlined_call_operand.vmem [shape: f32[1,8], index: 1, kind: input, shape index: {}]   ;;  %s376_s2 = inlined_call_operand.vmem [shape: f32[1,8], index: 2, kind: input, shape index: {}]   ;;  %s377_s3 = inlined_call_operand.vmem [shape: bf16[64,8], index: 3, kind: output, shape index: {}]  }
   0x1 LB: > { %s285_s13 = sadd.s32 4294967295, %s329_s12   ;;  %p289_p0 = scmp.ge.s32.totalorder %s329_s12, 1  ;;  %s329_s12 = sphi %s351_s12, %s13_s12  }
   0x2   : > { %p138_p1 = scmp.lt.s32.totalorder %s329_s12, 3 }
   0x4   : > { %p139_p2 = pnand %p289_p0, %p138_p1 }
   0x5   : > { %s290_s14 = sshll.u32 (!%p139_p2), %s285_s13, 2 }
   0x6   : > { %142 = sbr.rel (%p139_p2) target bundleno = 27 (0x1b), region = 32  ;;  %p163_p3 = scmp.lt.s32.totalorder (!%p139_p2), %s290_s14, 7 }
   0xb   : > { %s379_s14 = smov (!%p163_p3, %s290_s14), 7  ;;  %v294_v2 = vld [vmem:[%s375_s1] ss:$0 sm:$0xff]  ;;  %vm224_vm0 = vcmask 60416  }
   0xc   : > { %s291_s15 = sshll.u32 %s379_s14, 2  ;;  %v295_v7 = vld [vmem:[%s376_s2] ss:$0 sm:$0xff] }
   0xd   : > { %s166_s18 = scalar_lea.vmem %s374_s0, %s291_s15  ;;  %s172_s25 = scalar_lea.vmem %s377_s3, %s291_s15 }
   0xe   : > { %v307_v0 = vld [vmem:[%s166_s18] sm:$0xff]   ;;  %v314_v1 = vld [vmem:[%s166_s18 + $0x8] sm:$0xff]  }
   0xf   : > { %v308_v3 = vunpack.c.l.bf16 %v307_v0  ;;  %v309_v4 = vunpack.c.h.bf16 %v307_v0  ;;  %v312_v5 = vunpack.c.l.bf16 %v314_v1  ;;  %v313_v6 = vunpack.c.h.bf16 %v314_v1 }
  0x11   : > { %v189_v8 = vmul.f32 %v308_v3, %v294_v2  ;;  %v190_v9 = vmul.f32 %v309_v4, %v294_v2  ;;  %v191_v10 = vmul.f32 %v312_v5, %v294_v2  ;;  %v192_v11 = vmul.f32 %v313_v6, %v294_v2 }
  0x13   : > { %v200_v12 = vadd.f32 %v295_v7, %v189_v8  ;;  %v201_v13 = vadd.f32 %v295_v7, %v190_v9  ;;  %v202_v14 = vadd.f32 %v295_v7, %v191_v10  ;;  %v203_v15 = vadd.f32 %v295_v7, %v192_v11 }
  0x15   : > { %v204_v16 = vmax.f32 %v200_v12, 0.0  ;;  %v205_v17 = vmax.f32 %v201_v13, 0.0  ;;  %v206_v18 = vmax.f32 %v202_v14, 0.0  ;;  %v207_v19 = vmax.f32 %v203_v15, 0.0 }
  0x17   : > { %v302_v20 = vpack.c.bf16 %v204_v16, %v204_v16  ;;  %v303_v21 = vpack.c.bf16 %v205_v17, %v205_v17  ;;  %v304_v22 = vpack.c.bf16 %v206_v18, %v206_v18  ;;  %v305_v23 = vpack.c.bf16 %v207_v19, %v207_v19 }
  0x19   : > { %225 = vst.msk [vmem:[%s172_s25] sm:$0xf] %vm224_vm0, %v302_v20  ;;  %226 = vst.msk [vmem:[%s172_s25 + $0x4] sm:$0xf] %vm224_vm0, %v303_v21 }
  0x1a   : > { %227 = vst.msk [vmem:[%s172_s25 + $0x8] sm:$0xf] %vm224_vm0, %v304_v22  ;;  %228 = vst.msk [vmem:[%s172_s25 + $0xc] sm:$0xf] %vm224_vm0, %v305_v23 }
  0x1b PF: > { %s13_s12 = sadd.s32 1, %s329_s12  }
  0x1c   : > { %p10_p4 = scmp.ge.s32.totalorder %s13_s12, 4  }
  0x1e   :  { %12 = sbr.rel (!%p10_p4) target bundleno = 1 (0x1), region = 62 }

// kernel: unet_forward_pallas.20
= control target key start
LH: loop header
LB: loop body
LE: loop exit
PB: predicated region body
PF: predicated region fallthrough
CT: control target
= control target key end

     0   :  { %s740_s18 = smov 0   ;;  %s807_s0 = inlined_call_operand.vmem [shape: bf16[64,8], index: 0, kind: input, shape index: {}]   ;;  %s808_s1 = inlined_call_operand.vmem [shape: f32[1,8], index: 1, kind: input, shape index: {}]   ;;  %s809_s2 = inlined_call_operand.vmem [shape: f32[1,8], index: 2, kind: input, shape index: {}]   ;;  %s810_s3 = inlined_call_operand.vmem [shape: bf16[24,8], index: 3, kind: input, shape index: {}]   ;;  %s811_s4 = inlined_call_operand.vmem [shape: bf16[64,8], index: 4, kind: output, shape index: {0}]   ;;  %s812_s5 = inlined_call_operand.vmem [shape: f32[2,2,8], index: 5, kind: output, shape index: {1}]  }
   0x1 LB: > { %s746_s19 = sadd.s32 4294967295, %s705_s18   ;;  %p638_p0 = scmp.ge.s32.totalorder %s705_s18, 1  ;;  %s705_s18 = sphi %s740_s18, %s16_s18  }
   0x2   : > { %p191_p1 = scmp.lt.s32.totalorder %s705_s18, 3 }
   0x4   : > { %p192_p2 = pnand %p638_p0, %p191_p1 }
   0x5   : > { %s639_s20 = sshll.u32 (!%p192_p2), %s746_s19, 2  ;;  %s708_s8 = smov (!%p192_p2), 8  }
   0x6   : > { %195 = sbr.rel (%p192_p2) target bundleno = 378 (0x17a), region = 36  ;;  %p224_p3 = scmp.lt.s32.totalorder (!%p192_p2), %s639_s20, 7 }
   0x7   : > { %s709_s9 = smov (!%p192_p2), 16   ;;  %p235_p4 = scmp.lt.s32.totalorder (!%p192_p2), %s746_s19, 1 }
   0xb   : > { %v274_v0 = vlaneseq  ;;  %v697_v2 = vld [vmem:[%s810_s3 + $0x8] ss:$0 sps:$4 sm:$0xff]   ;;  %vm436_vm0 = vcmask 1043456   ;;  %s814_s20 = smov (!%p224_p3, %s639_s20), 7  ;;  %v644_v8 = vld [vmem:[%s808_s1] ss:$0 sm:$0xff] }
   0xc   : > { %685 = vmatprep.subr.msk.bf16.mxu0 %vm436_vm0, %v697_v2  ;;  %v438_v5 = vsel %vm436_vm0, %v697_v2, 0  ;;  %s640_s23 = sshll.u32 %s814_s20, 2  ;;  %v707_v12 = vmov 0.0   ;;  %v645_v19 = vld [vmem:[%s809_s2] ss:$0 sm:$0xff]  ;;  %vm372_vm5 = vcmask 1046528  }
   0xd   : > { %v275_v1 = vshrl.u32 %v274_v0, 7  ;;  %678 = vmatpush3.bf16.msra.mxu0 %v438_v5  ;;  %s227_s26 = scalar_lea.vmem %s807_s0, %s640_s23  ;;  %v698_v24 = vld [vmem:[%s810_s3] sm:$0xff]   ;;  %vm355_vm6 = vcmask 1040384   ;;  %vm410_vm7 = vcmask 64512   ;;  %vm417_vm8 = vcmask 130048   ;;  %s233_s12 = scalar_lea.vmem %s811_s4, %s640_s23 }
   0xe   : > { %v665_v9 = vld [vmem:[%s227_s26] sm:$0xff]   ;;  %v672_v10 = vld [vmem:[%s227_s26 + $0x8] sm:$0xff]   ;;  %679 = vmatprep.subr.bf16.mxu0 %v698_v24  ;;  %vm431_vm9 = vcmask 195584   ;;  %vm505_vm10 = vcmask 60416   ;;  %s816_s19 = smov (!%p235_p4, %s746_s19), 1  ;;  %vm545_vm11 = vcmask 58368  }
   0xf   : > { %v276_v3 = vadd.s32 8, %v275_v1  ;;  %v278_v4 = vadd.s32 24, %v275_v1  ;;  %v283_v6 = vand.u32 15, %v275_v1  ;;  %v277_v7 = vadd.s32 16, %v275_v1  ;;  %s643_s13 = sshll.u32 %s816_s19, 1 }
  0x10   : > { %v666_v15 = vunpack.c.l.bf16 %v665_v9  ;;  %v667_v16 = vunpack.c.h.bf16 %v665_v9  ;;  %v670_v17 = vunpack.c.l.bf16 %v672_v10  ;;  %v671_v20 = vunpack.c.h.bf16 %v672_v10  ;;  %s238_s16 = scalar_lea.vmem %s812_s5, %s643_s13 }
  0x11   : > { %vm327_vm1 = vcmp.ne.s32.totalorder %v283_v6, 0  ;;  %v290_v11 = vand.u32 15, %v276_v3  ;;  %v297_v14 = vand.u32 15, %v277_v7  ;;  %v304_v18 = vand.u32 15, %v278_v4  ;;  %680 = vmatpush3.bf16.msra.mxu0 %v698_v24 }
  0x12   : > { %v646_v13 = vsel %vm327_vm1, 1.0, %v707_v12  ;;  %v255_v21 = vmul.f32 %v666_v15, %v644_v8  ;;  %v256_v22 = vmul.f32 %v667_v16, %v644_v8  ;;  %v257_v23 = vmul.f32 %v670_v17, %v644_v8 }
  0x13   : > { %vm329_vm2 = vcmp.ne.s32.totalorder %v297_v14, 0  ;;  %vm340_vm3 = vcmp.ne.s32.totalorder %v290_v11, 15  ;;  %v258_v25 = vmul.f32 %v671_v20, %v644_v8  ;;  %vm342_vm4 = vcmp.ne.s32.totalorder %v304_v18, 15 }
  0x14   : > { %v647_v26 = vsel %vm329_vm2, 1.0, %v707_v12  ;;  %v266_v27 = vadd.f32 %v645_v19, %v255_v21  ;;  %v267_v28 = vadd.f32 %v645_v19, %v256_v22  ;;  %v268_v29 = vadd.f32 %v645_v19, %v257_v23 }
  0x15   : > { %v269_v30 = vadd.f32 %v645_v19, %v258_v25  ;;  %v648_v34 = vsel %vm340_vm3, 1.0, %v707_v12  ;;  %v649_v36 = vsel %vm342_vm4, 1.0, %v707_v12 }
  0x16   : > { %v270_v31 = vmax.f32 %v266_v27, 0.0  ;;  %v271_v32 = vmax.f32 %v267_v28, 0.0  ;;  %v272_v33 = vmax.f32 %v268_v29, 0.0 }
  0x17   : > { %v273_v35 = vmax.f32 %v269_v30, 0.0 }
  0x18   : > { %v357_v37 = vrot.slane %v271_v32, 7  ;;  %v394_v38 = vpack.c.bf16 %v271_v32, %v270_v31  ;;  %v356_v39 = vrot.slane %v270_v31, 7  ;;  %v373_v40 = vrot.slane %v270_v31, 1 }
  0x19   : > { %v374_v41 = vrot.slane %v271_v32, 1  ;;  %v376_v42 = vrot.slane %v272_v33, 1  ;;  %v395_v43 = vpack.c.bf16 %v273_v35, %v272_v33  ;;  %v378_v44 = vrot.slane %v273_v35, 1 }
  0x1a   : > { %400 = vrot.lane.b32.xlu0 %v394_v38, %s708_s8  ;;  %v358_v45 = vsel %vm355_vm6, %v356_v39, %v357_v37  ;;  %v367_v46 = vsel %vm355_vm6, 0.0, %v356_v39  ;;  %v359_v47 = vrot.slane %v272_v33, 7  ;;  %v361_v48 = vrot.slane %v273_v35, 7 }
  0x1b   : > { %v375_v49 = vsel %vm372_vm5, %v373_v40, %v374_v41  ;;  %v377_v50 = vsel %vm372_vm5, %v374_v41, %v376_v42  ;;  %v384_v51 = vsel %vm372_vm5, %v378_v44, 0.0  ;;  %v368_v54 = vmul.f32 %v646_v13, %v367_v46 }
  0x1c   : > { %v386_v52 = vmul.f32 %v648_v34, %v377_v50  ;;  %v388_v53 = vmul.f32 %v649_v36, %v384_v51  ;;  %v360_v55 = vsel %vm355_vm6, %v357_v37, %v359_v47  ;;  %v379_v56 = vsel %vm372_vm5, %v376_v42, %v378_v44 }
  0x1d   : > { %v362_v57 = vsel %vm355_vm6, %v359_v47, %v361_v48  ;;  %v370_v58 = vmul.f32 %v647_v26, %v360_v55  ;;  %v392_v60 = vpack.c.bf16 %v358_v45, %v368_v54 }
  0x1e   : > { %v396_v59 = vpack.c.bf16 %v386_v52, %v375_v49  ;;  %402 = vrot.lane.b32.xlu0 %v395_v43, %s708_s8  ;;  %v397_v62 = vpack.c.bf16 %v388_v53, %v379_v56 }
  0x1f   : > { %v393_v61 = vpack.c.bf16 %v362_v57, %v370_v58 }
  0x20   : > { %406 = vrot.lane.b32.xlu1 %v396_v59, %s709_s9 }
  0x24   : > { %408 = vrot.lane.b32.xlu1 %v397_v62, %s709_s9 }
  0x8c   : > { %v401_v63 = vpop.permute.xlu0 %400 }
  0x8d   : > { %v413_v0 = vsel %vm410_vm7, %v392_v60, %v401_v63 }
  0x90   : > { %v403_v1 = vpop.permute.xlu0 %402 }
  0x91   : > { %v416_v4 = vsel %vm410_vm7, %v393_v61, %v403_v1 }
  0x92   : > { %v407_v2 = vpop.permute.xlu1 %406 }
  0x93   : > { %v419_v3 = vsel %vm417_vm8, %v413_v0, %v407_v2 }
  0x94   : > { %681 = vmatprep.mubr.msk.bf16.mxu0 %vm431_vm9, %v419_v3 }
  0x96   : > { %v409_v5 = vpop.permute.xlu1 %408 }
  0x97   : > { %v421_v6 = vsel %vm417_vm8, %v416_v4, %v409_v5 }
  0x98   : > { %682 = vmatmul.mubr.msk.bf16.vlgmr.msra.gmra.mxu0 %vm431_vm9, %v421_v6 }
 0x158   : > { %v683_v7 = vpop.f32.mrf.mxu0 }
 0x159   : > { %v662_v16 = vpack.c.bf16 %v683_v7, %v683_v7 }
 0x15a   : > { %v474_v8 = vpop.f32.mrf.mxu0 }
 0x15b   : > { %v660_v9 = vpack.c.bf16 %v474_v8, %v474_v8  ;;  %508 = vst.msk [vmem:[%s233_s12 + $0x8] sm:$0xf] %vm505_vm10, %v662_v16 }
 0x15c   : > { %v684_v10 = vpop.f32.mrf.mxu0 }
 0x15d   : > { %506 = vst.msk [vmem:[%s233_s12] sm:$0xf] %vm505_vm10, %v660_v9  ;;  %v490_v11 = vpack.c.bf16 %v684_v10, %v683_v7  ;;  %v663_v17 = vpack.c.bf16 %v684_v10, %v684_v10 }
 0x15e   : > { %v477_v12 = vpop.f32.mrf.mxu0 }
 0x15f   : > { %v512_v13 = vunpack.c.l.bf16 %v490_v11  ;;  %v489_v14 = vpack.c.bf16 %v477_v12, %v474_v8  ;;  %v661_v15 = vpack.c.bf16 %v477_v12, %v477_v12  ;;  %v513_v18 = vunpack.c.h.bf16 %v490_v11  ;;  %509 = vst.msk [vmem:[%s233_s12 + $0xc] sm:$0xf] %vm505_vm10, %v663_v17 }
 0x161   : > { %507 = vst.msk [vmem:[%s233_s12 + $0x4] sm:$0xf] %vm505_vm10, %v661_v15  ;;  %v510_v19 = vunpack.c.l.bf16 %v489_v14  ;;  %v511_v20 = vunpack.c.h.bf16 %v489_v14  ;;  %v529_v21 = vmul.f32 %v512_v13, %v512_v13  ;;  %v517_v27 = vsel %vm410_vm7, %v512_v13, 0.0 }
 0x162   : > { %v530_v28 = vmul.f32 %v513_v18, %v513_v18  ;;  %v519_v33 = vsel %vm410_vm7, %v513_v18, 0.0 }
 0x163   : > { %v514_v22 = vsel %vm410_vm7, %v510_v19, 0.0  ;;  %v515_v23 = vsel %vm410_vm7, %v511_v20, 0.0  ;;  %v527_v24 = vmul.f32 %v510_v19, %v510_v19  ;;  %v528_v25 = vmul.f32 %v511_v20, %v511_v20 }
 0x164   : > { %v516_v26 = vadd.f32 %v515_v23, %v514_v22  ;;  %v534_v34 = vsel %vm410_vm7, %v529_v21, 0.0  ;;  %v536_v37 = vsel %vm410_vm7, %v530_v28, 0.0 }
 0x165   : > { %v531_v29 = vsel %vm410_vm7, %v527_v24, 0.0  ;;  %v532_v30 = vsel %vm410_vm7, %v528_v25, 0.0 }
 0x166   : > { %v518_v31 = vadd.f32 %v517_v27, %v516_v26  ;;  %v533_v32 = vadd.f32 %v532_v30, %v531_v29 }
 0x168   : > { %v520_v35 = vadd.f32 %v519_v33, %v518_v31  ;;  %v535_v36 = vadd.f32 %v534_v34, %v533_v32 }
 0x16a   : > { %v521_v38 = vrot.slane %v520_v35, 4  ;;  %v537_v39 = vadd.f32 %v536_v37, %v535_v36 }
 0x16c   : > { %v522_v40 = vadd.f32 %v521_v38, %v520_v35  ;;  %v538_v41 = vrot.slane %v537_v39, 4 }
 0x16e   : > { %v523_v42 = vrot.slane %v522_v40, 2  ;;  %v539_v43 = vadd.f32 %v538_v41, %v537_v39 }
 0x170   : > { %v524_v44 = vadd.f32 %v523_v42, %v522_v40  ;;  %v540_v45 = vrot.slane %v539_v43, 2 }
 0x172   : > { %v525_v46 = vrot.slane %v524_v44, 1  ;;  %v541_v47 = vadd.f32 %v540_v45, %v539_v43 }
 0x174   : > { %v542_v48 = vrot.slane %v541_v47, 1  ;;  %v526_v49 = vadd.f32 %v525_v46, %v524_v44 }
 0x176   : > { %v543_v50 = vadd.f32 %v542_v48, %v541_v47 }
 0x178   : > { %v544_v51 = vsel %vm355_vm6, %v526_v49, %v543_v50 }
 0x179   : > { %546 = vst.msk [vmem:[%s238_s16] sm:$0x3] %vm545_vm11, %v544_v51 }
 0x17a PF: > { %s16_s18 = sadd.s32 1, %s705_s18  }
 0x17b   : > { %p13_p5 = scmp.ge.s32.totalorder %s16_s18, 4  }
 0x17d   :  { %15 = sbr.rel (!%p13_p5) target bundleno = 1 (0x1), region = 78 }

// kernel: unet_forward_pallas.22
= control target key start
LH: loop header
LB: loop body
LE: loop exit
PB: predicated region body
PF: predicated region fallthrough
CT: control target
= control target key end

     0   :  { %s549_s12 = smov 0   ;;  %s597_s0 = inlined_call_operand.vmem [shape: bf16[32,16], index: 0, kind: input, shape index: {}]   ;;  %s598_s1 = inlined_call_operand.vmem [shape: bf16[24,16], index: 1, kind: input, shape index: {}]   ;;  %s599_s2 = inlined_call_operand.vmem [shape: bf16[32,16], index: 2, kind: output, shape index: {0}]   ;;  %s600_s3 = inlined_call_operand.vmem [shape: f32[2,2,16], index: 3, kind: output, shape index: {1}]  }
   0x1 LB: > { %s555_s13 = sadd.s32 4294967295, %s522_s12   ;;  %p462_p0 = scmp.ge.s32.totalorder %s522_s12, 1  ;;  %s522_s12 = sphi %s549_s12, %s14_s12  }
   0x2   : > { %p141_p1 = scmp.lt.s32.totalorder %s522_s12, 3 }
   0x4   : > { %p142_p2 = pnand %p462_p0, %p141_p1 }
   0x5   : > { %s463_s14 = sshll.u32 (!%p142_p2), %s555_s13, 1  ;;  %s525_s21 = smov (!%p142_p2), 120  }
   0x6   : > { %145 = sbr.rel (%p142_p2) target bundleno = 482 (0x1e2), region = 28  ;;  %p170_p3 = scmp.lt.s32.totalorder (!%p142_p2), %s463_s14, 3 }
   0x7   : > { %s527_s24 = smov (!%p142_p2), 8   ;;  %s528_s25 = smov (!%p142_p2), 16  }
   0x8   : > { %p181_p4 = scmp.lt.s32.totalorder (!%p142_p2), %s555_s13, 1 }
   0xb   : > { %s602_s14 = smov (!%p170_p3, %s463_s14), 3  ;;  %v524_v0 = vmov 0.0   ;;  %v514_v5 = vld [vmem:[%s598_s1 + $0x8] ss:$0 sps:$4 sm:$0xff]   ;;  %vm290_vm0 = vcmask 1043456   ;;  %v200_v7 = vlaneseq  ;;  %v515_v10 = vld [vmem:[%s598_s1] sm:$0xff]  }
   0xc   : > { %s464_s15 = sshll.u32 %s602_s14, 2  ;;  %488 = vmatprep.subr.bf16.mxu0 %v524_v0  ;;  %v292_v6 = vsel %vm290_vm0, %v514_v5, 0  ;;  %vm526_vm1 = vmmov 0   ;;  %vm250_vm6 = vcmask 1046528   ;;  %vm241_vm7 = vcmask 1040384   ;;  %s604_s13 = smov (!%p181_p4, %s555_s13), 1 }
   0xd   : > { %s173_s18 = scalar_lea.vmem %s597_s0, %s464_s15  ;;  %489 = vmatpush3.bf16.msra.mxu0 %v292_v6  ;;  %v201_v8 = vshrl.u32 %v200_v7, 7  ;;  %492 = vmatprep.mubr.msk.bf16.mxu0 %vm526_vm1, %v524_v0  ;;  %vm271_vm8 = vcmask 64512   ;;  %vm275_vm9 = vcmask 130048   ;;  %vm287_vm10 = vcmask 195584   ;;  %s179_s28 = scalar_lea.vmem %s599_s2, %s464_s15 }
   0xe   : > { %v482_v1 = vld [vmem:[%s173_s18] sm:$0xff]   ;;  %490 = vmatprep.subr.bf16.mxu0 %v524_v0  ;;  %vm343_vm11 = vcmask 125952   ;;  %s467_s29 = sshll.u32 %s604_s13, 1  ;;  %vm369_vm12 = vcmask 123904  }
   0xf   : > { %v483_v2 = vunpack.c.l.bf16 %v482_v1  ;;  %v484_v3 = vunpack.c.h.bf16 %v482_v1  ;;  %v202_v9 = vadd.s32 8, %v201_v8  ;;  %v207_v11 = vand.u32 7, %v201_v8  ;;  %s184_s5 = scalar_lea.vmem %s600_s3, %s467_s29 }
  0x11   : > { %v509_v4 = vpack.i.bf16 %v484_v3, %v483_v2  ;;  %491 = vmatpush3.bf16.msra.mxu0 %v515_v10  ;;  %v214_v12 = vand.u32 7, %v202_v9  ;;  %vm227_vm2 = vcmp.ne.s32.totalorder %v207_v11, 0  ;;  %vm233_vm4 = vcmp.ne.s32.totalorder %v207_v11, 7 }
  0x12   : > { %v468_v18 = vsel %vm227_vm2, 1.0, %v524_v0  ;;  %v470_v24 = vsel %vm233_vm4, 1.0, %v524_v0 }
  0x13   : > { %510 = vrot.lane.b32.xlu0 %v509_v4, %s525_s21  ;;  %vm228_vm3 = vcmp.ne.s32.totalorder %v214_v12, 0  ;;  %vm234_vm5 = vcmp.ne.s32.totalorder %v214_v12, 7 }
  0x14   : > { %v469_v19 = vsel %vm228_vm3, 1.0, %v524_v0  ;;  %v471_v25 = vsel %vm234_vm5, 1.0, %v524_v0 }
  0x85   : > { %v511_v13 = vpop.permute.xlu0 %510 }
  0x86   : > { %v513_v14 = vunpack.i.h.bf16 %v511_v13  ;;  %v512_v15 = vunpack.i.l.bf16 %v511_v13 }
  0x88   : > { %v199_v16 = vmax.f32 %v484_v3, %v513_v14  ;;  %v198_v17 = vmax.f32 %v483_v2, %v512_v15 }
  0x8a   : > { %v243_v20 = vrot.slane %v199_v16, 7  ;;  %v242_v21 = vrot.slane %v198_v17, 7  ;;  %v251_v22 = vrot.slane %v198_v17, 1  ;;  %v263_v23 = vpack.c.bf16 %v199_v16, %v198_v17 }
  0x8b   : > { %v252_v26 = vrot.slane %v199_v16, 1 }
  0x8c   : > { %266 = vrot.lane.b32.xlu0 %v263_v23, %s527_s24  ;;  %v244_v27 = vsel %vm241_vm7, %v242_v21, %v243_v20  ;;  %v247_v28 = vsel %vm241_vm7, 0.0, %v242_v21 }
  0x8d   : > { %v253_v29 = vsel %vm250_vm6, %v251_v22, %v252_v26  ;;  %v256_v30 = vsel %vm250_vm6, %v252_v26, 0.0  ;;  %v248_v31 = vmul.f32 %v468_v18, %v247_v28  ;;  %v249_v32 = vmul.f32 %v469_v19, %v244_v27 }
  0x8e   : > { %v257_v33 = vmul.f32 %v470_v24, %v253_v29  ;;  %v258_v34 = vmul.f32 %v471_v25, %v256_v30 }
  0x8f   : > { %v262_v35 = vpack.c.bf16 %v249_v32, %v248_v31 }
  0x90   : > { %v264_v36 = vpack.c.bf16 %v258_v34, %v257_v33 }
  0x92   : > { %269 = vrot.lane.b32.xlu1 %v264_v36, %s528_s25 }
  0xfe   : > { %v267_v37 = vpop.permute.xlu0 %266 }
  0xff   : > { %v274_v38 = vsel %vm271_vm8, %v262_v35, %v267_v37 }
 0x104   : > { %v270_v39 = vpop.permute.xlu1 %269 }
 0x105   : > { %v277_v40 = vsel %vm275_vm9, %v274_v38, %v270_v39 }
 0x106   : > { %493 = vmatmul.mubr.msk.bf16.vlgmr.msra.gmra.mxu0 %vm287_vm10, %v277_v40 }
 0x1c6   : > { %v328_v41 = vpop.f32.mrf.mxu0 }
 0x1c7   : > { %v479_v42 = vpack.c.bf16 %v328_v41, %v328_v41 }
 0x1c8   : > { %v494_v43 = vpop.f32.mrf.mxu0 }
 0x1c9   : > { %344 = vst.msk [vmem:[%s179_s28] sm:$0xf] %vm343_vm11, %v479_v42 }
 0x1ca   : > { %v331_v44 = vpop.f32.mrf.mxu0 }
 0x1cb   : > { %v335_v45 = vpack.c.bf16 %v331_v44, %v328_v41  ;;  %v480_v46 = vpack.c.bf16 %v331_v44, %v331_v44 }
 0x1cc   : > { %v495_v47 = vpop.f32.mrf.mxu0 }
 0x1cd   : > { %345 = vst.msk [vmem:[%s179_s28 + $0x4] sm:$0xf] %vm343_vm11, %v480_v46  ;;  %v346_v48 = vunpack.c.l.bf16 %v335_v45  ;;  %v347_v49 = vunpack.c.h.bf16 %v335_v45 }
 0x1cf   : > { %v348_v50 = vsel %vm275_vm9, %v346_v48, 0.0  ;;  %v349_v51 = vsel %vm275_vm9, %v347_v49, 0.0  ;;  %v357_v52 = vmul.f32 %v346_v48, %v346_v48  ;;  %v358_v53 = vmul.f32 %v347_v49, %v347_v49 }
 0x1d0   : > { %v350_v54 = vadd.f32 %v349_v51, %v348_v50 }
 0x1d1   : > { %v359_v55 = vsel %vm275_vm9, %v357_v52, 0.0  ;;  %v360_v56 = vsel %vm275_vm9, %v358_v53, 0.0 }
 0x1d2   : > { %v351_v57 = vrot.slane %v350_v54, 4  ;;  %v361_v58 = vadd.f32 %v360_v56, %v359_v55 }
 0x1d4   : > { %v352_v59 = vadd.f32 %v351_v57, %v350_v54  ;;  %v362_v60 = vrot.slane %v361_v58, 4 }
 0x1d6   : > { %v353_v61 = vrot.slane %v352_v59, 2  ;;  %v363_v62 = vadd.f32 %v362_v60, %v361_v58 }
 0x1d8   : > { %v354_v63 = vadd.f32 %v353_v61, %v352_v59  ;;  %v364_v0 = vrot.slane %v363_v62, 2 }
 0x1da   : > { %v355_v1 = vrot.slane %v354_v63, 1  ;;  %v365_v2 = vadd.f32 %v364_v0, %v363_v62 }
 0x1dc   : > { %v366_v3 = vrot.slane %v365_v2, 1  ;;  %v356_v4 = vadd.f32 %v355_v1, %v354_v63 }
 0x1de   : > { %v367_v5 = vadd.f32 %v366_v3, %v365_v2 }
 0x1e0   : > { %v368_v6 = vsel %vm241_vm7, %v356_v4, %v367_v5 }
 0x1e1   : > { %370 = vst.msk [vmem:[%s184_s5] sm:$0x3] %vm369_vm12, %v368_v6 }
 0x1e2 PF: > { %s14_s12 = sadd.s32 1, %s522_s12  }
 0x1e3   : > { %p11_p5 = scmp.ge.s32.totalorder %s14_s12, 4  }
 0x1e5   :  { %13 = sbr.rel (!%p11_p5) target bundleno = 1 (0x1), region = 70 }

// kernel: unet_forward_pallas.23
= control target key start
LH: loop header
LB: loop body
LE: loop exit
PB: predicated region body
PF: predicated region fallthrough
CT: control target
= control target key end

     0   :  { %s631_s18 = smov 0   ;;  %s686_s0 = inlined_call_operand.vmem [shape: bf16[32,16], index: 0, kind: input, shape index: {}]   ;;  %s687_s1 = inlined_call_operand.vmem [shape: f32[1,16], index: 1, kind: input, shape index: {}]   ;;  %s688_s2 = inlined_call_operand.vmem [shape: f32[1,16], index: 2, kind: input, shape index: {}]   ;;  %s689_s3 = inlined_call_operand.vmem [shape: bf16[48,16], index: 3, kind: input, shape index: {}]   ;;  %s690_s4 = inlined_call_operand.vmem [shape: bf16[32,16], index: 4, kind: output, shape index: {0}]   ;;  %s691_s5 = inlined_call_operand.vmem [shape: f32[2,2,16], index: 5, kind: output, shape index: {1}]  }
   0x1 LB: > { %s637_s19 = sadd.s32 4294967295, %s595_s18   ;;  %p534_p0 = scmp.ge.s32.totalorder %s595_s18, 1  ;;  %s595_s18 = sphi %s631_s18, %s16_s18  }
   0x2   : > { %p191_p1 = scmp.lt.s32.totalorder %s595_s18, 3 }
   0x4   : > { %p192_p2 = pnand %p534_p0, %p191_p1 }
   0x5   : > { %s535_s20 = sshll.u32 (!%p192_p2), %s637_s19, 1  ;;  %s599_s10 = smov (!%p192_p2), 16  }
   0x6   : > { %195 = sbr.rel (%p192_p2) target bundleno = 367 (0x16f), region = 36  ;;  %p224_p3 = scmp.lt.s32.totalorder (!%p192_p2), %s535_s20, 3 }
   0x7   : > { %s600_s11 = smov (!%p192_p2), 32   ;;  %p235_p4 = scmp.lt.s32.totalorder (!%p192_p2), %s637_s19, 1 }
   0xb   : > { %v264_v0 = vlaneseq  ;;  %v597_v2 = vmov 0.0   ;;  %v586_v3 = vld [vmem:[%s689_s3 + $0x10] sm:$0xff]   ;;  %s693_s20 = smov (!%p224_p3, %s535_s20), 3  ;;  %v587_v4 = vld [vmem:[%s689_s3 + $0x8] sm:$0xff]   ;;  %v540_v9 = vld [vmem:[%s687_s1] ss:$0 sm:$0xff] }
   0xc   : > { %564 = vmatprep.subr.bf16.mxu0 %v597_v2  ;;  %s536_s25 = sshll.u32 %s693_s20, 2  ;;  %v588_v13 = vld [vmem:[%s689_s3] sm:$0xff]   ;;  %vm598_vm2 = vmmov 0   ;;  %vm314_vm5 = vcmask 1046528   ;;  %vm305_vm6 = vcmask 1040384   ;;  %vm338_vm7 = vcmask 130048  }
   0xd   : > { %v265_v1 = vshrl.u32 %v264_v0, 7  ;;  %565 = vmatpush3.bf16.msra.mxu0 %v586_v3  ;;  %s227_s28 = scalar_lea.vmem %s686_s0, %s536_s25  ;;  %v541_v14 = vld [vmem:[%s688_s2] ss:$0 sm:$0xff]  ;;  %570 = vmatprep.mubr.msk.bf16.mxu0 %vm598_vm2, %v597_v2  ;;  %vm342_vm8 = vcmask 261120   ;;  %vm363_vm9 = vcmask 392192   ;;  %s233_s14 = scalar_lea.vmem %s690_s4, %s536_s25  ;;  %vm415_vm10 = vcmask 125952  }
   0xe   : > { %566 = vmatprep.subr.bf16.mxu0 %v597_v2  ;;  %v557_v8 = vld [vmem:[%s227_s28] sm:$0xff]   ;;  %s695_s19 = smov (!%p235_p4, %s637_s19), 1  ;;  %vm441_vm11 = vcmask 123904  }
   0xf   : > { %v266_v5 = vadd.s32 8, %v265_v1  ;;  %v271_v6 = vand.u32 7, %v265_v1  ;;  %v558_v11 = vunpack.c.l.bf16 %v557_v8  ;;  %v559_v12 = vunpack.c.h.bf16 %v557_v8  ;;  %s539_s15 = sshll.u32 %s695_s19, 1 }
  0x10   : > { %s238_s20 = scalar_lea.vmem %s691_s5, %s539_s15 }
  0x11   : > { %v278_v7 = vand.u32 7, %v266_v5  ;;  %vm291_vm0 = vcmp.ne.s32.totalorder %v271_v6, 0  ;;  %567 = vmatpush3.bf16.msra.mxu0 %v587_v4  ;;  %v251_v16 = vmul.f32 %v558_v11, %v540_v9  ;;  %v252_v17 = vmul.f32 %v559_v12, %v540_v9 }
  0x12   : > { %v542_v10 = vsel %vm291_vm0, 1.0, %v597_v2  ;;  %568 = vmatprep.subr.bf16.mxu0 %v597_v2  ;;  %vm297_vm3 = vcmp.ne.s32.totalorder %v271_v6, 7 }
  0x13   : > { %vm292_vm1 = vcmp.ne.s32.totalorder %v278_v7, 0  ;;  %v260_v18 = vadd.f32 %v541_v14, %v251_v16  ;;  %v261_v19 = vadd.f32 %v541_v14, %v252_v17  ;;  %vm298_vm4 = vcmp.ne.s32.totalorder %v278_v7, 7 }
  0x14   : > { %v543_v15 = vsel %vm292_vm1, 1.0, %v597_v2  ;;  %v544_v26 = vsel %vm297_vm3, 1.0, %v597_v2  ;;  %v545_v27 = vsel %vm298_vm4, 1.0, %v597_v2 }
  0x15   : > { %569 = vmatpush3.bf16.msra.mxu0 %v588_v13  ;;  %v262_v20 = vmax.f32 %v260_v18, 0.0  ;;  %v263_v21 = vmax.f32 %v261_v19, 0.0 }
  0x17   : > { %v307_v22 = vrot.slane %v263_v21, 7  ;;  %v330_v23 = vpack.c.bf16 %v263_v21, %v262_v20  ;;  %v306_v24 = vrot.slane %v262_v20, 7  ;;  %v315_v25 = vrot.slane %v262_v20, 1 }
  0x18   : > { %v316_v28 = vrot.slane %v263_v21, 1 }
  0x19   : > { %333 = vrot.lane.b32.xlu0 %v330_v23, %s599_s10  ;;  %v308_v29 = vsel %vm305_vm6, %v306_v24, %v307_v22  ;;  %v311_v30 = vsel %vm305_vm6, 0.0, %v306_v24 }
  0x1a   : > { %v317_v31 = vsel %vm314_vm5, %v315_v25, %v316_v28  ;;  %v320_v32 = vsel %vm314_vm5, %v316_v28, 0.0  ;;  %v312_v33 = vmul.f32 %v542_v10, %v311_v30  ;;  %v313_v34 = vmul.f32 %v543_v15, %v308_v29 }
  0x1b   : > { %v321_v35 = vmul.f32 %v544_v26, %v317_v31  ;;  %v322_v36 = vmul.f32 %v545_v27, %v320_v32 }
  0x1c   : > { %v329_v37 = vpack.c.bf16 %v313_v34, %v312_v33 }
  0x1d   : > { %v331_v38 = vpack.c.bf16 %v322_v36, %v321_v35 }
  0x1f   : > { %336 = vrot.lane.b32.xlu0 %v331_v38, %s600_s11 }
  0x8b   : > { %v334_v39 = vpop.permute.xlu0 %333 }
  0x8c   : > { %v341_v40 = vsel %vm338_vm7, %v329_v37, %v334_v39 }
  0x91   : > { %v337_v41 = vpop.permute.xlu0 %336 }
  0x92   : > { %v344_v42 = vsel %vm342_vm8, %v341_v40, %v337_v41 }
  0x93   : > { %571 = vmatmul.mubr.msk.bf16.vlgmr.msra.gmra.mxu0 %vm363_vm9, %v344_v42 }
 0x153   : > { %v400_v43 = vpop.f32.mrf.mxu0 }
 0x154   : > { %v554_v44 = vpack.c.bf16 %v400_v43, %v400_v43 }
 0x155   : > { %v572_v45 = vpop.f32.mrf.mxu0 }
 0x156   : > { %416 = vst.msk [vmem:[%s233_s14] sm:$0xf] %vm415_vm10, %v554_v44 }
 0x157   : > { %v403_v46 = vpop.f32.mrf.mxu0 }
 0x158   : > { %v407_v47 = vpack.c.bf16 %v403_v46, %v400_v43  ;;  %v555_v48 = vpack.c.bf16 %v403_v46, %v403_v46 }
 0x159   : > { %v573_v49 = vpop.f32.mrf.mxu0 }
 0x15a   : > { %417 = vst.msk [vmem:[%s233_s14 + $0x4] sm:$0xf] %vm415_vm10, %v555_v48  ;;  %v418_v50 = vunpack.c.l.bf16 %v407_v47  ;;  %v419_v51 = vunpack.c.h.bf16 %v407_v47 }
 0x15c   : > { %v420_v52 = vsel %vm338_vm7, %v418_v50, 0.0  ;;  %v421_v53 = vsel %vm338_vm7, %v419_v51, 0.0  ;;  %v429_v54 = vmul.f32 %v418_v50, %v418_v50  ;;  %v430_v55 = vmul.f32 %v419_v51, %v419_v51 }
 0x15d   : > { %v422_v56 = vadd.f32 %v421_v53, %v420_v52 }
 0x15e   : > { %v431_v57 = vsel %vm338_vm7, %v429_v54, 0.0  ;;  %v432_v58 = vsel %vm338_vm7, %v430_v55, 0.0 }
 0x15f   : > { %v423_v59 = vrot.slane %v422_v56, 4  ;;  %v433_v60 = vadd.f32 %v432_v58, %v431_v57 }
 0x161   : > { %v424_v61 = vadd.f32 %v423_v59, %v422_v56  ;;  %v434_v62 = vrot.slane %v433_v60, 4 }
 0x163   : > { %v425_v63 = vrot.slane %v424_v61, 2  ;;  %v435_v0 = vadd.f32 %v434_v62, %v433_v60 }
 0x165   : > { %v426_v1 = vadd.f32 %v425_v63, %v424_v61  ;;  %v436_v2 = vrot.slane %v435_v0, 2 }
 0x167   : > { %v427_v3 = vrot.slane %v426_v1, 1  ;;  %v437_v4 = vadd.f32 %v436_v2, %v435_v0 }
 0x169   : > { %v438_v5 = vrot.slane %v437_v4, 1  ;;  %v428_v6 = vadd.f32 %v427_v3, %v426_v1 }
 0x16b   : > { %v439_v7 = vadd.f32 %v438_v5, %v437_v4 }
 0x16d   : > { %v440_v8 = vsel %vm305_vm6, %v428_v6, %v439_v7 }
 0x16e   : > { %442 = vst.msk [vmem:[%s238_s20] sm:$0x3] %vm441_vm11, %v440_v8 }
 0x16f PF: > { %s16_s18 = sadd.s32 1, %s595_s18  }
 0x170   : > { %p13_p5 = scmp.ge.s32.totalorder %s16_s18, 4  }
 0x172   :  { %15 = sbr.rel (!%p13_p5) target bundleno = 1 (0x1), region = 78 }

// kernel: unet_forward_pallas.24
= control target key start
LH: loop header
LB: loop body
LE: loop exit
PB: predicated region body
PF: predicated region fallthrough
CT: control target
= control target key end

     0   :  { %s464_s18 = smov 0   ;;  %s493_s0 = inlined_call_operand.vmem [shape: bf16[32,16], index: 0, kind: input, shape index: {}]   ;;  %s494_s1 = inlined_call_operand.vmem [shape: f32[1,16], index: 1, kind: input, shape index: {}]   ;;  %s495_s2 = inlined_call_operand.vmem [shape: f32[1,16], index: 2, kind: input, shape index: {}]   ;;  %s496_s3 = inlined_call_operand.vmem [shape: bf16[16,16], index: 3, kind: input, shape index: {}]   ;;  %s497_s4 = inlined_call_operand.vmem [shape: f32[1,16], index: 4, kind: input, shape index: {}]   ;;  %s498_s5 = inlined_call_operand.vmem [shape: bf16[32,16], index: 5, kind: output, shape index: {}]  }
   0x1 LB: > { %s381_s19 = sadd.s32 4294967295, %s430_s18   ;;  %p385_p0 = scmp.ge.s32.totalorder %s430_s18, 1  ;;  %s430_s18 = sphi %s464_s18, %s15_s18  }
   0x2   : > { %p188_p1 = scmp.lt.s32.totalorder %s430_s18, 3 }
   0x4   : > { %p189_p2 = pnand %p385_p0, %p188_p1 }
   0x5   : > { %s386_s22 = sshll.u32 (!%p189_p2), %s381_s19, 1 }
   0x6   : > { %192 = sbr.rel (%p189_p2) target bundleno = 227 (0xe3), region = 40  ;;  %p217_p3 = scmp.lt.s32.totalorder (!%p189_p2), %s386_s22, 3 }
   0xb   : > { %v423_v0 = vld [vmem:[%s496_s3] sm:$0xff]   ;;  %v432_v1 = vmov 0.0   ;;  %vm433_vm0 = vmmov 0   ;;  %s500_s22 = smov (!%p217_p3, %s386_s22), 3  ;;  %vm269_vm1 = vcmask 130048   ;;  %vm322_vm2 = vcmask 125952  }
   0xc   : > { %407 = vmatprep.subr.bf16.mxu0 %v432_v1  ;;  %409 = vmatprep.mubr.msk.bf16.mxu0 %vm433_vm0, %v432_v1  ;;  %s387_s23 = sshll.u32 %s500_s22, 2  ;;  %v390_v3 = vld [vmem:[%s494_s1] ss:$0 sm:$0xff] }
   0xd   : > { %408 = vmatpush3.bf16.msra.mxu0 %v423_v0  ;;  %s220_s26 = scalar_lea.vmem %s493_s0, %s387_s23  ;;  %v391_v6 = vld [vmem:[%s495_s2] ss:$0 sm:$0xff]  ;;  %s226_s10 = scalar_lea.vmem %s498_s5, %s387_s23 }
   0xe   : > { %v402_v2 = vld [vmem:[%s220_s26] sm:$0xff]  }
   0xf   : > { %v403_v4 = vunpack.c.l.bf16 %v402_v2  ;;  %v404_v5 = vunpack.c.h.bf16 %v402_v2  ;;  %v392_v14 = vld [vmem:[%s497_s4] ss:$0 sm:$0xff] }
  0x11   : > { %v240_v7 = vmul.f32 %v403_v4, %v390_v3  ;;  %v241_v8 = vmul.f32 %v404_v5, %v390_v3 }
  0x13   : > { %v249_v9 = vadd.f32 %v391_v6, %v240_v7  ;;  %v250_v10 = vadd.f32 %v391_v6, %v241_v8 }
  0x15   : > { %v251_v11 = vmax.f32 %v249_v9, 0.0  ;;  %v252_v12 = vmax.f32 %v250_v10, 0.0 }
  0x17   : > { %v253_v13 = vpack.c.bf16 %v252_v12, %v251_v11 }
  0x19   : > { %410 = vmatmul.mubr.msk.bf16.vlgmr.msra.gmra.mxu0 %vm269_vm1, %v253_v13 }
  0xd9   : > { %v307_v15 = vpop.f32.mrf.mxu0 }
  0xda   : > { %v308_v16 = vadd.f32 %v392_v14, %v307_v15 }
  0xdb   : > { %v411_v17 = vpop.f32.mrf.mxu0 }
  0xdc   : > { %v399_v18 = vpack.c.bf16 %v308_v16, %v308_v16 }
  0xdd   : > { %v310_v19 = vpop.f32.mrf.mxu0 }
  0xde   : > { %323 = vst.msk [vmem:[%s226_s10] sm:$0xf] %vm322_vm2, %v399_v18  ;;  %v311_v20 = vadd.f32 %v392_v14, %v310_v19 }
  0xdf   : > { %v412_v21 = vpop.f32.mrf.mxu0 }
  0xe0   : > { %v400_v22 = vpack.c.bf16 %v311_v20, %v311_v20 }
  0xe2   : > { %324 = vst.msk [vmem:[%s226_s10 + $0x4] sm:$0xf] %vm322_vm2, %v400_v22 }
  0xe3 PF: > { %s15_s18 = sadd.s32 1, %s430_s18  }
  0xe4   : > { %p12_p4 = scmp.ge.s32.totalorder %s15_s18, 4  }
  0xe6   :  { %14 = sbr.rel (!%p12_p4) target bundleno = 1 (0x1), region = 70 }

// kernel: unet_forward_pallas.27
= control target key start
LH: loop header
LB: loop body
LE: loop exit
PB: predicated region body
PF: predicated region fallthrough
CT: control target
= control target key end

     0   :  { %s499_s18 = smov 0   ;;  %s535_s0 = inlined_call_operand.vmem [shape: bf16[64,8], index: 0, kind: input, shape index: {}]   ;;  %s536_s1 = inlined_call_operand.vmem [shape: f32[1,8], index: 1, kind: input, shape index: {}]   ;;  %s537_s2 = inlined_call_operand.vmem [shape: f32[1,8], index: 2, kind: input, shape index: {}]   ;;  %s538_s3 = inlined_call_operand.vmem [shape: bf16[8,16], index: 3, kind: input, shape index: {}]   ;;  %s539_s4 = inlined_call_operand.vmem [shape: f32[1,16], index: 4, kind: input, shape index: {}]   ;;  %s540_s5 = inlined_call_operand.vmem [shape: bf16[64,16], index: 5, kind: output, shape index: {}]  }
   0x1 LB: > { %s410_s19 = sadd.s32 4294967295, %s467_s18   ;;  %p414_p0 = scmp.ge.s32.totalorder %s467_s18, 1  ;;  %s467_s18 = sphi %s499_s18, %s15_s18  }
   0x2   : > { %p188_p1 = scmp.lt.s32.totalorder %s467_s18, 3 }
   0x4   : > { %p189_p2 = pnand %p414_p0, %p188_p1 }
   0x5   : > { %s415_s22 = sshll.u32 (!%p189_p2), %s410_s19, 2 }
   0x6   : > { %192 = sbr.rel (%p189_p2) target bundleno = 230 (0xe6), region = 40  ;;  %p217_p3 = scmp.lt.s32.totalorder (!%p189_p2), %s415_s22, 7 }
   0xb   : > { %v265_v0 = vld [vmem:[%s538_s3] sm:$0xf]  ;;  %vm280_vm0 = vcmask 1043456   ;;  %s542_s22 = smov (!%p217_p3, %s415_s22), 7  ;;  %vm273_vm1 = vcmask 64512   ;;  %vm349_vm2 = vcmask 125952  }
   0xc   : > { %452 = vmatprep.subr.msk.bf16.mxu0 %vm280_vm0, %v265_v0  ;;  %v282_v1 = vsel %vm280_vm0, %v265_v0, 0  ;;  %s416_s23 = sshll.u32 %s542_s22, 2  ;;  %v419_v4 = vld [vmem:[%s536_s1] ss:$0 sm:$0xff] }
   0xd   : > { %447 = vmatpush3.bf16.msra.mxu0 %v282_v1  ;;  %s220_s26 = scalar_lea.vmem %s535_s0, %s416_s23  ;;  %v420_v9 = vld [vmem:[%s537_s2] ss:$0 sm:$0xff]  ;;  %s226_s10 = scalar_lea.vmem %s540_s5, %s416_s23 }
   0xe   : > { %v435_v2 = vld [vmem:[%s220_s26] sm:$0xff]   ;;  %v442_v3 = vld [vmem:[%s220_s26 + $0x8] sm:$0xff]  }
   0xf   : > { %v436_v5 = vunpack.c.l.bf16 %v435_v2  ;;  %v437_v6 = vunpack.c.h.bf16 %v435_v2  ;;  %v440_v7 = vunpack.c.l.bf16 %v442_v3  ;;  %v441_v8 = vunpack.c.h.bf16 %v442_v3  ;;  %v421_v25 = vld [vmem:[%s539_s4] ss:$0 sm:$0xff] }
  0x11   : > { %v244_v10 = vmul.f32 %v436_v5, %v419_v4  ;;  %v245_v11 = vmul.f32 %v437_v6, %v419_v4  ;;  %v246_v12 = vmul.f32 %v440_v7, %v419_v4  ;;  %v247_v13 = vmul.f32 %v441_v8, %v419_v4 }
  0x13   : > { %v255_v14 = vadd.f32 %v420_v9, %v244_v10  ;;  %v256_v15 = vadd.f32 %v420_v9, %v245_v11  ;;  %v257_v16 = vadd.f32 %v420_v9, %v246_v12  ;;  %v258_v17 = vadd.f32 %v420_v9, %v247_v13 }
  0x15   : > { %v259_v18 = vmax.f32 %v255_v14, 0.0  ;;  %v260_v19 = vmax.f32 %v256_v15, 0.0  ;;  %v261_v20 = vmax.f32 %v257_v16, 0.0  ;;  %v262_v21 = vmax.f32 %v258_v17, 0.0 }
  0x17   : > { %v263_v22 = vpack.c.bf16 %v260_v19, %v259_v18  ;;  %v264_v23 = vpack.c.bf16 %v262_v21, %v261_v20 }
  0x19   : > { %448 = vmatprep.mubr.msk.bf16.mxu0 %vm273_vm1, %v263_v22 }
  0x1a   : > { %449 = vmatmul.mubr.msk.bf16.vlgmr.msra.gmra.mxu0 %vm273_vm1, %v264_v23 }
  0xda   : > { %v450_v24 = vpop.f32.mrf.mxu0 }
  0xdb   : > { %v327_v30 = vadd.f32 %v450_v24, %v421_v25 }
  0xdc   : > { %v318_v26 = vpop.f32.mrf.mxu0 }
  0xdd   : > { %v319_v27 = vadd.f32 %v421_v25, %v318_v26  ;;  %v432_v35 = vpack.c.bf16 %v327_v30, %v327_v30 }
  0xde   : > { %v451_v28 = vpop.f32.mrf.mxu0 }
  0xdf   : > { %v430_v29 = vpack.c.bf16 %v319_v27, %v319_v27  ;;  %v330_v32 = vadd.f32 %v451_v28, %v421_v25  ;;  %352 = vst.msk [vmem:[%s226_s10 + $0x8] sm:$0xf] %vm349_vm2, %v432_v35 }
  0xe0   : > { %v321_v31 = vpop.f32.mrf.mxu0 }
  0xe1   : > { %350 = vst.msk [vmem:[%s226_s10] sm:$0xf] %vm349_vm2, %v430_v29  ;;  %v322_v33 = vadd.f32 %v421_v25, %v321_v31  ;;  %v433_v36 = vpack.c.bf16 %v330_v32, %v330_v32 }
  0xe3   : > { %v431_v34 = vpack.c.bf16 %v322_v33, %v322_v33  ;;  %353 = vst.msk [vmem:[%s226_s10 + $0xc] sm:$0xf] %vm349_vm2, %v433_v36 }
  0xe5   : > { %351 = vst.msk [vmem:[%s226_s10 + $0x4] sm:$0xf] %vm349_vm2, %v431_v34 }
  0xe6 PF: > { %s15_s18 = sadd.s32 1, %s467_s18  }
  0xe7   : > { %p12_p4 = scmp.ge.s32.totalorder %s15_s18, 4  }
  0xe9   :  { %14 = sbr.rel (!%p12_p4) target bundleno = 1 (0x1), region = 70 }

// kernel: unet_forward_pallas.25
= control target key start
LH: loop header
LB: loop body
LE: loop exit
PB: predicated region body
PF: predicated region fallthrough
CT: control target
= control target key end

     0   :  { %s664_s12 = smov 0   ;;  %s726_s0 = inlined_call_operand.vmem [shape: bf16[64,16], index: 0, kind: input, shape index: {}]   ;;  %s727_s1 = inlined_call_operand.vmem [shape: bf16[48,8], index: 1, kind: input, shape index: {}]   ;;  %s728_s2 = inlined_call_operand.vmem [shape: bf16[64,8], index: 2, kind: output, shape index: {0}]   ;;  %s729_s3 = inlined_call_operand.vmem [shape: f32[2,2,8], index: 3, kind: output, shape index: {1}]  }
   0x1 LB: > { %s670_s13 = sadd.s32 4294967295, %s639_s12   ;;  %p573_p0 = scmp.ge.s32.totalorder %s639_s12, 1  ;;  %s639_s12 = sphi %s664_s12, %s14_s12  }
   0x2   : > { %p141_p1 = scmp.lt.s32.totalorder %s639_s12, 3 }
   0x4   : > { %p142_p2 = pnand %p573_p0, %p141_p1 }
   0x5   : > { %s574_s14 = sshll.u32 (!%p142_p2), %s670_s13, 2  ;;  %s642_s25 = smov (!%p142_p2), 16  }
   0x6   : > { %145 = sbr.rel (%p142_p2) target bundleno = 372 (0x174), region = 28  ;;  %p170_p3 = scmp.lt.s32.totalorder (!%p142_p2), %s574_s14, 7 }
   0x7   : > { %s643_s26 = smov (!%p142_p2), 32   ;;  %p181_p4 = scmp.lt.s32.totalorder (!%p142_p2), %s670_s13, 1 }
   0xb   : > { %v194_v0 = vlaneseq  ;;  %v628_v1 = vld [vmem:[%s727_s1 + $0x10] sm:$0xff]   ;;  %v629_v3 = vld [vmem:[%s727_s1 + $0x8] sm:$0xff]   ;;  %s731_s14 = smov (!%p170_p3, %s574_s14), 7  ;;  %v630_v7 = vld [vmem:[%s727_s1] sm:$0xff]   ;;  %vm275_vm0 = vcmask 1040384   ;;  %vm292_vm2 = vcmask 1046528  }
   0xc   : > { %605 = vmatprep.subr.bf16.mxu0 %v628_v1  ;;  %s575_s21 = sshll.u32 %s731_s14, 2  ;;  %v641_v13 = vmov 0.0   ;;  %vm339_vm6 = vcmask 130048   ;;  %vm346_vm7 = vcmask 261120   ;;  %vm369_vm8 = vcmask 392192   ;;  %s733_s13 = smov (!%p181_p4, %s670_s13), 1 }
   0xd   : > { %v195_v2 = vshrl.u32 %v194_v0, 7  ;;  %606 = vmatpush3.bf16.msra.mxu0 %v628_v1  ;;  %s173_s24 = scalar_lea.vmem %s726_s0, %s575_s21  ;;  %s179_s29 = scalar_lea.vmem %s728_s2, %s575_s21  ;;  %vm439_vm9 = vcmask 60416   ;;  %vm448_vm10 = vcmask 64512   ;;  %vm480_vm11 = vcmask 58368  }
   0xe   : > { %607 = vmatprep.subr.bf16.mxu0 %v629_v3  ;;  %v186_v11 = vld [vmem:[%s173_s24] sm:$0xff]   ;;  %v188_v12 = vld [vmem:[%s173_s24 + $0x8] sm:$0xff]   ;;  %s578_s30 = sshll.u32 %s733_s13, 1 }
   0xf   : > { %v196_v4 = vadd.s32 8, %v195_v2  ;;  %v198_v5 = vadd.s32 24, %v195_v2  ;;  %v203_v6 = vand.u32 15, %v195_v2  ;;  %v197_v8 = vadd.s32 16, %v195_v2  ;;  %329 = vrot.lane.b32.xlu0 %v186_v11, %s642_s25  ;;  %s184_s6 = scalar_lea.vmem %s729_s3, %s578_s30 }
  0x10   : > { %v191_v16 = vunpack.c.h.bf16 %v186_v11  ;;  %v190_v17 = vunpack.c.l.bf16 %v186_v11  ;;  %v192_v18 = vunpack.c.l.bf16 %v188_v12  ;;  %v193_v19 = vunpack.c.h.bf16 %v188_v12 }
  0x11   : > { %v210_v9 = vand.u32 15, %v196_v4  ;;  %v224_v10 = vand.u32 15, %v198_v5  ;;  %vm247_vm1 = vcmp.ne.s32.totalorder %v203_v6, 0  ;;  %608 = vmatpush3.bf16.msra.mxu0 %v629_v3  ;;  %v217_v15 = vand.u32 15, %v197_v8 }
  0x12   : > { %v579_v14 = vsel %vm247_vm1, 1.0, %v641_v13  ;;  %609 = vmatprep.subr.bf16.mxu0 %v630_v7  ;;  %v277_v20 = vrot.slane %v191_v16, 7  ;;  %v294_v21 = vrot.slane %v191_v16, 1  ;;  %v276_v22 = vrot.slane %v190_v17, 7 }
  0x13   : > { %vm260_vm3 = vcmp.ne.s32.totalorder %v210_v9, 15  ;;  %vm262_vm4 = vcmp.ne.s32.totalorder %v224_v10, 15  ;;  %v293_v23 = vrot.slane %v190_v17, 1  ;;  %v296_v25 = vrot.slane %v192_v18, 1  ;;  %331 = vrot.lane.b32.xlu0 %v188_v12, %s642_s25 }
  0x14   : > { %v581_v24 = vsel %vm260_vm3, 1.0, %v641_v13  ;;  %v298_v26 = vrot.slane %v193_v19, 1  ;;  %v287_v27 = vsel %vm275_vm0, 0.0, %v276_v22  ;;  %v281_v28 = vrot.slane %v193_v19, 7 }
  0x15   : > { %610 = vmatpush3.bf16.msra.mxu0 %v630_v7  ;;  %v582_v29 = vsel %vm262_vm4, 1.0, %v641_v13  ;;  %v278_v30 = vsel %vm275_vm0, %v276_v22, %v277_v20  ;;  %v295_v31 = vsel %vm292_vm2, %v293_v23, %v294_v21  ;;  %v297_v32 = vsel %vm292_vm2, %v294_v21, %v296_v25 }
  0x16   : > { %v304_v33 = vsel %vm292_vm2, %v298_v26, 0.0  ;;  %v288_v34 = vmul.f32 %v579_v14, %v287_v27  ;;  %v306_v35 = vmul.f32 %v581_v24, %v297_v32  ;;  %vm249_vm5 = vcmp.ne.s32.totalorder %v217_v15, 0 }
  0x17   : > { %v308_v36 = vmul.f32 %v582_v29, %v304_v33  ;;  %v279_v37 = vrot.slane %v192_v18, 7  ;;  %v299_v38 = vsel %vm292_vm2, %v296_v25, %v298_v26  ;;  %v580_v40 = vsel %vm249_vm5, 1.0, %v641_v13 }
  0x18   : > { %v315_v39 = vpack.c.bf16 %v278_v30, %v288_v34  ;;  %v317_v41 = vpack.c.bf16 %v306_v35, %v295_v31 }
  0x19   : > { %v280_v42 = vsel %vm275_vm0, %v277_v20, %v279_v37  ;;  %v282_v43 = vsel %vm275_vm0, %v279_v37, %v281_v28  ;;  %v318_v45 = vpack.c.bf16 %v308_v36, %v299_v38 }
  0x1a   : > { %v290_v44 = vmul.f32 %v580_v40, %v280_v42  ;;  %335 = vrot.lane.b32.xlu1 %v317_v41, %s643_s26 }
  0x1c   : > { %v316_v46 = vpack.c.bf16 %v282_v43, %v290_v44 }
  0x1e   : > { %337 = vrot.lane.b32.xlu1 %v318_v45, %s643_s26 }
  0x81   : > { %v330_v47 = vpop.permute.xlu0 %329 }
  0x82   : > { %v342_v48 = vsel %vm339_vm6, %v315_v39, %v330_v47 }
  0x85   : > { %v332_v49 = vpop.permute.xlu0 %331 }
  0x86   : > { %v345_v52 = vsel %vm339_vm6, %v316_v46, %v332_v49 }
  0x8c   : > { %v336_v50 = vpop.permute.xlu1 %335 }
  0x8d   : > { %v348_v51 = vsel %vm346_vm7, %v342_v48, %v336_v50 }
  0x8e   : > { %611 = vmatprep.mubr.msk.bf16.mxu0 %vm369_vm8, %v348_v51 }
  0x90   : > { %v338_v53 = vpop.permute.xlu1 %337 }
  0x91   : > { %v350_v54 = vsel %vm346_vm7, %v345_v52, %v338_v53 }
  0x92   : > { %612 = vmatmul.mubr.msk.bf16.vlgmr.msra.gmra.mxu0 %vm369_vm8, %v350_v54 }
 0x152   : > { %v613_v55 = vpop.f32.mrf.mxu0 }
 0x153   : > { %v598_v0 = vpack.c.bf16 %v613_v55, %v613_v55 }
 0x154   : > { %v408_v56 = vpop.f32.mrf.mxu0 }
 0x155   : > { %v596_v57 = vpack.c.bf16 %v408_v56, %v408_v56  ;;  %442 = vst.msk [vmem:[%s179_s29 + $0x8] sm:$0xf] %vm439_vm9, %v598_v0 }
 0x156   : > { %v614_v58 = vpop.f32.mrf.mxu0 }
 0x157   : > { %440 = vst.msk [vmem:[%s179_s29] sm:$0xf] %vm439_vm9, %v596_v57  ;;  %v424_v59 = vpack.c.bf16 %v614_v58, %v613_v55  ;;  %v599_v1 = vpack.c.bf16 %v614_v58, %v614_v58 }
 0x158   : > { %v411_v60 = vpop.f32.mrf.mxu0 }
 0x159   : > { %v446_v61 = vunpack.c.l.bf16 %v424_v59  ;;  %v423_v62 = vpack.c.bf16 %v411_v60, %v408_v56  ;;  %v597_v63 = vpack.c.bf16 %v411_v60, %v411_v60  ;;  %v447_v2 = vunpack.c.h.bf16 %v424_v59  ;;  %443 = vst.msk [vmem:[%s179_s29 + $0xc] sm:$0xf] %vm439_vm9, %v599_v1 }
 0x15b   : > { %441 = vst.msk [vmem:[%s179_s29 + $0x4] sm:$0xf] %vm439_vm9, %v597_v63  ;;  %v444_v3 = vunpack.c.l.bf16 %v423_v62  ;;  %v445_v4 = vunpack.c.h.bf16 %v423_v62  ;;  %v464_v5 = vmul.f32 %v446_v61, %v446_v61  ;;  %v452_v11 = vsel %vm448_vm10, %v446_v61, 0.0 }
 0x15c   : > { %v465_v12 = vmul.f32 %v447_v2, %v447_v2  ;;  %v454_v17 = vsel %vm448_vm10, %v447_v2, 0.0 }
 0x15d   : > { %v449_v6 = vsel %vm448_vm10, %v444_v3, 0.0  ;;  %v450_v7 = vsel %vm448_vm10, %v445_v4, 0.0  ;;  %v462_v8 = vmul.f32 %v444_v3, %v444_v3  ;;  %v463_v9 = vmul.f32 %v445_v4, %v445_v4 }
 0x15e   : > { %v451_v10 = vadd.f32 %v450_v7, %v449_v6  ;;  %v469_v18 = vsel %vm448_vm10, %v464_v5, 0.0  ;;  %v471_v21 = vsel %vm448_vm10, %v465_v12, 0.0 }
 0x15f   : > { %v466_v13 = vsel %vm448_vm10, %v462_v8, 0.0  ;;  %v467_v14 = vsel %vm448_vm10, %v463_v9, 0.0 }
 0x160   : > { %v453_v15 = vadd.f32 %v452_v11, %v451_v10  ;;  %v468_v16 = vadd.f32 %v467_v14, %v466_v13 }
 0x162   : > { %v455_v19 = vadd.f32 %v454_v17, %v453_v15  ;;  %v470_v20 = vadd.f32 %v469_v18, %v468_v16 }
 0x164   : > { %v456_v22 = vrot.slane %v455_v19, 4  ;;  %v472_v23 = vadd.f32 %v471_v21, %v470_v20 }
 0x166   : > { %v457_v24 = vadd.f32 %v456_v22, %v455_v19  ;;  %v473_v25 = vrot.slane %v472_v23, 4 }
 0x168   : > { %v458_v26 = vrot.slane %v457_v24, 2  ;;  %v474_v27 = vadd.f32 %v473_v25, %v472_v23 }
 0x16a   : > { %v459_v28 = vadd.f32 %v458_v26, %v457_v24  ;;  %v475_v29 = vrot.slane %v474_v27, 2 }
 0x16c   : > { %v460_v30 = vrot.slane %v459_v28, 1  ;;  %v476_v31 = vadd.f32 %v475_v29, %v474_v27 }
 0x16e   : > { %v477_v32 = vrot.slane %v476_v31, 1  ;;  %v461_v33 = vadd.f32 %v460_v30, %v459_v28 }
 0x170   : > { %v478_v34 = vadd.f32 %v477_v32, %v476_v31 }
 0x172   : > { %v479_v35 = vsel %vm275_vm0, %v461_v33, %v478_v34 }
 0x173   : > { %481 = vst.msk [vmem:[%s184_s6] sm:$0x3] %vm480_vm11, %v479_v35 }
 0x174 PF: > { %s14_s12 = sadd.s32 1, %s639_s12  }
 0x175   : > { %p11_p5 = scmp.ge.s32.totalorder %s14_s12, 4  }
 0x177   :  { %13 = sbr.rel (!%p11_p5) target bundleno = 1 (0x1), region = 70 }

// kernel: unet_forward_pallas.28
= control target key start
LH: loop header
LB: loop body
LE: loop exit
PB: predicated region body
PF: predicated region fallthrough
CT: control target
= control target key end

     0   :  { %s910_s12 = smov 0   ;;  %s1035_s0 = inlined_call_operand.vmem [shape: bf16[128,16], index: 0, kind: input, shape index: {}]   ;;  %s1036_s1 = inlined_call_operand.vmem [shape: bf16[48,8], index: 1, kind: input, shape index: {}]   ;;  %s1037_s2 = inlined_call_operand.vmem [shape: bf16[128,8], index: 2, kind: output, shape index: {0}]   ;;  %s1038_s3 = inlined_call_operand.vmem [shape: f32[2,2,8], index: 3, kind: output, shape index: {1}]  }
   0x1 LB: > { %s916_s13 = sadd.s32 4294967295, %s885_s12   ;;  %p791_p0 = scmp.ge.s32.totalorder %s885_s12, 1  ;;  %s885_s12 = sphi %s910_s12, %s14_s12  }
   0x2   : > { %p141_p1 = scmp.lt.s32.totalorder %s885_s12, 3 }
   0x4   : > { %p142_p2 = pnand %p791_p0, %p141_p1 }
   0x5   : > { %s792_s14 = sshll.u32 (!%p142_p2), %s916_s13, 3  ;;  %s888_s25 = smov (!%p142_p2), 16  }
   0x6   : > { %145 = sbr.rel (%p142_p2) target bundleno = 381 (0x17d), region = 28  ;;  %p170_p3 = scmp.lt.s32.totalorder (!%p142_p2), %s792_s14, 15 }
   0x7   : > { %s889_s26 = smov (!%p142_p2), 32   ;;  %p181_p4 = scmp.lt.s32.totalorder (!%p142_p2), %s916_s13, 1 }
   0xb   : > { %v202_v0 = vlaneseq  ;;  %v872_v1 = vld [vmem:[%s1036_s1 + $0x10] sm:$0xff]   ;;  %s1040_s14 = smov (!%p170_p3, %s792_s14), 15  ;;  %v873_v3 = vld [vmem:[%s1036_s1 + $0x8] sm:$0xff]   ;;  %v874_v7 = vld [vmem:[%s1036_s1] sm:$0xff]   ;;  %vm363_vm0 = vcmask 1040384   ;;  %vm396_vm1 = vcmask 1046528  }
   0xc   : > { %837 = vmatprep.subr.bf16.mxu0 %v872_v1  ;;  %851 = vmatprep.subr.bf16.mxu1 %v872_v1  ;;  %s793_s21 = sshll.u32 %s1040_s14, 2  ;;  %v887_v14 = vmov 0.0   ;;  %vm483_vm6 = vcmask 130048   ;;  %vm496_vm7 = vcmask 261120   ;;  %vm523_vm8 = vcmask 392192   ;;  %s1042_s13 = smov (!%p181_p4, %s916_s13), 1 }
   0xd   : > { %v203_v2 = vshrl.u32 %v202_v0, 7  ;;  %838 = vmatpush3.bf16.msra.mxu0 %v872_v1  ;;  %854 = vmatpush3.bf16.msra.mxu1 %v872_v1  ;;  %s940_s24 = scalar_lea.vmem %s1035_s0, %s793_s21  ;;  %s992_s29 = scalar_lea.vmem %s1037_s2, %s793_s21  ;;  %vm629_vm9 = vcmask 60416   ;;  %vm646_vm10 = vcmask 64512   ;;  %vm698_vm11 = vcmask 58368  }
   0xe   : > { %839 = vmatprep.subr.bf16.mxu0 %v873_v3  ;;  %852 = vmatprep.subr.bf16.mxu1 %v873_v3  ;;  %v186_v10 = vld [vmem:[%s940_s24] sm:$0xff]   ;;  %v188_v11 = vld [vmem:[%s940_s24 + $0x8] sm:$0xff]   ;;  %v190_v12 = vld [vmem:[%s940_s24 + $0x10] sm:$0xff]   ;;  %s796_s30 = sshll.u32 %s1042_s13, 1 }
   0xf   : > { %v206_v4 = vadd.s32 24, %v203_v2  ;;  %v210_v5 = vadd.s32 56, %v203_v2  ;;  %v215_v6 = vand.u32 31, %v203_v2  ;;  %v933_v8 = vadd.s32 32, %v203_v2  ;;  %463 = vrot.lane.b32.xlu0 %v186_v10, %s888_s25  ;;  %v192_v31 = vld [vmem:[%s940_s24 + $0x18] sm:$0xff]   ;;  %s184_s6 = scalar_lea.vmem %s1038_s3, %s796_s30 }
  0x10   : > { %v195_v17 = vunpack.c.h.bf16 %v186_v10  ;;  %v194_v18 = vunpack.c.l.bf16 %v186_v10  ;;  %v196_v19 = vunpack.c.l.bf16 %v188_v11  ;;  %v197_v20 = vunpack.c.h.bf16 %v188_v11 }
  0x11   : > { %v236_v9 = vand.u32 31, %v206_v4  ;;  %vm307_vm2 = vcmp.ne.s32.totalorder %v215_v6, 0  ;;  %v264_v13 = vand.u32 31, %v210_v5  ;;  %840 = vmatpush3.bf16.msra.mxu0 %v873_v3  ;;  %v243_v16 = vand.u32 31, %v933_v8  ;;  %855 = vmatpush3.bf16.msra.mxu1 %v873_v3 }
  0x12   : > { %v797_v15 = vsel %vm307_vm2, 1.0, %v887_v14  ;;  %841 = vmatprep.subr.bf16.mxu0 %v874_v7  ;;  %853 = vmatprep.subr.bf16.mxu1 %v874_v7  ;;  %v198_v21 = vunpack.c.l.bf16 %v190_v12  ;;  %v199_v22 = vunpack.c.h.bf16 %v190_v12  ;;  %v365_v23 = vrot.slane %v195_v17, 7 }
  0x13   : > { %v398_v24 = vrot.slane %v195_v17, 1  ;;  %v364_v25 = vrot.slane %v194_v18, 7  ;;  %v397_v26 = vrot.slane %v194_v18, 1  ;;  %v367_v27 = vrot.slane %v196_v19, 7  ;;  %465 = vrot.lane.b32.xlu0 %v188_v11, %s888_s25 }
  0x14   : > { %v369_v28 = vrot.slane %v197_v20, 7  ;;  %v402_v29 = vrot.slane %v197_v20, 1  ;;  %v400_v30 = vrot.slane %v196_v19, 1  ;;  %v371_v34 = vrot.slane %v198_v21, 7 }
  0x15   : > { %842 = vmatpush3.bf16.msra.mxu0 %v874_v7  ;;  %856 = vmatpush3.bf16.msra.mxu1 %v874_v7  ;;  %v387_v32 = vsel %vm363_vm0, 0.0, %v364_v25  ;;  %v399_v33 = vsel %vm396_vm1, %v397_v26, %v398_v24  ;;  %v373_v35 = vrot.slane %v199_v22, 7  ;;  %v404_v37 = vrot.slane %v198_v21, 1 }
  0x16   : > { %v401_v36 = vsel %vm396_vm1, %v398_v24, %v400_v30  ;;  %v406_v38 = vrot.slane %v199_v22, 1  ;;  %vm334_vm3 = vcmp.ne.s32.totalorder %v236_v9, 31  ;;  %v403_v40 = vsel %vm396_vm1, %v400_v30, %v402_v29 }
  0x17   : > { %v439_v39 = vpack.c.bf16 %v401_v36, %v399_v33  ;;  %v200_v41 = vunpack.c.l.bf16 %v192_v31  ;;  %v799_v42 = vsel %vm334_vm3, 1.0, %v887_v14  ;;  %v405_v43 = vsel %vm396_vm1, %v402_v29, %v404_v37  ;;  %467 = vrot.lane.b32.xlu0 %v190_v12, %s888_s25 }
  0x18   : > { %v407_v44 = vsel %vm396_vm1, %v404_v37, %v406_v38  ;;  %v201_v45 = vunpack.c.h.bf16 %v192_v31  ;;  %v424_v46 = vmul.f32 %v799_v42, %v405_v43  ;;  %vm338_vm4 = vcmp.ne.s32.totalorder %v264_v13, 31 }
  0x19   : > { %475 = vrot.lane.b32.xlu1 %v439_v39, %s889_s26  ;;  %v408_v47 = vrot.slane %v200_v41, 1  ;;  %v800_v50 = vsel %vm338_vm4, 1.0, %v887_v14  ;;  %v366_v51 = vsel %vm363_vm0, %v364_v25, %v365_v23  ;;  %v388_v54 = vmul.f32 %v797_v15, %v387_v32 }
  0x1a   : > { %v377_v48 = vrot.slane %v201_v45, 7  ;;  %v410_v49 = vrot.slane %v201_v45, 1  ;;  %v440_v52 = vpack.c.bf16 %v424_v46, %v403_v40  ;;  %v368_v55 = vsel %vm363_vm0, %v365_v23, %v367_v27 }
  0x1b   : > { %v409_v53 = vsel %vm396_vm1, %v406_v38, %v408_v47  ;;  %v370_v59 = vsel %vm363_vm0, %v367_v27, %v369_v28  ;;  %v435_v61 = vpack.c.bf16 %v366_v51, %v388_v54  ;;  %vm311_vm5 = vcmp.ne.s32.totalorder %v243_v16, 0 }
  0x1c   : > { %v441_v56 = vpack.c.bf16 %v409_v53, %v407_v44  ;;  %v411_v57 = vsel %vm396_vm1, %v408_v47, %v410_v49  ;;  %v420_v58 = vsel %vm396_vm1, %v410_v49, 0.0  ;;  %v436_v62 = vpack.c.bf16 %v370_v59, %v368_v55 }
  0x1d   : > { %477 = vrot.lane.b32.xlu1 %v440_v52, %s889_s26  ;;  %v428_v60 = vmul.f32 %v800_v50, %v420_v58  ;;  %v798_v63 = vsel %vm311_vm5, 1.0, %v887_v14  ;;  %v372_v0 = vsel %vm363_vm0, %v369_v28, %v371_v34  ;;  %v374_v1 = vsel %vm363_vm0, %v371_v34, %v373_v35 }
  0x1e   : > { %v375_v2 = vrot.slane %v200_v41, 7  ;;  %479 = vrot.lane.b32.xlu0 %v441_v56, %s889_s26  ;;  %v392_v3 = vmul.f32 %v798_v63, %v372_v0 }
  0x1f   : > { %v442_v6 = vpack.c.bf16 %v428_v60, %v411_v57 }
  0x20   : > { %v376_v4 = vsel %vm363_vm0, %v373_v35, %v375_v2  ;;  %v378_v5 = vsel %vm363_vm0, %v375_v2, %v377_v48  ;;  %v437_v7 = vpack.c.bf16 %v374_v1, %v392_v3 }
  0x21   : > { %469 = vrot.lane.b32.xlu1 %v192_v31, %s888_s25  ;;  %v438_v8 = vpack.c.bf16 %v378_v5, %v376_v4 }
  0x25   : > { %481 = vrot.lane.b32.xlu1 %v442_v6, %s889_s26 }
  0x81   : > { %v464_v9 = vpop.permute.xlu0 %463 }
  0x82   : > { %v486_v10 = vsel %vm483_vm6, %v435_v61, %v464_v9 }
  0x85   : > { %v466_v11 = vpop.permute.xlu0 %465 }
  0x86   : > { %v489_v14 = vsel %vm483_vm6, %v436_v62, %v466_v11 }
  0x89   : > { %v468_v15 = vpop.permute.xlu0 %467 }
  0x8a   : > { %v492_v16 = vsel %vm483_vm6, %v437_v7, %v468_v15 }
  0x8b   : > { %v476_v12 = vpop.permute.xlu1 %475 }
  0x8c   : > { %v498_v13 = vsel %vm496_vm7, %v486_v10, %v476_v12 }
  0x8d   : > { %843 = vmatprep.mubr.msk.bf16.mxu0 %vm523_vm8, %v498_v13 }
  0x8f   : > { %v478_v17 = vpop.permute.xlu1 %477 }
  0x90   : > { %v500_v18 = vsel %vm496_vm7, %v489_v14, %v478_v17  ;;  %v480_v19 = vpop.permute.xlu0 %479 }
  0x91   : > { %844 = vmatmul.mubr.msk.bf16.vlgmr.msra.gmra.mxu0 %vm523_vm8, %v500_v18  ;;  %v502_v20 = vsel %vm496_vm7, %v492_v16, %v480_v19 }
  0x92   : > { %847 = vmatprep.mubr.msk.bf16.mxu1 %vm523_vm8, %v502_v20 }
  0x93   : > { %v470_v21 = vpop.permute.xlu1 %469 }
  0x94   : > { %v495_v22 = vsel %vm483_vm6, %v438_v8, %v470_v21 }
  0x97   : > { %v482_v23 = vpop.permute.xlu1 %481 }
  0x98   : > { %v504_v24 = vsel %vm496_vm7, %v495_v22, %v482_v23 }
  0x99   : > { %848 = vmatmul.mubr.msk.bf16.vlgmr.msra.gmra.mxu1 %vm523_vm8, %v504_v24 }
 0x151   : > { %v845_v25 = vpop.f32.mrf.mxu0 }
 0x152   : > { %v824_v26 = vpack.c.bf16 %v845_v25, %v845_v25 }
 0x153   : > { %v566_v27 = vpop.f32.mrf.mxu0 }
 0x154   : > { %632 = vst.msk [vmem:[%s992_s29 + $0x8] sm:$0xf] %vm629_vm9, %v824_v26  ;;  %v822_v28 = vpack.c.bf16 %v566_v27, %v566_v27 }
 0x155   : > { %v846_v29 = vpop.f32.mrf.mxu0 }
 0x156   : > { %630 = vst.msk [vmem:[%s992_s29] sm:$0xf] %vm629_vm9, %v822_v28  ;;  %v598_v30 = vpack.c.bf16 %v846_v29, %v845_v25  ;;  %v825_v31 = vpack.c.bf16 %v846_v29, %v846_v29 }
 0x157   : > { %v569_v32 = vpop.f32.mrf.mxu0 }
 0x158   : > { %633 = vst.msk [vmem:[%s992_s29 + $0xc] sm:$0xf] %vm629_vm9, %v825_v31  ;;  %v640_v33 = vunpack.c.l.bf16 %v598_v30  ;;  %v597_v34 = vpack.c.bf16 %v569_v32, %v566_v27  ;;  %v823_v35 = vpack.c.bf16 %v569_v32, %v569_v32  ;;  %v641_v41 = vunpack.c.h.bf16 %v598_v30 }
 0x159   : > { %v849_v36 = vpop.f32.mrf.mxu1 }
 0x15a   : > { %631 = vst.msk [vmem:[%s992_s29 + $0x4] sm:$0xf] %vm629_vm9, %v823_v35  ;;  %v638_v37 = vunpack.c.l.bf16 %v597_v34  ;;  %v639_v38 = vunpack.c.h.bf16 %v597_v34  ;;  %v828_v39 = vpack.c.bf16 %v849_v36, %v849_v36  ;;  %v670_v42 = vmul.f32 %v640_v33, %v640_v33 }
 0x15b   : > { %v582_v40 = vpop.f32.mrf.mxu1  ;;  %v650_v51 = vsel %vm646_vm10, %v640_v33, 0.0  ;;  %v671_v58 = vmul.f32 %v641_v41, %v641_v41  ;;  %v652_v63 = vsel %vm646_vm10, %v641_v41, 0.0 }
 0x15c   : > { %v826_v43 = vpack.c.bf16 %v582_v40, %v582_v40  ;;  %v647_v44 = vsel %vm646_vm10, %v638_v37, 0.0  ;;  %v648_v45 = vsel %vm646_vm10, %v639_v38, 0.0  ;;  %v668_v46 = vmul.f32 %v638_v37, %v638_v37  ;;  %636 = vst.msk [vmem:[%s992_s29 + $0x18] sm:$0xf] %vm629_vm9, %v828_v39 }
 0x15d   : > { %v669_v47 = vmul.f32 %v639_v38, %v639_v38  ;;  %v850_v48 = vpop.f32.mrf.mxu1  ;;  %v649_v49 = vadd.f32 %v648_v45, %v647_v44  ;;  %v679_v59 = vsel %vm646_vm10, %v670_v42, 0.0  ;;  %v681_v4 = vsel %vm646_vm10, %v671_v58, 0.0 }
 0x15e   : > { %634 = vst.msk [vmem:[%s992_s29 + $0x10] sm:$0xf] %vm629_vm9, %v826_v43  ;;  %v829_v50 = vpack.c.bf16 %v850_v48, %v850_v48  ;;  %v676_v52 = vsel %vm646_vm10, %v668_v46, 0.0  ;;  %v600_v54 = vpack.c.bf16 %v850_v48, %v849_v36 }
 0x15f   : > { %v677_v53 = vsel %vm646_vm10, %v669_v47, 0.0  ;;  %v585_v55 = vpop.f32.mrf.mxu1  ;;  %v651_v56 = vadd.f32 %v650_v51, %v649_v49 }
 0x160   : > { %v678_v57 = vadd.f32 %v677_v53, %v676_v52  ;;  %637 = vst.msk [vmem:[%s992_s29 + $0x1c] sm:$0xf] %vm629_vm9, %v829_v50  ;;  %v599_v60 = vpack.c.bf16 %v585_v55, %v582_v40  ;;  %v827_v61 = vpack.c.bf16 %v585_v55, %v585_v55  ;;  %v644_v0 = vunpack.c.l.bf16 %v600_v54 }
 0x161   : > { %v653_v3 = vadd.f32 %v652_v63, %v651_v56  ;;  %v645_v5 = vunpack.c.h.bf16 %v600_v54 }
 0x162   : > { %v680_v62 = vadd.f32 %v679_v59, %v678_v57  ;;  %635 = vst.msk [vmem:[%s992_s29 + $0x14] sm:$0xf] %vm629_vm9, %v827_v61  ;;  %v642_v1 = vunpack.c.l.bf16 %v599_v60  ;;  %v643_v2 = vunpack.c.h.bf16 %v599_v60  ;;  %v674_v11 = vmul.f32 %v644_v0, %v644_v0 }
 0x163   : > { %v658_v16 = vsel %vm646_vm10, %v644_v0, 0.0  ;;  %v675_v17 = vmul.f32 %v645_v5, %v645_v5  ;;  %v660_v21 = vsel %vm646_vm10, %v645_v5, 0.0 }
 0x164   : > { %v654_v6 = vsel %vm646_vm10, %v642_v1, 0.0  ;;  %v672_v7 = vmul.f32 %v642_v1, %v642_v1  ;;  %v673_v9 = vmul.f32 %v643_v2, %v643_v2  ;;  %v682_v10 = vadd.f32 %v681_v4, %v680_v62 }
 0x165   : > { %v655_v8 = vadd.f32 %v654_v6, %v653_v3  ;;  %v656_v12 = vsel %vm646_vm10, %v643_v2, 0.0  ;;  %v687_v22 = vsel %vm646_vm10, %v674_v11, 0.0  ;;  %v689_v25 = vsel %vm646_vm10, %v675_v17, 0.0 }
 0x166   : > { %v683_v13 = vsel %vm646_vm10, %v672_v7, 0.0  ;;  %v685_v18 = vsel %vm646_vm10, %v673_v9, 0.0 }
 0x167   : > { %v657_v14 = vadd.f32 %v656_v12, %v655_v8  ;;  %v684_v15 = vadd.f32 %v683_v13, %v682_v10 }
 0x169   : > { %v659_v19 = vadd.f32 %v658_v16, %v657_v14  ;;  %v686_v20 = vadd.f32 %v685_v18, %v684_v15 }
 0x16b   : > { %v661_v23 = vadd.f32 %v660_v21, %v659_v19  ;;  %v688_v24 = vadd.f32 %v687_v22, %v686_v20 }
 0x16d   : > { %v662_v26 = vrot.slane %v661_v23, 4  ;;  %v690_v27 = vadd.f32 %v689_v25, %v688_v24 }
 0x16f   : > { %v663_v28 = vadd.f32 %v662_v26, %v661_v23  ;;  %v691_v29 = vrot.slane %v690_v27, 4 }
 0x171   : > { %v664_v30 = vrot.slane %v663_v28, 2  ;;  %v692_v31 = vadd.f32 %v691_v29, %v690_v27 }
 0x173   : > { %v665_v32 = vadd.f32 %v664_v30, %v663_v28  ;;  %v693_v33 = vrot.slane %v692_v31, 2 }
 0x175   : > { %v666_v34 = vrot.slane %v665_v32, 1  ;;  %v694_v35 = vadd.f32 %v693_v33, %v692_v31 }
 0x177   : > { %v695_v36 = vrot.slane %v694_v35, 1  ;;  %v667_v37 = vadd.f32 %v666_v34, %v665_v32 }
 0x179   : > { %v696_v38 = vadd.f32 %v695_v36, %v694_v35 }
 0x17b   : > { %v697_v39 = vsel %vm363_vm0, %v667_v37, %v696_v38 }
 0x17c   : > { %699 = vst.msk [vmem:[%s184_s6] sm:$0x3] %vm698_vm11, %v697_v39 }
 0x17d PF: > { %s14_s12 = sadd.s32 1, %s885_s12  }
 0x17e   : > { %p11_p5 = scmp.ge.s32.totalorder %s14_s12, 4  }
 0x180   :  { %13 = sbr.rel (!%p11_p5) target bundleno = 1 (0x1), region = 70 }

// kernel: unet_forward_pallas.30
= control target key start
LH: loop header
LB: loop body
LE: loop exit
PB: predicated region body
PF: predicated region fallthrough
CT: control target
= control target key end

     0   :  { %s600_s18 = smov 0   ;;  %s658_s0 = inlined_call_operand.vmem [shape: bf16[128,8], index: 0, kind: input, shape index: {}]   ;;  %s659_s1 = inlined_call_operand.vmem [shape: f32[1,8], index: 1, kind: input, shape index: {}]   ;;  %s660_s2 = inlined_call_operand.vmem [shape: f32[1,8], index: 2, kind: input, shape index: {}]   ;;  %s661_s3 = inlined_call_operand.vmem [shape: bf16[8,8], index: 3, kind: input, shape index: {}]   ;;  %s662_s4 = inlined_call_operand.vmem [shape: f32[1,8], index: 4, kind: input, shape index: {}]   ;;  %s663_s5 = inlined_call_operand.vmem [shape: bf16[128,8], index: 5, kind: output, shape index: {}]  }
   0x1 LB: > { %s482_s19 = sadd.s32 4294967295, %s568_s18   ;;  %p486_p0 = scmp.ge.s32.totalorder %s568_s18, 1  ;;  %s568_s18 = sphi %s600_s18, %s15_s18  }
   0x2   : > { %p188_p1 = scmp.lt.s32.totalorder %s568_s18, 3 }
   0x4   : > { %p189_p2 = pnand %p486_p0, %p188_p1 }
   0x5   : > { %s487_s22 = sshll.u32 (!%p189_p2), %s482_s19, 3 }
   0x6   : > { %192 = sbr.rel (%p189_p2) target bundleno = 233 (0xe9), region = 40  ;;  %p217_p3 = scmp.lt.s32.totalorder (!%p189_p2), %s487_s22, 15 }
   0xb   : > { %v287_v0 = vld [vmem:[%s661_s3] sm:$0xf]  ;;  %vm308_vm0 = vcmask 1043456   ;;  %s665_s22 = smov (!%p217_p3, %s487_s22), 15  ;;  %vm295_vm1 = vcmask 64512   ;;  %vm417_vm2 = vcmask 60416  }
   0xc   : > { %552 = vmatprep.subr.msk.bf16.mxu0 %vm308_vm0, %v287_v0  ;;  %553 = vmatprep.subr.msk.bf16.mxu1 %vm308_vm0, %v287_v0  ;;  %v310_v1 = vsel %vm308_vm0, %v287_v0, 0  ;;  %s488_s23 = sshll.u32 %s665_s22, 2  ;;  %v491_v2 = vld [vmem:[%s659_s1] ss:$0 sm:$0xff] }
   0xd   : > { %541 = vmatpush3.bf16.msra.mxu0 %v310_v1  ;;  %551 = vmatpush3.bf16.msra.mxu1 %v310_v1  ;;  %s220_s26 = scalar_lea.vmem %s658_s0, %s488_s23  ;;  %v492_v11 = vld [vmem:[%s660_s2] ss:$0 sm:$0xff]  ;;  %s637_s10 = scalar_lea.vmem %s663_s5, %s488_s23 }
   0xe   : > { %v517_v3 = vld [vmem:[%s220_s26] sm:$0xff]   ;;  %v533_v4 = vld [vmem:[%s220_s26 + $0x10] sm:$0xff]   ;;  %v532_v5 = vld [vmem:[%s220_s26 + $0x8] sm:$0xff]  }
   0xf   : > { %v518_v6 = vunpack.c.l.bf16 %v517_v3  ;;  %v519_v7 = vunpack.c.h.bf16 %v517_v3  ;;  %v526_v8 = vunpack.c.l.bf16 %v533_v4  ;;  %v527_v9 = vunpack.c.h.bf16 %v533_v4  ;;  %v534_v10 = vld [vmem:[%s220_s26 + $0x18] sm:$0xff]   ;;  %v493_v44 = vld [vmem:[%s662_s4] ss:$0 sm:$0xff] }
  0x10   : > { %v522_v12 = vunpack.c.l.bf16 %v532_v5  ;;  %v523_v13 = vunpack.c.h.bf16 %v532_v5  ;;  %v530_v14 = vunpack.c.l.bf16 %v534_v10  ;;  %v531_v15 = vunpack.c.h.bf16 %v534_v10 }
  0x11   : > { %v252_v16 = vmul.f32 %v518_v6, %v491_v2  ;;  %v253_v17 = vmul.f32 %v519_v7, %v491_v2  ;;  %v256_v18 = vmul.f32 %v526_v8, %v491_v2  ;;  %v257_v19 = vmul.f32 %v527_v9, %v491_v2 }
  0x12   : > { %v254_v20 = vmul.f32 %v522_v12, %v491_v2  ;;  %v255_v21 = vmul.f32 %v523_v13, %v491_v2  ;;  %v258_v22 = vmul.f32 %v530_v14, %v491_v2  ;;  %v259_v23 = vmul.f32 %v531_v15, %v491_v2 }
  0x13   : > { %v267_v24 = vadd.f32 %v492_v11, %v252_v16  ;;  %v268_v25 = vadd.f32 %v492_v11, %v253_v17  ;;  %v271_v26 = vadd.f32 %v492_v11, %v256_v18  ;;  %v272_v27 = vadd.f32 %v492_v11, %v257_v19 }
  0x14   : > { %v269_v28 = vadd.f32 %v492_v11, %v254_v20  ;;  %v270_v29 = vadd.f32 %v492_v11, %v255_v21  ;;  %v273_v30 = vadd.f32 %v492_v11, %v258_v22  ;;  %v274_v31 = vadd.f32 %v492_v11, %v259_v23 }
  0x15   : > { %v275_v32 = vmax.f32 %v267_v24, 0.0  ;;  %v276_v33 = vmax.f32 %v268_v25, 0.0  ;;  %v279_v34 = vmax.f32 %v271_v26, 0.0  ;;  %v280_v35 = vmax.f32 %v272_v27, 0.0 }
  0x16   : > { %v277_v36 = vmax.f32 %v269_v28, 0.0  ;;  %v278_v37 = vmax.f32 %v270_v29, 0.0  ;;  %v281_v38 = vmax.f32 %v273_v30, 0.0  ;;  %v282_v39 = vmax.f32 %v274_v31, 0.0 }
  0x17   : > { %v283_v40 = vpack.c.bf16 %v276_v33, %v275_v32  ;;  %v285_v41 = vpack.c.bf16 %v280_v35, %v279_v34 }
  0x18   : > { %v284_v42 = vpack.c.bf16 %v278_v37, %v277_v36  ;;  %v286_v43 = vpack.c.bf16 %v282_v39, %v281_v38 }
  0x19   : > { %542 = vmatprep.mubr.msk.bf16.mxu0 %vm295_vm1, %v283_v40  ;;  %546 = vmatprep.mubr.msk.bf16.mxu1 %vm295_vm1, %v285_v41 }
  0x1a   : > { %543 = vmatmul.mubr.msk.bf16.vlgmr.msra.gmra.mxu0 %vm295_vm1, %v284_v42  ;;  %547 = vmatmul.mubr.msk.bf16.vlgmr.msra.gmra.mxu1 %vm295_vm1, %v286_v43 }
  0xda   : > { %v544_v45 = vpop.f32.mrf.mxu0  ;;  %v548_v46 = vpop.f32.mrf.mxu1 }
  0xdb   : > { %v355_v47 = vadd.f32 %v544_v45, %v493_v44  ;;  %v371_v48 = vadd.f32 %v548_v46, %v493_v44 }
  0xdc   : > { %v346_v49 = vpop.f32.mrf.mxu0  ;;  %v362_v50 = vpop.f32.mrf.mxu1 }
  0xdd   : > { %v379_v51 = vmax.f32 %v355_v47, 0.0  ;;  %v383_v52 = vmax.f32 %v371_v48, 0.0  ;;  %v347_v53 = vadd.f32 %v493_v44, %v346_v49  ;;  %v363_v54 = vadd.f32 %v493_v44, %v362_v50 }
  0xde   : > { %v545_v55 = vpop.f32.mrf.mxu0  ;;  %v549_v56 = vpop.f32.mrf.mxu1 }
  0xdf   : > { %v510_v57 = vpack.c.bf16 %v379_v51, %v379_v51  ;;  %v514_v58 = vpack.c.bf16 %v383_v52, %v383_v52  ;;  %v377_v59 = vmax.f32 %v347_v53, 0.0  ;;  %v381_v60 = vmax.f32 %v363_v54, 0.0 }
  0xe0   : > { %v358_v61 = vadd.f32 %v545_v55, %v493_v44  ;;  %v374_v62 = vadd.f32 %v549_v56, %v493_v44  ;;  %v349_v63 = vpop.f32.mrf.mxu0  ;;  %v365_v0 = vpop.f32.mrf.mxu1 }
  0xe1   : > { %420 = vst.msk [vmem:[%s637_s10 + $0x8] sm:$0xf] %vm417_vm2, %v510_v57  ;;  %424 = vst.msk [vmem:[%s637_s10 + $0x18] sm:$0xf] %vm417_vm2, %v514_v58  ;;  %v508_v1 = vpack.c.bf16 %v377_v59, %v377_v59  ;;  %v512_v2 = vpack.c.bf16 %v381_v60, %v381_v60  ;;  %v350_v3 = vadd.f32 %v493_v44, %v349_v63 }
  0xe2   : > { %v366_v4 = vadd.f32 %v493_v44, %v365_v0  ;;  %v380_v5 = vmax.f32 %v358_v61, 0.0  ;;  %v384_v6 = vmax.f32 %v374_v62, 0.0 }
  0xe3   : > { %418 = vst.msk [vmem:[%s637_s10] sm:$0xf] %vm417_vm2, %v508_v1  ;;  %422 = vst.msk [vmem:[%s637_s10 + $0x10] sm:$0xf] %vm417_vm2, %v512_v2  ;;  %v378_v7 = vmax.f32 %v350_v3, 0.0 }
  0xe4   : > { %v382_v8 = vmax.f32 %v366_v4, 0.0  ;;  %v511_v9 = vpack.c.bf16 %v380_v5, %v380_v5  ;;  %v515_v10 = vpack.c.bf16 %v384_v6, %v384_v6 }
  0xe5   : > { %v509_v11 = vpack.c.bf16 %v378_v7, %v378_v7 }
  0xe6   : > { %v513_v12 = vpack.c.bf16 %v382_v8, %v382_v8  ;;  %421 = vst.msk [vmem:[%s637_s10 + $0xc] sm:$0xf] %vm417_vm2, %v511_v9  ;;  %425 = vst.msk [vmem:[%s637_s10 + $0x1c] sm:$0xf] %vm417_vm2, %v515_v10 }
  0xe7   : > { %419 = vst.msk [vmem:[%s637_s10 + $0x4] sm:$0xf] %vm417_vm2, %v509_v11 }
  0xe8   : > { %423 = vst.msk [vmem:[%s637_s10 + $0x14] sm:$0xf] %vm417_vm2, %v513_v12 }
  0xe9 PF: > { %s15_s18 = sadd.s32 1, %s568_s18  }
  0xea   : > { %p12_p4 = scmp.ge.s32.totalorder %s15_s18, 4  }
  0xec   :  { %14 = sbr.rel (!%p12_p4) target bundleno = 1 (0x1), region = 70 }

// kernel: unet_forward_pallas.31
= control target key start
LH: loop header
LB: loop body
LE: loop exit
PB: predicated region body
PF: predicated region fallthrough
CT: control target
= control target key end

     0   :  { %s376_s0 = inlined_call_operand.vmem [shape: bf16[4,256], index: 0, kind: input, shape index: {}]   ;;  %s377_s1 = inlined_call_operand.vmem [shape: bf16[256,8], index: 1, kind: input, shape index: {}]   ;;  %s378_s2 = inlined_call_operand.vmem [shape: f32[1,8], index: 2, kind: input, shape index: {}]   ;;  %s379_s3 = inlined_call_operand.hbm [shape: f32[4,8], index: 3, kind: output, shape index: {}]  }
   0x1   :  { %v260_v0 = vld [vmem:[%s377_s1 + $0x78] sm:$0xff]   ;;  %v262_v2 = vld [vmem:[%s377_s1 + $0x70] sm:$0xff]   ;;  %v264_v4 = vld [vmem:[%s377_s1 + $0x68] sm:$0xff]  }
   0x2   :  { %v261_v1 = vld [vmem:[%s377_s1 + $0x38] sm:$0xff]   ;;  %237 = vmatprep.subr.bf16.mxu0 %v260_v0  ;;  %v263_v3 = vld [vmem:[%s377_s1 + $0x30] sm:$0xff]   ;;  %v265_v5 = vld [vmem:[%s377_s1 + $0x28] sm:$0xff]  }
   0x3   :  { %238 = vmatpush3.bf16.msra.mxu0 %v261_v1  ;;  %v266_v6 = vld [vmem:[%s377_s1 + $0x60] sm:$0xff]   ;;  %v268_v8 = vld [vmem:[%s377_s1 + $0x58] sm:$0xff]   ;;  %v270_v10 = vld [vmem:[%s377_s1 + $0x50] sm:$0xff]  }
   0x4   :  { %239 = vmatprep.subr.bf16.mxu0 %v262_v2  ;;  %v267_v7 = vld [vmem:[%s377_s1 + $0x20] sm:$0xff]   ;;  %v269_v9 = vld [vmem:[%s377_s1 + $0x18] sm:$0xff]  }
   0x5   :  { %v220_v11 = vld.sshfl [vmem:[%s376_s0] sm:$0x33 pattern:$0x76325410] }
   0x7   :  { %240 = vmatpush3.bf16.msra.mxu0 %v263_v3 }
   0x8   :  { %241 = vmatprep.subr.bf16.mxu0 %v264_v4 }
   0xb   :  { %242 = vmatpush3.bf16.msra.mxu0 %v265_v5 }
   0xc   :  { %243 = vmatprep.subr.bf16.mxu0 %v266_v6 }
   0xf   :  { %244 = vmatpush3.bf16.msra.mxu0 %v267_v7 }
  0x10   :  { %245 = vmatprep.subr.bf16.mxu0 %v268_v8 }
  0x11   :  { %8 = vsyncpa [#allocation3], 0  ;;  %v64_v12 = vcombine.high %v220_v11, %v220_v11  ;;  %v271_v13 = vld [vmem:[%s377_s1 + $0x10] sm:$0xff]   ;;  %v272_v14 = vld [vmem:[%s377_s1 + $0x48] sm:$0xff]   ;;  %s298_s20 = smov [#allocation2]   ;;  %vm203_vm0 = vcmask 60416  }
  0x12   :  { %v273_v15 = vld [vmem:[%s377_s1 + $0x8] sm:$0xff]   ;;  %v274_v16 = vld [vmem:[%s377_s1 + $0x40] sm:$0xff]   ;;  %s211_s21 = sshll.u32 %s298_s20, 4  ;;  %s212_s21 = int_to_ptr.vmem [resolvable:$true] %s211_s21 }
  0x13   :  { %246 = vmatpush3.bf16.msra.mxu0 %v269_v9  ;;  %195 = vmatprep.mubr.bf16.mxu0 %v64_v12  ;;  %v275_v17 = vld [vmem:[%s377_s1] sm:$0xff]   ;;  %s276_s22 = scalar_lea.vmem %s212_s21, 64  ;;  %p281_p1 = scmp.lt.s32.totalorder %s212_s21, %s212_s21 }
  0x14   :  { %247 = vmatprep.subr.bf16.mxu0 %v270_v10  ;;  %v219_v19 = vld [vmem:[%s378_s2] ss:$0 sm:$0xff]  ;;  %p277_p0 = scmp.ne.s32.totalorder %s212_s21, %s276_s22  ;;  %p282_p2 = scmp.lt.s32.totalorder %s276_s22, %s276_s22 }
  0x16   :  { %p283_p3 = por %p282_p2, %p281_p1 }
  0x17   :  { %248 = vmatpush3.bf16.msra.mxu0 %v271_v13 }
  0x18   :  { %249 = vmatprep.subr.bf16.mxu0 %v272_v14  ;;  %p284_p4 = pnand %p283_p3, %p277_p0 }
  0x1b   :  { %250 = vmatpush3.bf16.msra.mxu0 %v273_v15 }
  0x1c   :  { %251 = vmatprep.subr.bf16.mxu0 %v274_v16 }
  0x1f   :  { %252 = vmatpush3.bf16.msra.mxu0 %v275_v17 }
  0x22   :  { %196 = vmatmul.mubr.bf16.vlgmr.msra.gmra.mxu0 %v220_v11 }
  0xe2   :  { %v253_v18 = vpop.f32.mrf.mxu0 }
  0xe4   :  { %v254_v20 = vpop.f32.mrf.mxu0 }
  0xe5   :  { %v255_v21 = vadd.f32 %v254_v20, %v253_v18 }
  0xe6   :  { %v256_v22 = vpop.f32.mrf.mxu0 }
  0xe7   :  { %v198_v23 = vadd.f32 %v255_v21, %v219_v19 }
  0xe8   :  { %v257_v24 = vpop.f32.mrf.mxu0 }
  0xe9   :  { %204 = vst.msk [vmem:[#allocation2] sm:$0xf] %vm203_vm0, %v198_v23 }
  0xea   :  { %287 = shalt.err (!%p284_p4)
}
  0xeb   :  { %214 = dma.vmem_to_hbm [thread:$0]  %s212_s21, 64, %s379_s3, [#allocation3]  }
  0xec   :  { %296 = dma.done.wait [#allocation3], 64  }
  0xed   :  { %297 = vsyncadd [#allocation3], 4294967232 }
  0xee   :  { %218 = vsyncpa [#allocation3], 1 }

</bundles_post_ra>
